<compile_context>
chip_gen: v6e
topology: v6e:2x2x1
jax: 0.10.0
libtpu: 0.0.40
codegen_flags: <defaults>
</compile_context>

<pallas_src>
import math

import jax
import jax.numpy as jnp
from jax.experimental import pallas as pl
from jax.experimental.pallas import tpu as pltpu

# ----- small BERT config (shapes implied by the forward pass) -----
VOCAB = 100
HIDDEN = 32
HEADS = 4
HEAD_DIM = HIDDEN // HEADS
LAYERS = 2
INTERMEDIATE = 64
MAX_POS = 16
TYPE_VOCAB = 2
NUM_LABELS = 2
LN_EPS = 1e-12

# ----- packed small-parameter layout: one row per vector, padded to 128 lanes -----
VEC_WIDTH = 128
ROW_EMB_G = 0
ROW_EMB_B = 1
ROW_LAYER0 = 2
ROWS_PER_LAYER = 8
OFF_BQKV, OFF_BO, OFF_ATTN_LN_G, OFF_ATTN_LN_B = 0, 1, 2, 3
OFF_B1, OFF_B2, OFF_FFN_LN_G, OFF_FFN_LN_B = 4, 5, 6, 7
ROW_BP = ROW_LAYER0 + LAYERS * ROWS_PER_LAYER
ROW_BC = ROW_BP + 1
N_VEC_ROWS = ROW_BC + 1


# ---------------- in-kernel helpers ----------------

def _mm(a, w_bf16):
    # MXU: bf16 operands (weights pre-cast once in HBM), f32 accumulation.
    return jnp.dot(a.astype(jnp.bfloat16), w_bf16,
                   preferred_element_type=jnp.float32)


def _ln(y, gamma, beta):
    mean = jnp.mean(y, axis=-1, keepdims=True)
    var = jnp.mean((y - mean) * (y - mean), axis=-1, keepdims=True)
    return (y - mean) * jax.lax.rsqrt(var + LN_EPS) * gamma + beta


def _gelu(y):
    # tanh-approx GELU (TODO(synk): HF BERT default is exact erf-GELU)
    c = math.sqrt(2.0 / math.pi)
    return 0.5 * y * (1.0 + jnp.tanh(c * (y + 0.044715 * y * y * y)))


# ---------------- the single fused forward kernel ----------------

def _bert_forward_kernel(x_ref, mask_ref, lab_ref,
                         wqkv_ref, wo_ref, w1_ref, w2_ref,
                         wp_ref, wc_ref, vecs_ref,
                         logits_ref, loss_ref,
                         ctx_ref, cls_ref):
    B, L = mask_ref.shape
    n_layers = wqkv_ref.shape[0]
    H = HIDDEN
    I = w1_ref.shape[2]

    def vec(row, width):
        # one packed small-parameter row, (1, width) f32
        return vecs_ref[row:row + 1, :width]

    # ---- embedding LayerNorm over the whole flattened batch ----
    x = _ln(x_ref[...], vec(ROW_EMB_G, H), vec(ROW_EMB_B, H))      # (B*L, H) f32

    # raw (B, L) attention mask -> additive form, computed in-kernel (VPU filler)
    addmask = (1.0 - mask_ref[...]) * -10000.0                     # (B, L) f32

    scale = 1.0 / math.sqrt(HEAD_DIM)
    for layer in range(n_layers):
        base = ROW_LAYER0 + layer * ROWS_PER_LAYER
        wqkv = wqkv_ref[layer]          # (H, 3H) bf16
        wo = wo_ref[layer]              # (H, H)  bf16
        w1 = w1_ref[layer]              # (H, I)  bf16
        w2 = w2_ref[layer]              # (I, H)  bf16

        # Fused Q/K/V projection for the whole batch; ONE bf16 cast afterwards.
        qkv = (_mm(x, wqkv) + vec(base + OFF_BQKV, 3 * H)).astype(jnp.bfloat16)

        # Per-(batch, head) attention; each head's context lands at its lane
        # offset in a (B*L, H) VMEM scratch -> output projection is ONE matmul.
        for b in range(B):
            qkv_b = qkv[b * L:(b + 1) * L, :]                      # (L, 3H) bf16
            mrow = addmask[b:b + 1, :]                             # (1, L) f32
            for h in range(HEADS):
                q_h = qkv_b[:, h * HEAD_DIM:(h + 1) * HEAD_DIM]
                k_h = qkv_b[:, H + h * HEAD_DIM:H + (h + 1) * HEAD_DIM]
                v_h = qkv_b[:, 2 * H + h * HEAD_DIM:2 * H + (h + 1) * HEAD_DIM]
                scores = jax.lax.dot_general(
                    q_h, k_h, (((1,), (1,)), ((), ())),
                    preferred_element_type=jnp.float32) * scale    # (L, L) f32
                scores = scores + mrow                             # f32 mask add
                smax = jnp.max(scores, axis=-1, keepdims=True)
                e = jnp.exp(scores - smax)
                probs = e * pl.reciprocal(
                    jnp.sum(e, axis=-1, keepdims=True), approx=True)
                ctx_ref[b * L:(b + 1) * L,
                        h * HEAD_DIM:(h + 1) * HEAD_DIM] = jnp.dot(
                    probs.astype(jnp.bfloat16), v_h,
                    preferred_element_type=jnp.float32)

        # single output projection + residual + LayerNorm (never leaves VMEM)
        attn = _mm(ctx_ref[...], wo) + vec(base + OFF_BO, H)
        x = _ln(attn + x, vec(base + OFF_ATTN_LN_G, H),
                vec(base + OFF_ATTN_LN_B, H))

        # FFN: dense+GELU -> dense -> residual -> LayerNorm
        hmid = _gelu(_mm(x, w1) + vec(base + OFF_B1, I))
        y = _mm(hmid, w2) + vec(base + OFF_B2, H)
        x = _ln(y + x, vec(base + OFF_FFN_LN_G, H), vec(base + OFF_FFN_LN_B, H))

    # ---- CLS slice + pooler (tanh) + classifier + mean cross-entropy, f32 ----
    for b in range(B):
        cls_ref[b:b + 1, :] = x[b * L:b * L + 1, :]
    cls = cls_ref[...]                                             # (B, H)
    pooled = jnp.tanh(
        jnp.dot(cls, wp_ref[...], preferred_element_type=jnp.float32)
        + vec(ROW_BP, H))
    logits = (jnp.dot(pooled, wc_ref[...], preferred_element_type=jnp.float32)
              + vec(ROW_BC, NUM_LABELS))                           # (B, C)
    logits_ref[...] = logits
    m = jnp.max(logits, axis=-1, keepdims=True)
    lse = m + jnp.log(jnp.sum(jnp.exp(logits - m), axis=-1, keepdims=True))
    cls_ids = jax.lax.broadcasted_iota(jnp.int32, logits.shape, 1)
    picked = jnp.sum(jnp.where(cls_ids == lab_ref[...], logits, 0.0),
                     axis=-1, keepdims=True)
    per_example = lse - picked                                     # (B, 1)
    loss_ref[...] = jnp.sum(per_example, axis=0, keepdims=True) / float(B)


# ---------------- wrapper: one pallas_call for the whole forward ----------------

def bert_forward(params, tokens, masks, labels):
    B, L = tokens.shape
    H, I = HIDDEN, INTERMEDIATE
    BL = B * L

    # Embedding lookups are glue (gather); everything else runs in the kernel.
    pos_ids = jnp.arange(L, dtype=jnp.int32)
    type_ids = jnp.zeros((B, L), jnp.int32)
    x = (params["word_emb"][tokens]
         + params["pos_emb"][pos_ids][None, :, :]
         + params["type_emb"][type_ids])
    x = x.reshape(BL, H)   # flatten leading dims (free): sublane dim 16, not 8

    flops = (LAYERS * (2 * BL * H * 3 * H
                       + B * HEADS * 2 * (2 * L * L * HEAD_DIM)
                       + 2 * BL * H * H
                       + 2 * BL * H * I + 2 * BL * I * H)
             + 2 * B * H * H + 2 * B * H * NUM_LABELS)
    transcendentals = (LAYERS * (B * HEADS * L * L + BL * I)
                       + BL * (2 * LAYERS + 1) + B * H + B * NUM_LABELS)
    bytes_accessed = (2 * LAYERS * (H * 3 * H + H * H + 2 * H * I)      # bf16 weights
                      + 4 * (H * H + H * NUM_LABELS)                    # f32 head weights
                      + 4 * (BL * H + B * L + B + N_VEC_ROWS * VEC_WIDTH
                             + B * NUM_LABELS + 1))
    ce = pl.CostEstimate(flops=flops, transcendentals=transcendentals,
                         bytes_accessed=bytes_accessed)

    logits, loss = pl.pallas_call(
        _bert_forward_kernel,
        out_shape=(jax.ShapeDtypeStruct((B, NUM_LABELS), jnp.float32),
                   jax.ShapeDtypeStruct((1, 1), jnp.float32)),
        grid=(1,),
        in_specs=[
            pl.BlockSpec((BL, H), lambda i: (0, 0)),                 # x (flattened)
            pl.BlockSpec((B, L), lambda i: (0, 0)),                  # raw mask
            pl.BlockSpec((B, 1), lambda i: (0, 0)),                  # labels
            pl.BlockSpec((LAYERS, H, 3 * H), lambda i: (0, 0, 0)),   # wqkv (bf16)
            pl.BlockSpec((LAYERS, H, H), lambda i: (0, 0, 0)),       # wo   (bf16)
            pl.BlockSpec((LAYERS, H, I), lambda i: (0, 0, 0)),       # w1   (bf16)
            pl.BlockSpec((LAYERS, I, H), lambda i: (0, 0, 0)),       # w2   (bf16)
            pl.BlockSpec((H, H), lambda i: (0, 0)),                  # wp (f32)
            pl.BlockSpec((H, NUM_LABELS), lambda i: (0, 0)),         # wc (f32)
            pl.BlockSpec((N_VEC_ROWS, VEC_WIDTH), lambda i: (0, 0)), # packed biases/LN
        ],
        out_specs=(pl.BlockSpec((B, NUM_LABELS), lambda i: (0, 0)),
                   pl.BlockSpec((1, 1), lambda i: (0, 0))),
        scratch_shapes=[pltpu.VMEM((BL, H), jnp.float32),   # per-head context slab
                        pltpu.VMEM((B, H), jnp.float32)],   # CLS rows
        cost_estimate=ce,
    )(x, masks.astype(jnp.float32), labels.reshape(B, 1).astype(jnp.int32),
      params["wqkv"], params["wo"], params["w1"], params["w2"],
      params["wp"], params["wc"], params["vecs"])
    return loss[0, 0], logits


# ---------------- parameters (deterministic init) ----------------

def init_params(key):
    counter = [0]

    def nxt():
        counter[0] += 1
        return jax.random.fold_in(key, counter[0])

    def nrm(shape):
        return (0.02 * jax.random.normal(nxt(), shape)).astype(jnp.float32)

    def stack_bf16(shape):
        # per-layer weights stacked along a leading LAYERS dim, stored bf16 in HBM
        return jnp.stack([nrm(shape) for _ in range(LAYERS)]).astype(jnp.bfloat16)

    # packed small vectors: one row each, zero-padded to 128 lanes
    vecs = jnp.zeros((N_VEC_ROWS, VEC_WIDTH), jnp.float32)
    vecs = vecs.at[ROW_EMB_G, :HIDDEN].set(1.0)
    for l in range(LAYERS):
        base = ROW_LAYER0 + l * ROWS_PER_LAYER
        vecs = vecs.at[base + OFF_ATTN_LN_G, :HIDDEN].set(1.0)
        vecs = vecs.at[base + OFF_FFN_LN_G, :HIDDEN].set(1.0)
    # (all bias / LN-beta rows stay zero, matching the zero-init reference)

    return dict(
        word_emb=nrm((VOCAB, HIDDEN)),
        pos_emb=nrm((MAX_POS, HIDDEN)),
        type_emb=nrm((TYPE_VOCAB, HIDDEN)),
        wqkv=stack_bf16((HIDDEN, 3 * HIDDEN)),
        wo=stack_bf16((HIDDEN, HIDDEN)),
        w1=stack_bf16((HIDDEN, INTERMEDIATE)),
        w2=stack_bf16((INTERMEDIATE, HIDDEN)),
        wp=nrm((HIDDEN, HIDDEN)),
        wc=nrm((HIDDEN, NUM_LABELS)),
        vecs=vecs,
    )


if __name__ == "__main__":
    B, L = 2, 8
    key = jax.random.PRNGKey(0)
    params = init_params(key)

    k_tok, k_lab = jax.random.split(jax.random.PRNGKey(0), 2)
    tokens = jax.random.randint(k_tok, (B, L), 0, VOCAB, dtype=jnp.int32)
    masks = jnp.ones((B, L), jnp.float32).at[1, 6:].set(0.0)  # pad last 2 of sample 1
    labels = jnp.array([0, 1], dtype=jnp.int32)

    loss, logits = jax.jit(bert_forward)(params, tokens, masks, labels)
    jax.block_until_ready((loss, logits))
    assert logits.shape == (B, NUM_LABELS)
    assert loss.shape == ()
    print("KERNEL_OK")
</pallas_src>

<mosaic_0001>
module attributes {stable_mosaic.version = 11 : i64} {
  func.func @_bert_forward_kernel(%arg0: i32, %arg1: memref<16x32xf32, #tpu.memory_space<vmem>>, %arg2: memref<2x8xf32, #tpu.memory_space<vmem>>, %arg3: memref<2x1xi32, #tpu.memory_space<vmem>>, %arg4: memref<2x32x96xbf16, #tpu.memory_space<vmem>>, %arg5: memref<2x32x32xbf16, #tpu.memory_space<vmem>>, %arg6: memref<2x32x64xbf16, #tpu.memory_space<vmem>>, %arg7: memref<2x64x32xbf16, #tpu.memory_space<vmem>>, %arg8: memref<32x32xf32, #tpu.memory_space<vmem>>, %arg9: memref<32x2xf32, #tpu.memory_space<vmem>>, %arg10: memref<20x128xf32, #tpu.memory_space<vmem>>, %arg11: memref<2x2xf32, #tpu.memory_space<vmem>>, %arg12: memref<1x1xf32, #tpu.memory_space<vmem>>, %arg13: memref<16x32xf32, #tpu.memory_space<vmem>>, %arg14: memref<2x32xf32, #tpu.memory_space<vmem>>) attributes {dimension_semantics = [#tpu.dimension_semantics<arbitrary>], iteration_bounds = array<i64: 1>, scalar_prefetch = 0 : i64, scratch_operands = 2 : i64, tpu.core_type = #tpu.core_type<tc>, window_params = [{pipeline_mode = #tpu.pipeline_mode<synchronous>, transform_indices = @transform_0, window_bounds = array<i64: 16, 32>}, {pipeline_mode = #tpu.pipeline_mode<synchronous>, transform_indices = @transform_1, window_bounds = array<i64: 2, 8>}, {pipeline_mode = #tpu.pipeline_mode<synchronous>, transform_indices = @transform_2, window_bounds = array<i64: 2, 1>}, {pipeline_mode = #tpu.pipeline_mode<synchronous>, transform_indices = @transform_3, window_bounds = array<i64: 2, 32, 96>}, {pipeline_mode = #tpu.pipeline_mode<synchronous>, transform_indices = @transform_4, window_bounds = array<i64: 2, 32, 32>}, {pipeline_mode = #tpu.pipeline_mode<synchronous>, transform_indices = @transform_5, window_bounds = array<i64: 2, 32, 64>}, {pipeline_mode = #tpu.pipeline_mode<synchronous>, transform_indices = @transform_6, window_bounds = array<i64: 2, 64, 32>}, {pipeline_mode = #tpu.pipeline_mode<synchronous>, transform_indices = @transform_7, window_bounds = array<i64: 32, 32>}, {pipeline_mode = #tpu.pipeline_mode<synchronous>, transform_indices = @transform_8, window_bounds = array<i64: 32, 2>}, {pipeline_mode = #tpu.pipeline_mode<synchronous>, transform_indices = @transform_9, window_bounds = array<i64: 20, 128>}, {pipeline_mode = #tpu.pipeline_mode<synchronous>, transform_indices = @transform_10, window_bounds = array<i64: 2, 2>}, {pipeline_mode = #tpu.pipeline_mode<synchronous>, transform_indices = @transform_11, window_bounds = array<i64: 1, 1>}]} {
    %c0 = arith.constant 0 : index
    %c0_0 = arith.constant 0 : index
    %0 = vector.load %arg1[%c0, %c0_0] : memref<16x32xf32, #tpu.memory_space<vmem>>, vector<16x32xf32>
    %c0_1 = arith.constant 0 : index
    %c0_2 = arith.constant 0 : index
    %1 = vector.load %arg10[%c0_1, %c0_2] : memref<20x128xf32, #tpu.memory_space<vmem>>, vector<1x32xf32>
    %c1 = arith.constant 1 : index
    %c0_3 = arith.constant 0 : index
    %2 = vector.load %arg10[%c1, %c0_3] : memref<20x128xf32, #tpu.memory_space<vmem>>, vector<1x32xf32>
    %cst = arith.constant dense<0.000000e+00> : vector<16xf32>
    %3 = vector.multi_reduction <add>, %0, %cst [1] : vector<16x32xf32> to vector<16xf32>
    %4 = vector.shape_cast %3 : vector<16xf32> to vector<16x1xf32>
    %cst_4 = arith.constant 3.200000e+01 : f32
    %5 = vector.broadcast %cst_4 : f32 to vector<16x1xf32>
    %6 = arith.divf %4, %5 : vector<16x1xf32>
    %7 = vector.broadcast %6 : vector<16x1xf32> to vector<16x32xf32>
    %8 = arith.subf %0, %7 : vector<16x32xf32>
    %9 = vector.broadcast %6 : vector<16x1xf32> to vector<16x32xf32>
    %10 = arith.subf %0, %9 : vector<16x32xf32>
    %11 = arith.mulf %8, %10 : vector<16x32xf32>
    %cst_5 = arith.constant dense<0.000000e+00> : vector<16xf32>
    %12 = vector.multi_reduction <add>, %11, %cst_5 [1] : vector<16x32xf32> to vector<16xf32>
    %13 = vector.shape_cast %12 : vector<16xf32> to vector<16x1xf32>
    %cst_6 = arith.constant 3.200000e+01 : f32
    %14 = vector.broadcast %cst_6 : f32 to vector<16x1xf32>
    %15 = arith.divf %13, %14 : vector<16x1xf32>
    %16 = vector.broadcast %6 : vector<16x1xf32> to vector<16x32xf32>
    %17 = arith.subf %0, %16 : vector<16x32xf32>
    %cst_7 = arith.constant 9.99999996E-13 : f32
    %18 = vector.broadcast %cst_7 : f32 to vector<16x1xf32>
    %19 = arith.addf %15, %18 : vector<16x1xf32>
    %20 = math.rsqrt %19 : vector<16x1xf32>
    %21 = vector.broadcast %20 : vector<16x1xf32> to vector<16x32xf32>
    %22 = arith.mulf %17, %21 : vector<16x32xf32>
    %23 = vector.broadcast %1 : vector<1x32xf32> to vector<16x32xf32>
    %24 = arith.mulf %22, %23 : vector<16x32xf32>
    %25 = vector.broadcast %2 : vector<1x32xf32> to vector<16x32xf32>
    %26 = arith.addf %24, %25 : vector<16x32xf32>
    %c0_8 = arith.constant 0 : index
    %c0_9 = arith.constant 0 : index
    %27 = vector.load %arg2[%c0_8, %c0_9] : memref<2x8xf32, #tpu.memory_space<vmem>>, vector<2x8xf32>
    %cst_10 = arith.constant 1.000000e+00 : f32
    %28 = vector.broadcast %cst_10 : f32 to vector<2x8xf32>
    %29 = arith.subf %28, %27 : vector<2x8xf32>
    %cst_11 = arith.constant -1.000000e+04 : f32
    %30 = vector.broadcast %cst_11 : f32 to vector<2x8xf32>
    %31 = arith.mulf %29, %30 : vector<2x8xf32>
    %c0_12 = arith.constant 0 : index
    %c0_13 = arith.constant 0 : index
    %c0_14 = arith.constant 0 : index
    %32 = vector.load %arg4[%c0_12, %c0_13, %c0_14] : memref<2x32x96xbf16, #tpu.memory_space<vmem>>, vector<1x32x96xbf16>
    %33 = vector.shape_cast %32 : vector<1x32x96xbf16> to vector<32x96xbf16>
    %c0_15 = arith.constant 0 : index
    %c0_16 = arith.constant 0 : index
    %c0_17 = arith.constant 0 : index
    %34 = vector.load %arg5[%c0_15, %c0_16, %c0_17] : memref<2x32x32xbf16, #tpu.memory_space<vmem>>, vector<1x32x32xbf16>
    %35 = vector.shape_cast %34 : vector<1x32x32xbf16> to vector<32x32xbf16>
    %c0_18 = arith.constant 0 : index
    %c0_19 = arith.constant 0 : index
    %c0_20 = arith.constant 0 : index
    %36 = vector.load %arg6[%c0_18, %c0_19, %c0_20] : memref<2x32x64xbf16, #tpu.memory_space<vmem>>, vector<1x32x64xbf16>
    %37 = vector.shape_cast %36 : vector<1x32x64xbf16> to vector<32x64xbf16>
    %c0_21 = arith.constant 0 : index
    %c0_22 = arith.constant 0 : index
    %c0_23 = arith.constant 0 : index
    %38 = vector.load %arg7[%c0_21, %c0_22, %c0_23] : memref<2x64x32xbf16, #tpu.memory_space<vmem>>, vector<1x64x32xbf16>
    %39 = vector.shape_cast %38 : vector<1x64x32xbf16> to vector<64x32xbf16>
    %40 = arith.truncf %26 : vector<16x32xf32> to vector<16x32xbf16>
    %cst_24 = arith.constant dense<0.000000e+00> : vector<16x96xf32>
    %41 = tpu.matmul %40, %33, %cst_24 {dimension_numbers = #tpu.dot_dimension_numbers<[1], [0], [0], [1], [0, 0, 1, 1], [], []>} : vector<16x32xbf16>, vector<32x96xbf16>, vector<16x96xf32> -> vector<16x96xf32>
    %c2 = arith.constant 2 : index
    %c0_25 = arith.constant 0 : index
    %42 = vector.load %arg10[%c2, %c0_25] : memref<20x128xf32, #tpu.memory_space<vmem>>, vector<1x96xf32>
    %43 = vector.broadcast %42 : vector<1x96xf32> to vector<16x96xf32>
    %44 = arith.addf %41, %43 : vector<16x96xf32>
    %45 = arith.truncf %44 : vector<16x96xf32> to vector<16x96xbf16>
    %46 = vector.extract_strided_slice %45 {offsets = [0, 0], sizes = [8, 96], strides = [1, 1]} : vector<16x96xbf16> to vector<8x96xbf16>
    %47 = vector.extract_strided_slice %31 {offsets = [0, 0], sizes = [1, 8], strides = [1, 1]} : vector<2x8xf32> to vector<1x8xf32>
    %48 = vector.extract_strided_slice %46 {offsets = [0, 0], sizes = [8, 8], strides = [1, 1]} : vector<8x96xbf16> to vector<8x8xbf16>
    %49 = vector.extract_strided_slice %46 {offsets = [0, 32], sizes = [8, 8], strides = [1, 1]} : vector<8x96xbf16> to vector<8x8xbf16>
    %50 = vector.extract_strided_slice %46 {offsets = [0, 64], sizes = [8, 8], strides = [1, 1]} : vector<8x96xbf16> to vector<8x8xbf16>
    %cst_26 = arith.constant dense<0.000000e+00> : vector<8x8xf32>
    %51 = tpu.matmul %48, %49, %cst_26 {dimension_numbers = #tpu.dot_dimension_numbers<[1], [1], [0], [0], [0, 0, 1, 0], [], []>} : vector<8x8xbf16>, vector<8x8xbf16>, vector<8x8xf32> -> vector<8x8xf32>
    %cst_27 = arith.constant 0.353553385 : f32
    %52 = vector.broadcast %cst_27 : f32 to vector<8x8xf32>
    %53 = arith.mulf %51, %52 : vector<8x8xf32>
    %54 = vector.broadcast %47 : vector<1x8xf32> to vector<8x8xf32>
    %55 = arith.addf %53, %54 : vector<8x8xf32>
    %cst_28 = arith.constant dense<0xFF800000> : vector<8xf32>
    %56 = vector.multi_reduction <maximumf>, %55, %cst_28 [1] : vector<8x8xf32> to vector<8xf32>
    %57 = vector.shape_cast %56 : vector<8xf32> to vector<8x1xf32>
    %58 = vector.broadcast %57 : vector<8x1xf32> to vector<8x8xf32>
    %59 = arith.subf %55, %58 : vector<8x8xf32>
    %60 = math.exp %59 : vector<8x8xf32>
    %cst_29 = arith.constant dense<0.000000e+00> : vector<8xf32>
    %61 = vector.multi_reduction <add>, %60, %cst_29 [1] : vector<8x8xf32> to vector<8xf32>
    %62 = vector.shape_cast %61 : vector<8xf32> to vector<8x1xf32>
    %63 = tpu.reciprocal %62 {approx = true} : vector<8x1xf32> -> vector<8x1xf32>
    %64 = vector.broadcast %63 : vector<8x1xf32> to vector<8x8xf32>
    %65 = arith.mulf %60, %64 : vector<8x8xf32>
    %66 = arith.truncf %65 : vector<8x8xf32> to vector<8x8xbf16>
    %cst_30 = arith.constant dense<0.000000e+00> : vector<8x8xf32>
    %67 = tpu.matmul %66, %50, %cst_30 {dimension_numbers = #tpu.dot_dimension_numbers<[1], [0], [0], [1], [0, 0, 1, 1], [], []>} : vector<8x8xbf16>, vector<8x8xbf16>, vector<8x8xf32> -> vector<8x8xf32>
    %c0_31 = arith.constant 0 : index
    %c0_32 = arith.constant 0 : index
    %68 = vector.load %arg13[%c0_31, %c0_32] : memref<16x32xf32, #tpu.memory_space<vmem>>, vector<8x8xf32>
    tpu.vector_store %arg13[%c0_31, %c0_32], %67 {strides = array<i32>} : memref<16x32xf32, #tpu.memory_space<vmem>>, vector<8x8xf32>,
    %69 = vector.extract_strided_slice %46 {offsets = [0, 8], sizes = [8, 8], strides = [1, 1]} : vector<8x96xbf16> to vector<8x8xbf16>
    %70 = vector.extract_strided_slice %46 {offsets = [0, 40], sizes = [8, 8], strides = [1, 1]} : vector<8x96xbf16> to vector<8x8xbf16>
    %71 = vector.extract_strided_slice %46 {offsets = [0, 72], sizes = [8, 8], strides = [1, 1]} : vector<8x96xbf16> to vector<8x8xbf16>
    %cst_33 = arith.constant dense<0.000000e+00> : vector<8x8xf32>
    %72 = tpu.matmul %69, %70, %cst_33 {dimension_numbers = #tpu.dot_dimension_numbers<[1], [1], [0], [0], [0, 0, 1, 0], [], []>} : vector<8x8xbf16>, vector<8x8xbf16>, vector<8x8xf32> -> vector<8x8xf32>
    %cst_34 = arith.constant 0.353553385 : f32
    %73 = vector.broadcast %cst_34 : f32 to vector<8x8xf32>
    %74 = arith.mulf %72, %73 : vector<8x8xf32>
    %75 = vector.broadcast %47 : vector<1x8xf32> to vector<8x8xf32>
    %76 = arith.addf %74, %75 : vector<8x8xf32>
    %cst_35 = arith.constant dense<0xFF800000> : vector<8xf32>
    %77 = vector.multi_reduction <maximumf>, %76, %cst_35 [1] : vector<8x8xf32> to vector<8xf32>
    %78 = vector.shape_cast %77 : vector<8xf32> to vector<8x1xf32>
    %79 = vector.broadcast %78 : vector<8x1xf32> to vector<8x8xf32>
    %80 = arith.subf %76, %79 : vector<8x8xf32>
    %81 = math.exp %80 : vector<8x8xf32>
    %cst_36 = arith.constant dense<0.000000e+00> : vector<8xf32>
    %82 = vector.multi_reduction <add>, %81, %cst_36 [1] : vector<8x8xf32> to vector<8xf32>
    %83 = vector.shape_cast %82 : vector<8xf32> to vector<8x1xf32>
    %84 = tpu.reciprocal %83 {approx = true} : vector<8x1xf32> -> vector<8x1xf32>
    %85 = vector.broadcast %84 : vector<8x1xf32> to vector<8x8xf32>
    %86 = arith.mulf %81, %85 : vector<8x8xf32>
    %87 = arith.truncf %86 : vector<8x8xf32> to vector<8x8xbf16>
    %cst_37 = arith.constant dense<0.000000e+00> : vector<8x8xf32>
    %88 = tpu.matmul %87, %71, %cst_37 {dimension_numbers = #tpu.dot_dimension_numbers<[1], [0], [0], [1], [0, 0, 1, 1], [], []>} : vector<8x8xbf16>, vector<8x8xbf16>, vector<8x8xf32> -> vector<8x8xf32>
    %c0_38 = arith.constant 0 : index
    %c8 = arith.constant 8 : index
    %89 = vector.load %arg13[%c0_38, %c8] : memref<16x32xf32, #tpu.memory_space<vmem>>, vector<8x8xf32>
    tpu.vector_store %arg13[%c0_38, %c8], %88 {strides = array<i32>} : memref<16x32xf32, #tpu.memory_space<vmem>>, vector<8x8xf32>,
    %90 = vector.extract_strided_slice %46 {offsets = [0, 16], sizes = [8, 8], strides = [1, 1]} : vector<8x96xbf16> to vector<8x8xbf16>
    %91 = vector.extract_strided_slice %46 {offsets = [0, 48], sizes = [8, 8], strides = [1, 1]} : vector<8x96xbf16> to vector<8x8xbf16>
    %92 = vector.extract_strided_slice %46 {offsets = [0, 80], sizes = [8, 8], strides = [1, 1]} : vector<8x96xbf16> to vector<8x8xbf16>
    %cst_39 = arith.constant dense<0.000000e+00> : vector<8x8xf32>
    %93 = tpu.matmul %90, %91, %cst_39 {dimension_numbers = #tpu.dot_dimension_numbers<[1], [1], [0], [0], [0, 0, 1, 0], [], []>} : vector<8x8xbf16>, vector<8x8xbf16>, vector<8x8xf32> -> vector<8x8xf32>
    %cst_40 = arith.constant 0.353553385 : f32
    %94 = vector.broadcast %cst_40 : f32 to vector<8x8xf32>
    %95 = arith.mulf %93, %94 : vector<8x8xf32>
    %96 = vector.broadcast %47 : vector<1x8xf32> to vector<8x8xf32>
    %97 = arith.addf %95, %96 : vector<8x8xf32>
    %cst_41 = arith.constant dense<0xFF800000> : vector<8xf32>
    %98 = vector.multi_reduction <maximumf>, %97, %cst_41 [1] : vector<8x8xf32> to vector<8xf32>
    %99 = vector.shape_cast %98 : vector<8xf32> to vector<8x1xf32>
    %100 = vector.broadcast %99 : vector<8x1xf32> to vector<8x8xf32>
    %101 = arith.subf %97, %100 : vector<8x8xf32>
    %102 = math.exp %101 : vector<8x8xf32>
    %cst_42 = arith.constant dense<0.000000e+00> : vector<8xf32>
    %103 = vector.multi_reduction <add>, %102, %cst_42 [1] : vector<8x8xf32> to vector<8xf32>
    %104 = vector.shape_cast %103 : vector<8xf32> to vector<8x1xf32>
    %105 = tpu.reciprocal %104 {approx = true} : vector<8x1xf32> -> vector<8x1xf32>
    %106 = vector.broadcast %105 : vector<8x1xf32> to vector<8x8xf32>
    %107 = arith.mulf %102, %106 : vector<8x8xf32>
    %108 = arith.truncf %107 : vector<8x8xf32> to vector<8x8xbf16>
    %cst_43 = arith.constant dense<0.000000e+00> : vector<8x8xf32>
    %109 = tpu.matmul %108, %92, %cst_43 {dimension_numbers = #tpu.dot_dimension_numbers<[1], [0], [0], [1], [0, 0, 1, 1], [], []>} : vector<8x8xbf16>, vector<8x8xbf16>, vector<8x8xf32> -> vector<8x8xf32>
    %c0_44 = arith.constant 0 : index
    %c16 = arith.constant 16 : index
    %110 = vector.load %arg13[%c0_44, %c16] : memref<16x32xf32, #tpu.memory_space<vmem>>, vector<8x8xf32>
    tpu.vector_store %arg13[%c0_44, %c16], %109 {strides = array<i32>} : memref<16x32xf32, #tpu.memory_space<vmem>>, vector<8x8xf32>,
    %111 = vector.extract_strided_slice %46 {offsets = [0, 24], sizes = [8, 8], strides = [1, 1]} : vector<8x96xbf16> to vector<8x8xbf16>
    %112 = vector.extract_strided_slice %46 {offsets = [0, 56], sizes = [8, 8], strides = [1, 1]} : vector<8x96xbf16> to vector<8x8xbf16>
    %113 = vector.extract_strided_slice %46 {offsets = [0, 88], sizes = [8, 8], strides = [1, 1]} : vector<8x96xbf16> to vector<8x8xbf16>
    %cst_45 = arith.constant dense<0.000000e+00> : vector<8x8xf32>
    %114 = tpu.matmul %111, %112, %cst_45 {dimension_numbers = #tpu.dot_dimension_numbers<[1], [1], [0], [0], [0, 0, 1, 0], [], []>} : vector<8x8xbf16>, vector<8x8xbf16>, vector<8x8xf32> -> vector<8x8xf32>
    %cst_46 = arith.constant 0.353553385 : f32
    %115 = vector.broadcast %cst_46 : f32 to vector<8x8xf32>
    %116 = arith.mulf %114, %115 : vector<8x8xf32>
    %117 = vector.broadcast %47 : vector<1x8xf32> to vector<8x8xf32>
    %118 = arith.addf %116, %117 : vector<8x8xf32>
    %cst_47 = arith.constant dense<0xFF800000> : vector<8xf32>
    %119 = vector.multi_reduction <maximumf>, %118, %cst_47 [1] : vector<8x8xf32> to vector<8xf32>
    %120 = vector.shape_cast %119 : vector<8xf32> to vector<8x1xf32>
    %121 = vector.broadcast %120 : vector<8x1xf32> to vector<8x8xf32>
    %122 = arith.subf %118, %121 : vector<8x8xf32>
    %123 = math.exp %122 : vector<8x8xf32>
    %cst_48 = arith.constant dense<0.000000e+00> : vector<8xf32>
    %124 = vector.multi_reduction <add>, %123, %cst_48 [1] : vector<8x8xf32> to vector<8xf32>
    %125 = vector.shape_cast %124 : vector<8xf32> to vector<8x1xf32>
    %126 = tpu.reciprocal %125 {approx = true} : vector<8x1xf32> -> vector<8x1xf32>
    %127 = vector.broadcast %126 : vector<8x1xf32> to vector<8x8xf32>
    %128 = arith.mulf %123, %127 : vector<8x8xf32>
    %129 = arith.truncf %128 : vector<8x8xf32> to vector<8x8xbf16>
    %cst_49 = arith.constant dense<0.000000e+00> : vector<8x8xf32>
    %130 = tpu.matmul %129, %113, %cst_49 {dimension_numbers = #tpu.dot_dimension_numbers<[1], [0], [0], [1], [0, 0, 1, 1], [], []>} : vector<8x8xbf16>, vector<8x8xbf16>, vector<8x8xf32> -> vector<8x8xf32>
    %c0_50 = arith.constant 0 : index
    %c24 = arith.constant 24 : index
    %131 = vector.load %arg13[%c0_50, %c24] : memref<16x32xf32, #tpu.memory_space<vmem>>, vector<8x8xf32>
    tpu.vector_store %arg13[%c0_50, %c24], %130 {strides = array<i32>} : memref<16x32xf32, #tpu.memory_space<vmem>>, vector<8x8xf32>,
    %132 = vector.extract_strided_slice %45 {offsets = [8, 0], sizes = [8, 96], strides = [1, 1]} : vector<16x96xbf16> to vector<8x96xbf16>
    %133 = vector.extract_strided_slice %31 {offsets = [1, 0], sizes = [1, 8], strides = [1, 1]} : vector<2x8xf32> to vector<1x8xf32>
    %134 = vector.extract_strided_slice %132 {offsets = [0, 0], sizes = [8, 8], strides = [1, 1]} : vector<8x96xbf16> to vector<8x8xbf16>
    %135 = vector.extract_strided_slice %132 {offsets = [0, 32], sizes = [8, 8], strides = [1, 1]} : vector<8x96xbf16> to vector<8x8xbf16>
    %136 = vector.extract_strided_slice %132 {offsets = [0, 64], sizes = [8, 8], strides = [1, 1]} : vector<8x96xbf16> to vector<8x8xbf16>
    %cst_51 = arith.constant dense<0.000000e+00> : vector<8x8xf32>
    %137 = tpu.matmul %134, %135, %cst_51 {dimension_numbers = #tpu.dot_dimension_numbers<[1], [1], [0], [0], [0, 0, 1, 0], [], []>} : vector<8x8xbf16>, vector<8x8xbf16>, vector<8x8xf32> -> vector<8x8xf32>
    %cst_52 = arith.constant 0.353553385 : f32
    %138 = vector.broadcast %cst_52 : f32 to vector<8x8xf32>
    %139 = arith.mulf %137, %138 : vector<8x8xf32>
    %140 = vector.broadcast %133 : vector<1x8xf32> to vector<8x8xf32>
    %141 = arith.addf %139, %140 : vector<8x8xf32>
    %cst_53 = arith.constant dense<0xFF800000> : vector<8xf32>
    %142 = vector.multi_reduction <maximumf>, %141, %cst_53 [1] : vector<8x8xf32> to vector<8xf32>
    %143 = vector.shape_cast %142 : vector<8xf32> to vector<8x1xf32>
    %144 = vector.broadcast %143 : vector<8x1xf32> to vector<8x8xf32>
    %145 = arith.subf %141, %144 : vector<8x8xf32>
    %146 = math.exp %145 : vector<8x8xf32>
    %cst_54 = arith.constant dense<0.000000e+00> : vector<8xf32>
    %147 = vector.multi_reduction <add>, %146, %cst_54 [1] : vector<8x8xf32> to vector<8xf32>
    %148 = vector.shape_cast %147 : vector<8xf32> to vector<8x1xf32>
    %149 = tpu.reciprocal %148 {approx = true} : vector<8x1xf32> -> vector<8x1xf32>
    %150 = vector.broadcast %149 : vector<8x1xf32> to vector<8x8xf32>
    %151 = arith.mulf %146, %150 : vector<8x8xf32>
    %152 = arith.truncf %151 : vector<8x8xf32> to vector<8x8xbf16>
    %cst_55 = arith.constant dense<0.000000e+00> : vector<8x8xf32>
    %153 = tpu.matmul %152, %136, %cst_55 {dimension_numbers = #tpu.dot_dimension_numbers<[1], [0], [0], [1], [0, 0, 1, 1], [], []>} : vector<8x8xbf16>, vector<8x8xbf16>, vector<8x8xf32> -> vector<8x8xf32>
    %c8_56 = arith.constant 8 : index
    %c0_57 = arith.constant 0 : index
    %154 = vector.load %arg13[%c8_56, %c0_57] : memref<16x32xf32, #tpu.memory_space<vmem>>, vector<8x8xf32>
    tpu.vector_store %arg13[%c8_56, %c0_57], %153 {strides = array<i32>} : memref<16x32xf32, #tpu.memory_space<vmem>>, vector<8x8xf32>,
    %155 = vector.extract_strided_slice %132 {offsets = [0, 8], sizes = [8, 8], strides = [1, 1]} : vector<8x96xbf16> to vector<8x8xbf16>
    %156 = vector.extract_strided_slice %132 {offsets = [0, 40], sizes = [8, 8], strides = [1, 1]} : vector<8x96xbf16> to vector<8x8xbf16>
    %157 = vector.extract_strided_slice %132 {offsets = [0, 72], sizes = [8, 8], strides = [1, 1]} : vector<8x96xbf16> to vector<8x8xbf16>
    %cst_58 = arith.constant dense<0.000000e+00> : vector<8x8xf32>
    %158 = tpu.matmul %155, %156, %cst_58 {dimension_numbers = #tpu.dot_dimension_numbers<[1], [1], [0], [0], [0, 0, 1, 0], [], []>} : vector<8x8xbf16>, vector<8x8xbf16>, vector<8x8xf32> -> vector<8x8xf32>
    %cst_59 = arith.constant 0.353553385 : f32
    %159 = vector.broadcast %cst_59 : f32 to vector<8x8xf32>
    %160 = arith.mulf %158, %159 : vector<8x8xf32>
    %161 = vector.broadcast %133 : vector<1x8xf32> to vector<8x8xf32>
    %162 = arith.addf %160, %161 : vector<8x8xf32>
    %cst_60 = arith.constant dense<0xFF800000> : vector<8xf32>
    %163 = vector.multi_reduction <maximumf>, %162, %cst_60 [1] : vector<8x8xf32> to vector<8xf32>
    %164 = vector.shape_cast %163 : vector<8xf32> to vector<8x1xf32>
    %165 = vector.broadcast %164 : vector<8x1xf32> to vector<8x8xf32>
    %166 = arith.subf %162, %165 : vector<8x8xf32>
    %167 = math.exp %166 : vector<8x8xf32>
    %cst_61 = arith.constant dense<0.000000e+00> : vector<8xf32>
    %168 = vector.multi_reduction <add>, %167, %cst_61 [1] : vector<8x8xf32> to vector<8xf32>
    %169 = vector.shape_cast %168 : vector<8xf32> to vector<8x1xf32>
    %170 = tpu.reciprocal %169 {approx = true} : vector<8x1xf32> -> vector<8x1xf32>
    %171 = vector.broadcast %170 : vector<8x1xf32> to vector<8x8xf32>
    %172 = arith.mulf %167, %171 : vector<8x8xf32>
    %173 = arith.truncf %172 : vector<8x8xf32> to vector<8x8xbf16>
    %cst_62 = arith.constant dense<0.000000e+00> : vector<8x8xf32>
    %174 = tpu.matmul %173, %157, %cst_62 {dimension_numbers = #tpu.dot_dimension_numbers<[1], [0], [0], [1], [0, 0, 1, 1], [], []>} : vector<8x8xbf16>, vector<8x8xbf16>, vector<8x8xf32> -> vector<8x8xf32>
    %c8_63 = arith.constant 8 : index
    %c8_64 = arith.constant 8 : index
    %175 = vector.load %arg13[%c8_63, %c8_64] : memref<16x32xf32, #tpu.memory_space<vmem>>, vector<8x8xf32>
    tpu.vector_store %arg13[%c8_63, %c8_64], %174 {strides = array<i32>} : memref<16x32xf32, #tpu.memory_space<vmem>>, vector<8x8xf32>,
    %176 = vector.extract_strided_slice %132 {offsets = [0, 16], sizes = [8, 8], strides = [1, 1]} : vector<8x96xbf16> to vector<8x8xbf16>
    %177 = vector.extract_strided_slice %132 {offsets = [0, 48], sizes = [8, 8], strides = [1, 1]} : vector<8x96xbf16> to vector<8x8xbf16>
    %178 = vector.extract_strided_slice %132 {offsets = [0, 80], sizes = [8, 8], strides = [1, 1]} : vector<8x96xbf16> to vector<8x8xbf16>
    %cst_65 = arith.constant dense<0.000000e+00> : vector<8x8xf32>
    %179 = tpu.matmul %176, %177, %cst_65 {dimension_numbers = #tpu.dot_dimension_numbers<[1], [1], [0], [0], [0, 0, 1, 0], [], []>} : vector<8x8xbf16>, vector<8x8xbf16>, vector<8x8xf32> -> vector<8x8xf32>
    %cst_66 = arith.constant 0.353553385 : f32
    %180 = vector.broadcast %cst_66 : f32 to vector<8x8xf32>
    %181 = arith.mulf %179, %180 : vector<8x8xf32>
    %182 = vector.broadcast %133 : vector<1x8xf32> to vector<8x8xf32>
    %183 = arith.addf %181, %182 : vector<8x8xf32>
    %cst_67 = arith.constant dense<0xFF800000> : vector<8xf32>
    %184 = vector.multi_reduction <maximumf>, %183, %cst_67 [1] : vector<8x8xf32> to vector<8xf32>
    %185 = vector.shape_cast %184 : vector<8xf32> to vector<8x1xf32>
    %186 = vector.broadcast %185 : vector<8x1xf32> to vector<8x8xf32>
    %187 = arith.subf %183, %186 : vector<8x8xf32>
    %188 = math.exp %187 : vector<8x8xf32>
    %cst_68 = arith.constant dense<0.000000e+00> : vector<8xf32>
    %189 = vector.multi_reduction <add>, %188, %cst_68 [1] : vector<8x8xf32> to vector<8xf32>
    %190 = vector.shape_cast %189 : vector<8xf32> to vector<8x1xf32>
    %191 = tpu.reciprocal %190 {approx = true} : vector<8x1xf32> -> vector<8x1xf32>
    %192 = vector.broadcast %191 : vector<8x1xf32> to vector<8x8xf32>
    %193 = arith.mulf %188, %192 : vector<8x8xf32>
    %194 = arith.truncf %193 : vector<8x8xf32> to vector<8x8xbf16>
    %cst_69 = arith.constant dense<0.000000e+00> : vector<8x8xf32>
    %195 = tpu.matmul %194, %178, %cst_69 {dimension_numbers = #tpu.dot_dimension_numbers<[1], [0], [0], [1], [0, 0, 1, 1], [], []>} : vector<8x8xbf16>, vector<8x8xbf16>, vector<8x8xf32> -> vector<8x8xf32>
    %c8_70 = arith.constant 8 : index
    %c16_71 = arith.constant 16 : index
    %196 = vector.load %arg13[%c8_70, %c16_71] : memref<16x32xf32, #tpu.memory_space<vmem>>, vector<8x8xf32>
    tpu.vector_store %arg13[%c8_70, %c16_71], %195 {strides = array<i32>} : memref<16x32xf32, #tpu.memory_space<vmem>>, vector<8x8xf32>,
    %197 = vector.extract_strided_slice %132 {offsets = [0, 24], sizes = [8, 8], strides = [1, 1]} : vector<8x96xbf16> to vector<8x8xbf16>
    %198 = vector.extract_strided_slice %132 {offsets = [0, 56], sizes = [8, 8], strides = [1, 1]} : vector<8x96xbf16> to vector<8x8xbf16>
    %199 = vector.extract_strided_slice %132 {offsets = [0, 88], sizes = [8, 8], strides = [1, 1]} : vector<8x96xbf16> to vector<8x8xbf16>
    %cst_72 = arith.constant dense<0.000000e+00> : vector<8x8xf32>
    %200 = tpu.matmul %197, %198, %cst_72 {dimension_numbers = #tpu.dot_dimension_numbers<[1], [1], [0], [0], [0, 0, 1, 0], [], []>} : vector<8x8xbf16>, vector<8x8xbf16>, vector<8x8xf32> -> vector<8x8xf32>
    %cst_73 = arith.constant 0.353553385 : f32
    %201 = vector.broadcast %cst_73 : f32 to vector<8x8xf32>
    %202 = arith.mulf %200, %201 : vector<8x8xf32>
    %203 = vector.broadcast %133 : vector<1x8xf32> to vector<8x8xf32>
    %204 = arith.addf %202, %203 : vector<8x8xf32>
    %cst_74 = arith.constant dense<0xFF800000> : vector<8xf32>
    %205 = vector.multi_reduction <maximumf>, %204, %cst_74 [1] : vector<8x8xf32> to vector<8xf32>
    %206 = vector.shape_cast %205 : vector<8xf32> to vector<8x1xf32>
    %207 = vector.broadcast %206 : vector<8x1xf32> to vector<8x8xf32>
    %208 = arith.subf %204, %207 : vector<8x8xf32>
    %209 = math.exp %208 : vector<8x8xf32>
    %cst_75 = arith.constant dense<0.000000e+00> : vector<8xf32>
    %210 = vector.multi_reduction <add>, %209, %cst_75 [1] : vector<8x8xf32> to vector<8xf32>
    %211 = vector.shape_cast %210 : vector<8xf32> to vector<8x1xf32>
    %212 = tpu.reciprocal %211 {approx = true} : vector<8x1xf32> -> vector<8x1xf32>
    %213 = vector.broadcast %212 : vector<8x1xf32> to vector<8x8xf32>
    %214 = arith.mulf %209, %213 : vector<8x8xf32>
    %215 = arith.truncf %214 : vector<8x8xf32> to vector<8x8xbf16>
    %cst_76 = arith.constant dense<0.000000e+00> : vector<8x8xf32>
    %216 = tpu.matmul %215, %199, %cst_76 {dimension_numbers = #tpu.dot_dimension_numbers<[1], [0], [0], [1], [0, 0, 1, 1], [], []>} : vector<8x8xbf16>, vector<8x8xbf16>, vector<8x8xf32> -> vector<8x8xf32>
    %c8_77 = arith.constant 8 : index
    %c24_78 = arith.constant 24 : index
    %217 = vector.load %arg13[%c8_77, %c24_78] : memref<16x32xf32, #tpu.memory_space<vmem>>, vector<8x8xf32>
    tpu.vector_store %arg13[%c8_77, %c24_78], %216 {strides = array<i32>} : memref<16x32xf32, #tpu.memory_space<vmem>>, vector<8x8xf32>,
    %c0_79 = arith.constant 0 : index
    %c0_80 = arith.constant 0 : index
    %218 = vector.load %arg13[%c0_79, %c0_80] : memref<16x32xf32, #tpu.memory_space<vmem>>, vector<16x32xf32>
    %219 = arith.truncf %218 : vector<16x32xf32> to vector<16x32xbf16>
    %cst_81 = arith.constant dense<0.000000e+00> : vector<16x32xf32>
    %220 = tpu.matmul %219, %35, %cst_81 {dimension_numbers = #tpu.dot_dimension_numbers<[1], [0], [0], [1], [0, 0, 1, 1], [], []>} : vector<16x32xbf16>, vector<32x32xbf16>, vector<16x32xf32> -> vector<16x32xf32>
    %c3 = arith.constant 3 : index
    %c0_82 = arith.constant 0 : index
    %221 = vector.load %arg10[%c3, %c0_82] : memref<20x128xf32, #tpu.memory_space<vmem>>, vector<1x32xf32>
    %222 = vector.broadcast %221 : vector<1x32xf32> to vector<16x32xf32>
    %223 = arith.addf %220, %222 : vector<16x32xf32>
    %224 = arith.addf %223, %26 : vector<16x32xf32>
    %c4 = arith.constant 4 : index
    %c0_83 = arith.constant 0 : index
    %225 = vector.load %arg10[%c4, %c0_83] : memref<20x128xf32, #tpu.memory_space<vmem>>, vector<1x32xf32>
    %c5 = arith.constant 5 : index
    %c0_84 = arith.constant 0 : index
    %226 = vector.load %arg10[%c5, %c0_84] : memref<20x128xf32, #tpu.memory_space<vmem>>, vector<1x32xf32>
    %cst_85 = arith.constant dense<0.000000e+00> : vector<16xf32>
    %227 = vector.multi_reduction <add>, %224, %cst_85 [1] : vector<16x32xf32> to vector<16xf32>
    %228 = vector.shape_cast %227 : vector<16xf32> to vector<16x1xf32>
    %cst_86 = arith.constant 3.200000e+01 : f32
    %229 = vector.broadcast %cst_86 : f32 to vector<16x1xf32>
    %230 = arith.divf %228, %229 : vector<16x1xf32>
    %231 = vector.broadcast %230 : vector<16x1xf32> to vector<16x32xf32>
    %232 = arith.subf %224, %231 : vector<16x32xf32>
    %233 = vector.broadcast %230 : vector<16x1xf32> to vector<16x32xf32>
    %234 = arith.subf %224, %233 : vector<16x32xf32>
    %235 = arith.mulf %232, %234 : vector<16x32xf32>
    %cst_87 = arith.constant dense<0.000000e+00> : vector<16xf32>
    %236 = vector.multi_reduction <add>, %235, %cst_87 [1] : vector<16x32xf32> to vector<16xf32>
    %237 = vector.shape_cast %236 : vector<16xf32> to vector<16x1xf32>
    %cst_88 = arith.constant 3.200000e+01 : f32
    %238 = vector.broadcast %cst_88 : f32 to vector<16x1xf32>
    %239 = arith.divf %237, %238 : vector<16x1xf32>
    %240 = vector.broadcast %230 : vector<16x1xf32> to vector<16x32xf32>
    %241 = arith.subf %224, %240 : vector<16x32xf32>
    %cst_89 = arith.constant 9.99999996E-13 : f32
    %242 = vector.broadcast %cst_89 : f32 to vector<16x1xf32>
    %243 = arith.addf %239, %242 : vector<16x1xf32>
    %244 = math.rsqrt %243 : vector<16x1xf32>
    %245 = vector.broadcast %244 : vector<16x1xf32> to vector<16x32xf32>
    %246 = arith.mulf %241, %245 : vector<16x32xf32>
    %247 = vector.broadcast %225 : vector<1x32xf32> to vector<16x32xf32>
    %248 = arith.mulf %246, %247 : vector<16x32xf32>
    %249 = vector.broadcast %226 : vector<1x32xf32> to vector<16x32xf32>
    %250 = arith.addf %248, %249 : vector<16x32xf32>
    %251 = arith.truncf %250 : vector<16x32xf32> to vector<16x32xbf16>
    %cst_90 = arith.constant dense<0.000000e+00> : vector<16x64xf32>
    %252 = tpu.matmul %251, %37, %cst_90 {dimension_numbers = #tpu.dot_dimension_numbers<[1], [0], [0], [1], [0, 0, 1, 1], [], []>} : vector<16x32xbf16>, vector<32x64xbf16>, vector<16x64xf32> -> vector<16x64xf32>
    %c6 = arith.constant 6 : index
    %c0_91 = arith.constant 0 : index
    %253 = vector.load %arg10[%c6, %c0_91] : memref<20x128xf32, #tpu.memory_space<vmem>>, vector<1x64xf32>
    %254 = vector.broadcast %253 : vector<1x64xf32> to vector<16x64xf32>
    %255 = arith.addf %252, %254 : vector<16x64xf32>
    %cst_92 = arith.constant 5.000000e-01 : f32
    %256 = vector.broadcast %cst_92 : f32 to vector<16x64xf32>
    %257 = arith.mulf %256, %255 : vector<16x64xf32>
    %cst_93 = arith.constant 4.471500e-02 : f32
    %258 = vector.broadcast %cst_93 : f32 to vector<16x64xf32>
    %259 = arith.mulf %258, %255 : vector<16x64xf32>
    %260 = arith.mulf %259, %255 : vector<16x64xf32>
    %261 = arith.mulf %260, %255 : vector<16x64xf32>
    %262 = arith.addf %255, %261 : vector<16x64xf32>
    %cst_94 = arith.constant 0.797884583 : f32
    %263 = vector.broadcast %cst_94 : f32 to vector<16x64xf32>
    %264 = arith.mulf %263, %262 : vector<16x64xf32>
    %265 = math.tanh %264 : vector<16x64xf32>
    %cst_95 = arith.constant 1.000000e+00 : f32
    %266 = vector.broadcast %cst_95 : f32 to vector<16x64xf32>
    %267 = arith.addf %266, %265 : vector<16x64xf32>
    %268 = arith.mulf %257, %267 : vector<16x64xf32>
    %269 = arith.truncf %268 : vector<16x64xf32> to vector<16x64xbf16>
    %cst_96 = arith.constant dense<0.000000e+00> : vector<16x32xf32>
    %270 = tpu.matmul %269, %39, %cst_96 {dimension_numbers = #tpu.dot_dimension_numbers<[1], [0], [0], [1], [0, 0, 1, 1], [], []>} : vector<16x64xbf16>, vector<64x32xbf16>, vector<16x32xf32> -> vector<16x32xf32>
    %c7 = arith.constant 7 : index
    %c0_97 = arith.constant 0 : index
    %271 = vector.load %arg10[%c7, %c0_97] : memref<20x128xf32, #tpu.memory_space<vmem>>, vector<1x32xf32>
    %272 = vector.broadcast %271 : vector<1x32xf32> to vector<16x32xf32>
    %273 = arith.addf %270, %272 : vector<16x32xf32>
    %274 = arith.addf %273, %250 : vector<16x32xf32>
    %c8_98 = arith.constant 8 : index
    %c0_99 = arith.constant 0 : index
    %275 = vector.load %arg10[%c8_98, %c0_99] : memref<20x128xf32, #tpu.memory_space<vmem>>, vector<1x32xf32>
    %c9 = arith.constant 9 : index
    %c0_100 = arith.constant 0 : index
    %276 = vector.load %arg10[%c9, %c0_100] : memref<20x128xf32, #tpu.memory_space<vmem>>, vector<1x32xf32>
    %cst_101 = arith.constant dense<0.000000e+00> : vector<16xf32>
    %277 = vector.multi_reduction <add>, %274, %cst_101 [1] : vector<16x32xf32> to vector<16xf32>
    %278 = vector.shape_cast %277 : vector<16xf32> to vector<16x1xf32>
    %cst_102 = arith.constant 3.200000e+01 : f32
    %279 = vector.broadcast %cst_102 : f32 to vector<16x1xf32>
    %280 = arith.divf %278, %279 : vector<16x1xf32>
    %281 = vector.broadcast %280 : vector<16x1xf32> to vector<16x32xf32>
    %282 = arith.subf %274, %281 : vector<16x32xf32>
    %283 = vector.broadcast %280 : vector<16x1xf32> to vector<16x32xf32>
    %284 = arith.subf %274, %283 : vector<16x32xf32>
    %285 = arith.mulf %282, %284 : vector<16x32xf32>
    %cst_103 = arith.constant dense<0.000000e+00> : vector<16xf32>
    %286 = vector.multi_reduction <add>, %285, %cst_103 [1] : vector<16x32xf32> to vector<16xf32>
    %287 = vector.shape_cast %286 : vector<16xf32> to vector<16x1xf32>
    %cst_104 = arith.constant 3.200000e+01 : f32
    %288 = vector.broadcast %cst_104 : f32 to vector<16x1xf32>
    %289 = arith.divf %287, %288 : vector<16x1xf32>
    %290 = vector.broadcast %280 : vector<16x1xf32> to vector<16x32xf32>
    %291 = arith.subf %274, %290 : vector<16x32xf32>
    %cst_105 = arith.constant 9.99999996E-13 : f32
    %292 = vector.broadcast %cst_105 : f32 to vector<16x1xf32>
    %293 = arith.addf %289, %292 : vector<16x1xf32>
    %294 = math.rsqrt %293 : vector<16x1xf32>
    %295 = vector.broadcast %294 : vector<16x1xf32> to vector<16x32xf32>
    %296 = arith.mulf %291, %295 : vector<16x32xf32>
    %297 = vector.broadcast %275 : vector<1x32xf32> to vector<16x32xf32>
    %298 = arith.mulf %296, %297 : vector<16x32xf32>
    %299 = vector.broadcast %276 : vector<1x32xf32> to vector<16x32xf32>
    %300 = arith.addf %298, %299 : vector<16x32xf32>
    %c1_106 = arith.constant 1 : index
    %c0_107 = arith.constant 0 : index
    %c0_108 = arith.constant 0 : index
    %301 = vector.load %arg4[%c1_106, %c0_107, %c0_108] : memref<2x32x96xbf16, #tpu.memory_space<vmem>>, vector<1x32x96xbf16>
    %302 = vector.shape_cast %301 : vector<1x32x96xbf16> to vector<32x96xbf16>
    %c1_109 = arith.constant 1 : index
    %c0_110 = arith.constant 0 : index
    %c0_111 = arith.constant 0 : index
    %303 = vector.load %arg5[%c1_109, %c0_110, %c0_111] : memref<2x32x32xbf16, #tpu.memory_space<vmem>>, vector<1x32x32xbf16>
    %304 = vector.shape_cast %303 : vector<1x32x32xbf16> to vector<32x32xbf16>
    %c1_112 = arith.constant 1 : index
    %c0_113 = arith.constant 0 : index
    %c0_114 = arith.constant 0 : index
    %305 = vector.load %arg6[%c1_112, %c0_113, %c0_114] : memref<2x32x64xbf16, #tpu.memory_space<vmem>>, vector<1x32x64xbf16>
    %306 = vector.shape_cast %305 : vector<1x32x64xbf16> to vector<32x64xbf16>
    %c1_115 = arith.constant 1 : index
    %c0_116 = arith.constant 0 : index
    %c0_117 = arith.constant 0 : index
    %307 = vector.load %arg7[%c1_115, %c0_116, %c0_117] : memref<2x64x32xbf16, #tpu.memory_space<vmem>>, vector<1x64x32xbf16>
    %308 = vector.shape_cast %307 : vector<1x64x32xbf16> to vector<64x32xbf16>
    %309 = arith.truncf %300 : vector<16x32xf32> to vector<16x32xbf16>
    %cst_118 = arith.constant dense<0.000000e+00> : vector<16x96xf32>
    %310 = tpu.matmul %309, %302, %cst_118 {dimension_numbers = #tpu.dot_dimension_numbers<[1], [0], [0], [1], [0, 0, 1, 1], [], []>} : vector<16x32xbf16>, vector<32x96xbf16>, vector<16x96xf32> -> vector<16x96xf32>
    %c10 = arith.constant 10 : index
    %c0_119 = arith.constant 0 : index
    %311 = vector.load %arg10[%c10, %c0_119] : memref<20x128xf32, #tpu.memory_space<vmem>>, vector<1x96xf32>
    %312 = vector.broadcast %311 : vector<1x96xf32> to vector<16x96xf32>
    %313 = arith.addf %310, %312 : vector<16x96xf32>
    %314 = arith.truncf %313 : vector<16x96xf32> to vector<16x96xbf16>
    %315 = vector.extract_strided_slice %314 {offsets = [0, 0], sizes = [8, 96], strides = [1, 1]} : vector<16x96xbf16> to vector<8x96xbf16>
    %316 = vector.extract_strided_slice %31 {offsets = [0, 0], sizes = [1, 8], strides = [1, 1]} : vector<2x8xf32> to vector<1x8xf32>
    %317 = vector.extract_strided_slice %315 {offsets = [0, 0], sizes = [8, 8], strides = [1, 1]} : vector<8x96xbf16> to vector<8x8xbf16>
    %318 = vector.extract_strided_slice %315 {offsets = [0, 32], sizes = [8, 8], strides = [1, 1]} : vector<8x96xbf16> to vector<8x8xbf16>
    %319 = vector.extract_strided_slice %315 {offsets = [0, 64], sizes = [8, 8], strides = [1, 1]} : vector<8x96xbf16> to vector<8x8xbf16>
    %cst_120 = arith.constant dense<0.000000e+00> : vector<8x8xf32>
    %320 = tpu.matmul %317, %318, %cst_120 {dimension_numbers = #tpu.dot_dimension_numbers<[1], [1], [0], [0], [0, 0, 1, 0], [], []>} : vector<8x8xbf16>, vector<8x8xbf16>, vector<8x8xf32> -> vector<8x8xf32>
    %cst_121 = arith.constant 0.353553385 : f32
    %321 = vector.broadcast %cst_121 : f32 to vector<8x8xf32>
    %322 = arith.mulf %320, %321 : vector<8x8xf32>
    %323 = vector.broadcast %316 : vector<1x8xf32> to vector<8x8xf32>
    %324 = arith.addf %322, %323 : vector<8x8xf32>
    %cst_122 = arith.constant dense<0xFF800000> : vector<8xf32>
    %325 = vector.multi_reduction <maximumf>, %324, %cst_122 [1] : vector<8x8xf32> to vector<8xf32>
    %326 = vector.shape_cast %325 : vector<8xf32> to vector<8x1xf32>
    %327 = vector.broadcast %326 : vector<8x1xf32> to vector<8x8xf32>
    %328 = arith.subf %324, %327 : vector<8x8xf32>
    %329 = math.exp %328 : vector<8x8xf32>
    %cst_123 = arith.constant dense<0.000000e+00> : vector<8xf32>
    %330 = vector.multi_reduction <add>, %329, %cst_123 [1] : vector<8x8xf32> to vector<8xf32>
    %331 = vector.shape_cast %330 : vector<8xf32> to vector<8x1xf32>
    %332 = tpu.reciprocal %331 {approx = true} : vector<8x1xf32> -> vector<8x1xf32>
    %333 = vector.broadcast %332 : vector<8x1xf32> to vector<8x8xf32>
    %334 = arith.mulf %329, %333 : vector<8x8xf32>
    %335 = arith.truncf %334 : vector<8x8xf32> to vector<8x8xbf16>
    %cst_124 = arith.constant dense<0.000000e+00> : vector<8x8xf32>
    %336 = tpu.matmul %335, %319, %cst_124 {dimension_numbers = #tpu.dot_dimension_numbers<[1], [0], [0], [1], [0, 0, 1, 1], [], []>} : vector<8x8xbf16>, vector<8x8xbf16>, vector<8x8xf32> -> vector<8x8xf32>
    %c0_125 = arith.constant 0 : index
    %c0_126 = arith.constant 0 : index
    %337 = vector.load %arg13[%c0_125, %c0_126] : memref<16x32xf32, #tpu.memory_space<vmem>>, vector<8x8xf32>
    tpu.vector_store %arg13[%c0_125, %c0_126], %336 {strides = array<i32>} : memref<16x32xf32, #tpu.memory_space<vmem>>, vector<8x8xf32>,
    %338 = vector.extract_strided_slice %315 {offsets = [0, 8], sizes = [8, 8], strides = [1, 1]} : vector<8x96xbf16> to vector<8x8xbf16>
    %339 = vector.extract_strided_slice %315 {offsets = [0, 40], sizes = [8, 8], strides = [1, 1]} : vector<8x96xbf16> to vector<8x8xbf16>
    %340 = vector.extract_strided_slice %315 {offsets = [0, 72], sizes = [8, 8], strides = [1, 1]} : vector<8x96xbf16> to vector<8x8xbf16>
    %cst_127 = arith.constant dense<0.000000e+00> : vector<8x8xf32>
    %341 = tpu.matmul %338, %339, %cst_127 {dimension_numbers = #tpu.dot_dimension_numbers<[1], [1], [0], [0], [0, 0, 1, 0], [], []>} : vector<8x8xbf16>, vector<8x8xbf16>, vector<8x8xf32> -> vector<8x8xf32>
    %cst_128 = arith.constant 0.353553385 : f32
    %342 = vector.broadcast %cst_128 : f32 to vector<8x8xf32>
    %343 = arith.mulf %341, %342 : vector<8x8xf32>
    %344 = vector.broadcast %316 : vector<1x8xf32> to vector<8x8xf32>
    %345 = arith.addf %343, %344 : vector<8x8xf32>
    %cst_129 = arith.constant dense<0xFF800000> : vector<8xf32>
    %346 = vector.multi_reduction <maximumf>, %345, %cst_129 [1] : vector<8x8xf32> to vector<8xf32>
    %347 = vector.shape_cast %346 : vector<8xf32> to vector<8x1xf32>
    %348 = vector.broadcast %347 : vector<8x1xf32> to vector<8x8xf32>
    %349 = arith.subf %345, %348 : vector<8x8xf32>
    %350 = math.exp %349 : vector<8x8xf32>
    %cst_130 = arith.constant dense<0.000000e+00> : vector<8xf32>
    %351 = vector.multi_reduction <add>, %350, %cst_130 [1] : vector<8x8xf32> to vector<8xf32>
    %352 = vector.shape_cast %351 : vector<8xf32> to vector<8x1xf32>
    %353 = tpu.reciprocal %352 {approx = true} : vector<8x1xf32> -> vector<8x1xf32>
    %354 = vector.broadcast %353 : vector<8x1xf32> to vector<8x8xf32>
    %355 = arith.mulf %350, %354 : vector<8x8xf32>
    %356 = arith.truncf %355 : vector<8x8xf32> to vector<8x8xbf16>
    %cst_131 = arith.constant dense<0.000000e+00> : vector<8x8xf32>
    %357 = tpu.matmul %356, %340, %cst_131 {dimension_numbers = #tpu.dot_dimension_numbers<[1], [0], [0], [1], [0, 0, 1, 1], [], []>} : vector<8x8xbf16>, vector<8x8xbf16>, vector<8x8xf32> -> vector<8x8xf32>
    %c0_132 = arith.constant 0 : index
    %c8_133 = arith.constant 8 : index
    %358 = vector.load %arg13[%c0_132, %c8_133] : memref<16x32xf32, #tpu.memory_space<vmem>>, vector<8x8xf32>
    tpu.vector_store %arg13[%c0_132, %c8_133], %357 {strides = array<i32>} : memref<16x32xf32, #tpu.memory_space<vmem>>, vector<8x8xf32>,
    %359 = vector.extract_strided_slice %315 {offsets = [0, 16], sizes = [8, 8], strides = [1, 1]} : vector<8x96xbf16> to vector<8x8xbf16>
    %360 = vector.extract_strided_slice %315 {offsets = [0, 48], sizes = [8, 8], strides = [1, 1]} : vector<8x96xbf16> to vector<8x8xbf16>
    %361 = vector.extract_strided_slice %315 {offsets = [0, 80], sizes = [8, 8], strides = [1, 1]} : vector<8x96xbf16> to vector<8x8xbf16>
    %cst_134 = arith.constant dense<0.000000e+00> : vector<8x8xf32>
    %362 = tpu.matmul %359, %360, %cst_134 {dimension_numbers = #tpu.dot_dimension_numbers<[1], [1], [0], [0], [0, 0, 1, 0], [], []>} : vector<8x8xbf16>, vector<8x8xbf16>, vector<8x8xf32> -> vector<8x8xf32>
    %cst_135 = arith.constant 0.353553385 : f32
    %363 = vector.broadcast %cst_135 : f32 to vector<8x8xf32>
    %364 = arith.mulf %362, %363 : vector<8x8xf32>
    %365 = vector.broadcast %316 : vector<1x8xf32> to vector<8x8xf32>
    %366 = arith.addf %364, %365 : vector<8x8xf32>
    %cst_136 = arith.constant dense<0xFF800000> : vector<8xf32>
    %367 = vector.multi_reduction <maximumf>, %366, %cst_136 [1] : vector<8x8xf32> to vector<8xf32>
    %368 = vector.shape_cast %367 : vector<8xf32> to vector<8x1xf32>
    %369 = vector.broadcast %368 : vector<8x1xf32> to vector<8x8xf32>
    %370 = arith.subf %366, %369 : vector<8x8xf32>
    %371 = math.exp %370 : vector<8x8xf32>
    %cst_137 = arith.constant dense<0.000000e+00> : vector<8xf32>
    %372 = vector.multi_reduction <add>, %371, %cst_137 [1] : vector<8x8xf32> to vector<8xf32>
    %373 = vector.shape_cast %372 : vector<8xf32> to vector<8x1xf32>
    %374 = tpu.reciprocal %373 {approx = true} : vector<8x1xf32> -> vector<8x1xf32>
    %375 = vector.broadcast %374 : vector<8x1xf32> to vector<8x8xf32>
    %376 = arith.mulf %371, %375 : vector<8x8xf32>
    %377 = arith.truncf %376 : vector<8x8xf32> to vector<8x8xbf16>
    %cst_138 = arith.constant dense<0.000000e+00> : vector<8x8xf32>
    %378 = tpu.matmul %377, %361, %cst_138 {dimension_numbers = #tpu.dot_dimension_numbers<[1], [0], [0], [1], [0, 0, 1, 1], [], []>} : vector<8x8xbf16>, vector<8x8xbf16>, vector<8x8xf32> -> vector<8x8xf32>
    %c0_139 = arith.constant 0 : index
    %c16_140 = arith.constant 16 : index
    %379 = vector.load %arg13[%c0_139, %c16_140] : memref<16x32xf32, #tpu.memory_space<vmem>>, vector<8x8xf32>
    tpu.vector_store %arg13[%c0_139, %c16_140], %378 {strides = array<i32>} : memref<16x32xf32, #tpu.memory_space<vmem>>, vector<8x8xf32>,
    %380 = vector.extract_strided_slice %315 {offsets = [0, 24], sizes = [8, 8], strides = [1, 1]} : vector<8x96xbf16> to vector<8x8xbf16>
    %381 = vector.extract_strided_slice %315 {offsets = [0, 56], sizes = [8, 8], strides = [1, 1]} : vector<8x96xbf16> to vector<8x8xbf16>
    %382 = vector.extract_strided_slice %315 {offsets = [0, 88], sizes = [8, 8], strides = [1, 1]} : vector<8x96xbf16> to vector<8x8xbf16>
    %cst_141 = arith.constant dense<0.000000e+00> : vector<8x8xf32>
    %383 = tpu.matmul %380, %381, %cst_141 {dimension_numbers = #tpu.dot_dimension_numbers<[1], [1], [0], [0], [0, 0, 1, 0], [], []>} : vector<8x8xbf16>, vector<8x8xbf16>, vector<8x8xf32> -> vector<8x8xf32>
    %cst_142 = arith.constant 0.353553385 : f32
    %384 = vector.broadcast %cst_142 : f32 to vector<8x8xf32>
    %385 = arith.mulf %383, %384 : vector<8x8xf32>
    %386 = vector.broadcast %316 : vector<1x8xf32> to vector<8x8xf32>
    %387 = arith.addf %385, %386 : vector<8x8xf32>
    %cst_143 = arith.constant dense<0xFF800000> : vector<8xf32>
    %388 = vector.multi_reduction <maximumf>, %387, %cst_143 [1] : vector<8x8xf32> to vector<8xf32>
    %389 = vector.shape_cast %388 : vector<8xf32> to vector<8x1xf32>
    %390 = vector.broadcast %389 : vector<8x1xf32> to vector<8x8xf32>
    %391 = arith.subf %387, %390 : vector<8x8xf32>
    %392 = math.exp %391 : vector<8x8xf32>
    %cst_144 = arith.constant dense<0.000000e+00> : vector<8xf32>
    %393 = vector.multi_reduction <add>, %392, %cst_144 [1] : vector<8x8xf32> to vector<8xf32>
    %394 = vector.shape_cast %393 : vector<8xf32> to vector<8x1xf32>
    %395 = tpu.reciprocal %394 {approx = true} : vector<8x1xf32> -> vector<8x1xf32>
    %396 = vector.broadcast %395 : vector<8x1xf32> to vector<8x8xf32>
    %397 = arith.mulf %392, %396 : vector<8x8xf32>
    %398 = arith.truncf %397 : vector<8x8xf32> to vector<8x8xbf16>
    %cst_145 = arith.constant dense<0.000000e+00> : vector<8x8xf32>
    %399 = tpu.matmul %398, %382, %cst_145 {dimension_numbers = #tpu.dot_dimension_numbers<[1], [0], [0], [1], [0, 0, 1, 1], [], []>} : vector<8x8xbf16>, vector<8x8xbf16>, vector<8x8xf32> -> vector<8x8xf32>
    %c0_146 = arith.constant 0 : index
    %c24_147 = arith.constant 24 : index
    %400 = vector.load %arg13[%c0_146, %c24_147] : memref<16x32xf32, #tpu.memory_space<vmem>>, vector<8x8xf32>
    tpu.vector_store %arg13[%c0_146, %c24_147], %399 {strides = array<i32>} : memref<16x32xf32, #tpu.memory_space<vmem>>, vector<8x8xf32>,
    %401 = vector.extract_strided_slice %314 {offsets = [8, 0], sizes = [8, 96], strides = [1, 1]} : vector<16x96xbf16> to vector<8x96xbf16>
    %402 = vector.extract_strided_slice %31 {offsets = [1, 0], sizes = [1, 8], strides = [1, 1]} : vector<2x8xf32> to vector<1x8xf32>
    %403 = vector.extract_strided_slice %401 {offsets = [0, 0], sizes = [8, 8], strides = [1, 1]} : vector<8x96xbf16> to vector<8x8xbf16>
    %404 = vector.extract_strided_slice %401 {offsets = [0, 32], sizes = [8, 8], strides = [1, 1]} : vector<8x96xbf16> to vector<8x8xbf16>
    %405 = vector.extract_strided_slice %401 {offsets = [0, 64], sizes = [8, 8], strides = [1, 1]} : vector<8x96xbf16> to vector<8x8xbf16>
    %cst_148 = arith.constant dense<0.000000e+00> : vector<8x8xf32>
    %406 = tpu.matmul %403, %404, %cst_148 {dimension_numbers = #tpu.dot_dimension_numbers<[1], [1], [0], [0], [0, 0, 1, 0], [], []>} : vector<8x8xbf16>, vector<8x8xbf16>, vector<8x8xf32> -> vector<8x8xf32>
    %cst_149 = arith.constant 0.353553385 : f32
    %407 = vector.broadcast %cst_149 : f32 to vector<8x8xf32>
    %408 = arith.mulf %406, %407 : vector<8x8xf32>
    %409 = vector.broadcast %402 : vector<1x8xf32> to vector<8x8xf32>
    %410 = arith.addf %408, %409 : vector<8x8xf32>
    %cst_150 = arith.constant dense<0xFF800000> : vector<8xf32>
    %411 = vector.multi_reduction <maximumf>, %410, %cst_150 [1] : vector<8x8xf32> to vector<8xf32>
    %412 = vector.shape_cast %411 : vector<8xf32> to vector<8x1xf32>
    %413 = vector.broadcast %412 : vector<8x1xf32> to vector<8x8xf32>
    %414 = arith.subf %410, %413 : vector<8x8xf32>
    %415 = math.exp %414 : vector<8x8xf32>
    %cst_151 = arith.constant dense<0.000000e+00> : vector<8xf32>
    %416 = vector.multi_reduction <add>, %415, %cst_151 [1] : vector<8x8xf32> to vector<8xf32>
    %417 = vector.shape_cast %416 : vector<8xf32> to vector<8x1xf32>
    %418 = tpu.reciprocal %417 {approx = true} : vector<8x1xf32> -> vector<8x1xf32>
    %419 = vector.broadcast %418 : vector<8x1xf32> to vector<8x8xf32>
    %420 = arith.mulf %415, %419 : vector<8x8xf32>
    %421 = arith.truncf %420 : vector<8x8xf32> to vector<8x8xbf16>
    %cst_152 = arith.constant dense<0.000000e+00> : vector<8x8xf32>
    %422 = tpu.matmul %421, %405, %cst_152 {dimension_numbers = #tpu.dot_dimension_numbers<[1], [0], [0], [1], [0, 0, 1, 1], [], []>} : vector<8x8xbf16>, vector<8x8xbf16>, vector<8x8xf32> -> vector<8x8xf32>
    %c8_153 = arith.constant 8 : index
    %c0_154 = arith.constant 0 : index
    %423 = vector.load %arg13[%c8_153, %c0_154] : memref<16x32xf32, #tpu.memory_space<vmem>>, vector<8x8xf32>
    tpu.vector_store %arg13[%c8_153, %c0_154], %422 {strides = array<i32>} : memref<16x32xf32, #tpu.memory_space<vmem>>, vector<8x8xf32>,
    %424 = vector.extract_strided_slice %401 {offsets = [0, 8], sizes = [8, 8], strides = [1, 1]} : vector<8x96xbf16> to vector<8x8xbf16>
    %425 = vector.extract_strided_slice %401 {offsets = [0, 40], sizes = [8, 8], strides = [1, 1]} : vector<8x96xbf16> to vector<8x8xbf16>
    %426 = vector.extract_strided_slice %401 {offsets = [0, 72], sizes = [8, 8], strides = [1, 1]} : vector<8x96xbf16> to vector<8x8xbf16>
    %cst_155 = arith.constant dense<0.000000e+00> : vector<8x8xf32>
    %427 = tpu.matmul %424, %425, %cst_155 {dimension_numbers = #tpu.dot_dimension_numbers<[1], [1], [0], [0], [0, 0, 1, 0], [], []>} : vector<8x8xbf16>, vector<8x8xbf16>, vector<8x8xf32> -> vector<8x8xf32>
    %cst_156 = arith.constant 0.353553385 : f32
    %428 = vector.broadcast %cst_156 : f32 to vector<8x8xf32>
    %429 = arith.mulf %427, %428 : vector<8x8xf32>
    %430 = vector.broadcast %402 : vector<1x8xf32> to vector<8x8xf32>
    %431 = arith.addf %429, %430 : vector<8x8xf32>
    %cst_157 = arith.constant dense<0xFF800000> : vector<8xf32>
    %432 = vector.multi_reduction <maximumf>, %431, %cst_157 [1] : vector<8x8xf32> to vector<8xf32>
    %433 = vector.shape_cast %432 : vector<8xf32> to vector<8x1xf32>
    %434 = vector.broadcast %433 : vector<8x1xf32> to vector<8x8xf32>
    %435 = arith.subf %431, %434 : vector<8x8xf32>
    %436 = math.exp %435 : vector<8x8xf32>
    %cst_158 = arith.constant dense<0.000000e+00> : vector<8xf32>
    %437 = vector.multi_reduction <add>, %436, %cst_158 [1] : vector<8x8xf32> to vector<8xf32>
    %438 = vector.shape_cast %437 : vector<8xf32> to vector<8x1xf32>
    %439 = tpu.reciprocal %438 {approx = true} : vector<8x1xf32> -> vector<8x1xf32>
    %440 = vector.broadcast %439 : vector<8x1xf32> to vector<8x8xf32>
    %441 = arith.mulf %436, %440 : vector<8x8xf32>
    %442 = arith.truncf %441 : vector<8x8xf32> to vector<8x8xbf16>
    %cst_159 = arith.constant dense<0.000000e+00> : vector<8x8xf32>
    %443 = tpu.matmul %442, %426, %cst_159 {dimension_numbers = #tpu.dot_dimension_numbers<[1], [0], [0], [1], [0, 0, 1, 1], [], []>} : vector<8x8xbf16>, vector<8x8xbf16>, vector<8x8xf32> -> vector<8x8xf32>
    %c8_160 = arith.constant 8 : index
    %c8_161 = arith.constant 8 : index
    %444 = vector.load %arg13[%c8_160, %c8_161] : memref<16x32xf32, #tpu.memory_space<vmem>>, vector<8x8xf32>
    tpu.vector_store %arg13[%c8_160, %c8_161], %443 {strides = array<i32>} : memref<16x32xf32, #tpu.memory_space<vmem>>, vector<8x8xf32>,
    %445 = vector.extract_strided_slice %401 {offsets = [0, 16], sizes = [8, 8], strides = [1, 1]} : vector<8x96xbf16> to vector<8x8xbf16>
    %446 = vector.extract_strided_slice %401 {offsets = [0, 48], sizes = [8, 8], strides = [1, 1]} : vector<8x96xbf16> to vector<8x8xbf16>
    %447 = vector.extract_strided_slice %401 {offsets = [0, 80], sizes = [8, 8], strides = [1, 1]} : vector<8x96xbf16> to vector<8x8xbf16>
    %cst_162 = arith.constant dense<0.000000e+00> : vector<8x8xf32>
    %448 = tpu.matmul %445, %446, %cst_162 {dimension_numbers = #tpu.dot_dimension_numbers<[1], [1], [0], [0], [0, 0, 1, 0], [], []>} : vector<8x8xbf16>, vector<8x8xbf16>, vector<8x8xf32> -> vector<8x8xf32>
    %cst_163 = arith.constant 0.353553385 : f32
    %449 = vector.broadcast %cst_163 : f32 to vector<8x8xf32>
    %450 = arith.mulf %448, %449 : vector<8x8xf32>
    %451 = vector.broadcast %402 : vector<1x8xf32> to vector<8x8xf32>
    %452 = arith.addf %450, %451 : vector<8x8xf32>
    %cst_164 = arith.constant dense<0xFF800000> : vector<8xf32>
    %453 = vector.multi_reduction <maximumf>, %452, %cst_164 [1] : vector<8x8xf32> to vector<8xf32>
    %454 = vector.shape_cast %453 : vector<8xf32> to vector<8x1xf32>
    %455 = vector.broadcast %454 : vector<8x1xf32> to vector<8x8xf32>
    %456 = arith.subf %452, %455 : vector<8x8xf32>
    %457 = math.exp %456 : vector<8x8xf32>
    %cst_165 = arith.constant dense<0.000000e+00> : vector<8xf32>
    %458 = vector.multi_reduction <add>, %457, %cst_165 [1] : vector<8x8xf32> to vector<8xf32>
    %459 = vector.shape_cast %458 : vector<8xf32> to vector<8x1xf32>
    %460 = tpu.reciprocal %459 {approx = true} : vector<8x1xf32> -> vector<8x1xf32>
    %461 = vector.broadcast %460 : vector<8x1xf32> to vector<8x8xf32>
    %462 = arith.mulf %457, %461 : vector<8x8xf32>
    %463 = arith.truncf %462 : vector<8x8xf32> to vector<8x8xbf16>
    %cst_166 = arith.constant dense<0.000000e+00> : vector<8x8xf32>
    %464 = tpu.matmul %463, %447, %cst_166 {dimension_numbers = #tpu.dot_dimension_numbers<[1], [0], [0], [1], [0, 0, 1, 1], [], []>} : vector<8x8xbf16>, vector<8x8xbf16>, vector<8x8xf32> -> vector<8x8xf32>
    %c8_167 = arith.constant 8 : index
    %c16_168 = arith.constant 16 : index
    %465 = vector.load %arg13[%c8_167, %c16_168] : memref<16x32xf32, #tpu.memory_space<vmem>>, vector<8x8xf32>
    tpu.vector_store %arg13[%c8_167, %c16_168], %464 {strides = array<i32>} : memref<16x32xf32, #tpu.memory_space<vmem>>, vector<8x8xf32>,
    %466 = vector.extract_strided_slice %401 {offsets = [0, 24], sizes = [8, 8], strides = [1, 1]} : vector<8x96xbf16> to vector<8x8xbf16>
    %467 = vector.extract_strided_slice %401 {offsets = [0, 56], sizes = [8, 8], strides = [1, 1]} : vector<8x96xbf16> to vector<8x8xbf16>
    %468 = vector.extract_strided_slice %401 {offsets = [0, 88], sizes = [8, 8], strides = [1, 1]} : vector<8x96xbf16> to vector<8x8xbf16>
    %cst_169 = arith.constant dense<0.000000e+00> : vector<8x8xf32>
    %469 = tpu.matmul %466, %467, %cst_169 {dimension_numbers = #tpu.dot_dimension_numbers<[1], [1], [0], [0], [0, 0, 1, 0], [], []>} : vector<8x8xbf16>, vector<8x8xbf16>, vector<8x8xf32> -> vector<8x8xf32>
    %cst_170 = arith.constant 0.353553385 : f32
    %470 = vector.broadcast %cst_170 : f32 to vector<8x8xf32>
    %471 = arith.mulf %469, %470 : vector<8x8xf32>
    %472 = vector.broadcast %402 : vector<1x8xf32> to vector<8x8xf32>
    %473 = arith.addf %471, %472 : vector<8x8xf32>
    %cst_171 = arith.constant dense<0xFF800000> : vector<8xf32>
    %474 = vector.multi_reduction <maximumf>, %473, %cst_171 [1] : vector<8x8xf32> to vector<8xf32>
    %475 = vector.shape_cast %474 : vector<8xf32> to vector<8x1xf32>
    %476 = vector.broadcast %475 : vector<8x1xf32> to vector<8x8xf32>
    %477 = arith.subf %473, %476 : vector<8x8xf32>
    %478 = math.exp %477 : vector<8x8xf32>
    %cst_172 = arith.constant dense<0.000000e+00> : vector<8xf32>
    %479 = vector.multi_reduction <add>, %478, %cst_172 [1] : vector<8x8xf32> to vector<8xf32>
    %480 = vector.shape_cast %479 : vector<8xf32> to vector<8x1xf32>
    %481 = tpu.reciprocal %480 {approx = true} : vector<8x1xf32> -> vector<8x1xf32>
    %482 = vector.broadcast %481 : vector<8x1xf32> to vector<8x8xf32>
    %483 = arith.mulf %478, %482 : vector<8x8xf32>
    %484 = arith.truncf %483 : vector<8x8xf32> to vector<8x8xbf16>
    %cst_173 = arith.constant dense<0.000000e+00> : vector<8x8xf32>
    %485 = tpu.matmul %484, %468, %cst_173 {dimension_numbers = #tpu.dot_dimension_numbers<[1], [0], [0], [1], [0, 0, 1, 1], [], []>} : vector<8x8xbf16>, vector<8x8xbf16>, vector<8x8xf32> -> vector<8x8xf32>
    %c8_174 = arith.constant 8 : index
    %c24_175 = arith.constant 24 : index
    %486 = vector.load %arg13[%c8_174, %c24_175] : memref<16x32xf32, #tpu.memory_space<vmem>>, vector<8x8xf32>
    tpu.vector_store %arg13[%c8_174, %c24_175], %485 {strides = array<i32>} : memref<16x32xf32, #tpu.memory_space<vmem>>, vector<8x8xf32>,
    %c0_176 = arith.constant 0 : index
    %c0_177 = arith.constant 0 : index
    %487 = vector.load %arg13[%c0_176, %c0_177] : memref<16x32xf32, #tpu.memory_space<vmem>>, vector<16x32xf32>
    %488 = arith.truncf %487 : vector<16x32xf32> to vector<16x32xbf16>
    %cst_178 = arith.constant dense<0.000000e+00> : vector<16x32xf32>
    %489 = tpu.matmul %488, %304, %cst_178 {dimension_numbers = #tpu.dot_dimension_numbers<[1], [0], [0], [1], [0, 0, 1, 1], [], []>} : vector<16x32xbf16>, vector<32x32xbf16>, vector<16x32xf32> -> vector<16x32xf32>
    %c11 = arith.constant 11 : index
    %c0_179 = arith.constant 0 : index
    %490 = vector.load %arg10[%c11, %c0_179] : memref<20x128xf32, #tpu.memory_space<vmem>>, vector<1x32xf32>
    %491 = vector.broadcast %490 : vector<1x32xf32> to vector<16x32xf32>
    %492 = arith.addf %489, %491 : vector<16x32xf32>
    %493 = arith.addf %492, %300 : vector<16x32xf32>
    %c12 = arith.constant 12 : index
    %c0_180 = arith.constant 0 : index
    %494 = vector.load %arg10[%c12, %c0_180] : memref<20x128xf32, #tpu.memory_space<vmem>>, vector<1x32xf32>
    %c13 = arith.constant 13 : index
    %c0_181 = arith.constant 0 : index
    %495 = vector.load %arg10[%c13, %c0_181] : memref<20x128xf32, #tpu.memory_space<vmem>>, vector<1x32xf32>
    %cst_182 = arith.constant dense<0.000000e+00> : vector<16xf32>
    %496 = vector.multi_reduction <add>, %493, %cst_182 [1] : vector<16x32xf32> to vector<16xf32>
    %497 = vector.shape_cast %496 : vector<16xf32> to vector<16x1xf32>
    %cst_183 = arith.constant 3.200000e+01 : f32
    %498 = vector.broadcast %cst_183 : f32 to vector<16x1xf32>
    %499 = arith.divf %497, %498 : vector<16x1xf32>
    %500 = vector.broadcast %499 : vector<16x1xf32> to vector<16x32xf32>
    %501 = arith.subf %493, %500 : vector<16x32xf32>
    %502 = vector.broadcast %499 : vector<16x1xf32> to vector<16x32xf32>
    %503 = arith.subf %493, %502 : vector<16x32xf32>
    %504 = arith.mulf %501, %503 : vector<16x32xf32>
    %cst_184 = arith.constant dense<0.000000e+00> : vector<16xf32>
    %505 = vector.multi_reduction <add>, %504, %cst_184 [1] : vector<16x32xf32> to vector<16xf32>
    %506 = vector.shape_cast %505 : vector<16xf32> to vector<16x1xf32>
    %cst_185 = arith.constant 3.200000e+01 : f32
    %507 = vector.broadcast %cst_185 : f32 to vector<16x1xf32>
    %508 = arith.divf %506, %507 : vector<16x1xf32>
    %509 = vector.broadcast %499 : vector<16x1xf32> to vector<16x32xf32>
    %510 = arith.subf %493, %509 : vector<16x32xf32>
    %cst_186 = arith.constant 9.99999996E-13 : f32
    %511 = vector.broadcast %cst_186 : f32 to vector<16x1xf32>
    %512 = arith.addf %508, %511 : vector<16x1xf32>
    %513 = math.rsqrt %512 : vector<16x1xf32>
    %514 = vector.broadcast %513 : vector<16x1xf32> to vector<16x32xf32>
    %515 = arith.mulf %510, %514 : vector<16x32xf32>
    %516 = vector.broadcast %494 : vector<1x32xf32> to vector<16x32xf32>
    %517 = arith.mulf %515, %516 : vector<16x32xf32>
    %518 = vector.broadcast %495 : vector<1x32xf32> to vector<16x32xf32>
    %519 = arith.addf %517, %518 : vector<16x32xf32>
    %520 = arith.truncf %519 : vector<16x32xf32> to vector<16x32xbf16>
    %cst_187 = arith.constant dense<0.000000e+00> : vector<16x64xf32>
    %521 = tpu.matmul %520, %306, %cst_187 {dimension_numbers = #tpu.dot_dimension_numbers<[1], [0], [0], [1], [0, 0, 1, 1], [], []>} : vector<16x32xbf16>, vector<32x64xbf16>, vector<16x64xf32> -> vector<16x64xf32>
    %c14 = arith.constant 14 : index
    %c0_188 = arith.constant 0 : index
    %522 = vector.load %arg10[%c14, %c0_188] : memref<20x128xf32, #tpu.memory_space<vmem>>, vector<1x64xf32>
    %523 = vector.broadcast %522 : vector<1x64xf32> to vector<16x64xf32>
    %524 = arith.addf %521, %523 : vector<16x64xf32>
    %cst_189 = arith.constant 5.000000e-01 : f32
    %525 = vector.broadcast %cst_189 : f32 to vector<16x64xf32>
    %526 = arith.mulf %525, %524 : vector<16x64xf32>
    %cst_190 = arith.constant 4.471500e-02 : f32
    %527 = vector.broadcast %cst_190 : f32 to vector<16x64xf32>
    %528 = arith.mulf %527, %524 : vector<16x64xf32>
    %529 = arith.mulf %528, %524 : vector<16x64xf32>
    %530 = arith.mulf %529, %524 : vector<16x64xf32>
    %531 = arith.addf %524, %530 : vector<16x64xf32>
    %cst_191 = arith.constant 0.797884583 : f32
    %532 = vector.broadcast %cst_191 : f32 to vector<16x64xf32>
    %533 = arith.mulf %532, %531 : vector<16x64xf32>
    %534 = math.tanh %533 : vector<16x64xf32>
    %cst_192 = arith.constant 1.000000e+00 : f32
    %535 = vector.broadcast %cst_192 : f32 to vector<16x64xf32>
    %536 = arith.addf %535, %534 : vector<16x64xf32>
    %537 = arith.mulf %526, %536 : vector<16x64xf32>
    %538 = arith.truncf %537 : vector<16x64xf32> to vector<16x64xbf16>
    %cst_193 = arith.constant dense<0.000000e+00> : vector<16x32xf32>
    %539 = tpu.matmul %538, %308, %cst_193 {dimension_numbers = #tpu.dot_dimension_numbers<[1], [0], [0], [1], [0, 0, 1, 1], [], []>} : vector<16x64xbf16>, vector<64x32xbf16>, vector<16x32xf32> -> vector<16x32xf32>
    %c15 = arith.constant 15 : index
    %c0_194 = arith.constant 0 : index
    %540 = vector.load %arg10[%c15, %c0_194] : memref<20x128xf32, #tpu.memory_space<vmem>>, vector<1x32xf32>
    %541 = vector.broadcast %540 : vector<1x32xf32> to vector<16x32xf32>
    %542 = arith.addf %539, %541 : vector<16x32xf32>
    %543 = arith.addf %542, %519 : vector<16x32xf32>
    %c16_195 = arith.constant 16 : index
    %c0_196 = arith.constant 0 : index
    %544 = vector.load %arg10[%c16_195, %c0_196] : memref<20x128xf32, #tpu.memory_space<vmem>>, vector<1x32xf32>
    %c17 = arith.constant 17 : index
    %c0_197 = arith.constant 0 : index
    %545 = vector.load %arg10[%c17, %c0_197] : memref<20x128xf32, #tpu.memory_space<vmem>>, vector<1x32xf32>
    %cst_198 = arith.constant dense<0.000000e+00> : vector<16xf32>
    %546 = vector.multi_reduction <add>, %543, %cst_198 [1] : vector<16x32xf32> to vector<16xf32>
    %547 = vector.shape_cast %546 : vector<16xf32> to vector<16x1xf32>
    %cst_199 = arith.constant 3.200000e+01 : f32
    %548 = vector.broadcast %cst_199 : f32 to vector<16x1xf32>
    %549 = arith.divf %547, %548 : vector<16x1xf32>
    %550 = vector.broadcast %549 : vector<16x1xf32> to vector<16x32xf32>
    %551 = arith.subf %543, %550 : vector<16x32xf32>
    %552 = vector.broadcast %549 : vector<16x1xf32> to vector<16x32xf32>
    %553 = arith.subf %543, %552 : vector<16x32xf32>
    %554 = arith.mulf %551, %553 : vector<16x32xf32>
    %cst_200 = arith.constant dense<0.000000e+00> : vector<16xf32>
    %555 = vector.multi_reduction <add>, %554, %cst_200 [1] : vector<16x32xf32> to vector<16xf32>
    %556 = vector.shape_cast %555 : vector<16xf32> to vector<16x1xf32>
    %cst_201 = arith.constant 3.200000e+01 : f32
    %557 = vector.broadcast %cst_201 : f32 to vector<16x1xf32>
    %558 = arith.divf %556, %557 : vector<16x1xf32>
    %559 = vector.broadcast %549 : vector<16x1xf32> to vector<16x32xf32>
    %560 = arith.subf %543, %559 : vector<16x32xf32>
    %cst_202 = arith.constant 9.99999996E-13 : f32
    %561 = vector.broadcast %cst_202 : f32 to vector<16x1xf32>
    %562 = arith.addf %558, %561 : vector<16x1xf32>
    %563 = math.rsqrt %562 : vector<16x1xf32>
    %564 = vector.broadcast %563 : vector<16x1xf32> to vector<16x32xf32>
    %565 = arith.mulf %560, %564 : vector<16x32xf32>
    %566 = vector.broadcast %544 : vector<1x32xf32> to vector<16x32xf32>
    %567 = arith.mulf %565, %566 : vector<16x32xf32>
    %568 = vector.broadcast %545 : vector<1x32xf32> to vector<16x32xf32>
    %569 = arith.addf %567, %568 : vector<16x32xf32>
    %570 = vector.extract_strided_slice %569 {offsets = [0, 0], sizes = [1, 32], strides = [1, 1]} : vector<16x32xf32> to vector<1x32xf32>
    %c0_203 = arith.constant 0 : index
    %c0_204 = arith.constant 0 : index
    %571 = vector.load %arg14[%c0_203, %c0_204] : memref<2x32xf32, #tpu.memory_space<vmem>>, vector<1x32xf32>
    tpu.vector_store %arg14[%c0_203, %c0_204], %570 {strides = array<i32>} : memref<2x32xf32, #tpu.memory_space<vmem>>, vector<1x32xf32>,
    %572 = vector.extract_strided_slice %569 {offsets = [8, 0], sizes = [1, 32], strides = [1, 1]} : vector<16x32xf32> to vector<1x32xf32>
    %c1_205 = arith.constant 1 : index
    %c0_206 = arith.constant 0 : index
    %573 = vector.load %arg14[%c1_205, %c0_206] : memref<2x32xf32, #tpu.memory_space<vmem>>, vector<1x32xf32>
    tpu.vector_store %arg14[%c1_205, %c0_206], %572 {strides = array<i32>} : memref<2x32xf32, #tpu.memory_space<vmem>>, vector<1x32xf32>,
    %c0_207 = arith.constant 0 : index
    %c0_208 = arith.constant 0 : index
    %574 = vector.load %arg14[%c0_207, %c0_208] : memref<2x32xf32, #tpu.memory_space<vmem>>, vector<2x32xf32>
    %c0_209 = arith.constant 0 : index
    %c0_210 = arith.constant 0 : index
    %575 = vector.load %arg8[%c0_209, %c0_210] : memref<32x32xf32, #tpu.memory_space<vmem>>, vector<32x32xf32>
    %cst_211 = arith.constant dense<0.000000e+00> : vector<2x32xf32>
    %576 = tpu.matmul %574, %575, %cst_211 {dimension_numbers = #tpu.dot_dimension_numbers<[1], [0], [0], [1], [0, 0, 1, 1], [], []>} : vector<2x32xf32>, vector<32x32xf32>, vector<2x32xf32> -> vector<2x32xf32>
    %c18 = arith.constant 18 : index
    %c0_212 = arith.constant 0 : index
    %577 = vector.load %arg10[%c18, %c0_212] : memref<20x128xf32, #tpu.memory_space<vmem>>, vector<1x32xf32>
    %578 = vector.broadcast %577 : vector<1x32xf32> to vector<2x32xf32>
    %579 = arith.addf %576, %578 : vector<2x32xf32>
    %580 = math.tanh %579 : vector<2x32xf32>
    %c0_213 = arith.constant 0 : index
    %c0_214 = arith.constant 0 : index
    %581 = vector.load %arg9[%c0_213, %c0_214] : memref<32x2xf32, #tpu.memory_space<vmem>>, vector<32x2xf32>
    %cst_215 = arith.constant dense<0.000000e+00> : vector<2x2xf32>
    %582 = tpu.matmul %580, %581, %cst_215 {dimension_numbers = #tpu.dot_dimension_numbers<[1], [0], [0], [1], [0, 0, 1, 1], [], []>} : vector<2x32xf32>, vector<32x2xf32>, vector<2x2xf32> -> vector<2x2xf32>
    %c19 = arith.constant 19 : index
    %c0_216 = arith.constant 0 : index
    %583 = vector.load %arg10[%c19, %c0_216] : memref<20x128xf32, #tpu.memory_space<vmem>>, vector<1x2xf32>
    %584 = vector.broadcast %583 : vector<1x2xf32> to vector<2x2xf32>
    %585 = arith.addf %582, %584 : vector<2x2xf32>
    %c0_217 = arith.constant 0 : index
    %c0_218 = arith.constant 0 : index
    %586 = vector.load %arg11[%c0_217, %c0_218] : memref<2x2xf32, #tpu.memory_space<vmem>>, vector<2x2xf32>
    tpu.vector_store %arg11[%c0_217, %c0_218], %585 {strides = array<i32>} : memref<2x2xf32, #tpu.memory_space<vmem>>, vector<2x2xf32>,
    %cst_219 = arith.constant dense<0xFF800000> : vector<2xf32>
    %587 = vector.multi_reduction <maximumf>, %585, %cst_219 [1] : vector<2x2xf32> to vector<2xf32>
    %588 = vector.shape_cast %587 : vector<2xf32> to vector<2x1xf32>
    %589 = vector.broadcast %588 : vector<2x1xf32> to vector<2x2xf32>
    %590 = arith.subf %585, %589 : vector<2x2xf32>
    %591 = math.exp %590 : vector<2x2xf32>
    %cst_220 = arith.constant dense<0.000000e+00> : vector<2xf32>
    %592 = vector.multi_reduction <add>, %591, %cst_220 [1] : vector<2x2xf32> to vector<2xf32>
    %593 = vector.shape_cast %592 : vector<2xf32> to vector<2x1xf32>
    %594 = math.log %593 : vector<2x1xf32>
    %595 = arith.addf %588, %594 : vector<2x1xf32>
    %596 = tpu.iota {dimensions = array<i32: 1>} : vector<2x2xi32>
    %c0_221 = arith.constant 0 : index
    %c0_222 = arith.constant 0 : index
    %597 = vector.load %arg3[%c0_221, %c0_222] : memref<2x1xi32, #tpu.memory_space<vmem>>, vector<2x1xi32>
    %598 = vector.broadcast %597 : vector<2x1xi32> to vector<2x2xi32>
    %599 = arith.cmpi eq, %596, %598 : vector<2x2xi32>
    %cst_223 = arith.constant 0.000000e+00 : f32
    %600 = vector.broadcast %cst_223 : f32 to vector<2x2xf32>
    %601 = arith.select %599, %585, %600 : vector<2x2xi1>, vector<2x2xf32>
    %cst_224 = arith.constant dense<0.000000e+00> : vector<2xf32>
    %602 = vector.multi_reduction <add>, %601, %cst_224 [1] : vector<2x2xf32> to vector<2xf32>
    %603 = vector.shape_cast %602 : vector<2xf32> to vector<2x1xf32>
    %604 = arith.subf %595, %603 : vector<2x1xf32>
    %cst_225 = arith.constant dense<0.000000e+00> : vector<1xf32>
    %605 = vector.multi_reduction <add>, %604, %cst_225 [0] : vector<2x1xf32> to vector<1xf32>
    %606 = vector.shape_cast %605 : vector<1xf32> to vector<1x1xf32>
    %cst_226 = arith.constant 2.000000e+00 : f32
    %607 = vector.broadcast %cst_226 : f32 to vector<1x1xf32>
    %608 = arith.divf %606, %607 : vector<1x1xf32>
    %c0_227 = arith.constant 0 : index
    %c0_228 = arith.constant 0 : index
    %609 = vector.load %arg12[%c0_227, %c0_228] : memref<1x1xf32, #tpu.memory_space<vmem>>, vector<1x1xf32>
    tpu.vector_store %arg12[%c0_227, %c0_228], %608 {strides = array<i32>} : memref<1x1xf32, #tpu.memory_space<vmem>>, vector<1x1xf32>,
    return
  }
  func.func @transform_0(%arg0: i32) -> (i32, i32) {
    %c0_i32 = arith.constant 0 : i32
    %c0_i32_0 = arith.constant 0 : i32
    %c0_i32_1 = arith.constant 0 : i32
    return %c0_i32, %c0_i32_0 : i32, i32
  }
  func.func @transform_1(%arg0: i32) -> (i32, i32) {
    %c0_i32 = arith.constant 0 : i32
    %c0_i32_0 = arith.constant 0 : i32
    %c0_i32_1 = arith.constant 0 : i32
    return %c0_i32, %c0_i32_0 : i32, i32
  }
  func.func @transform_2(%arg0: i32) -> (i32, i32) {
    %c0_i32 = arith.constant 0 : i32
    %c0_i32_0 = arith.constant 0 : i32
    %c0_i32_1 = arith.constant 0 : i32
    return %c0_i32, %c0_i32_0 : i32, i32
  }
  func.func @transform_3(%arg0: i32) -> (i32, i32, i32) {
    %c0_i32 = arith.constant 0 : i32
    %c0_i32_0 = arith.constant 0 : i32
    %c0_i32_1 = arith.constant 0 : i32
    %c0_i32_2 = arith.constant 0 : i32
    return %c0_i32, %c0_i32_0, %c0_i32_1 : i32, i32, i32
  }
  func.func @transform_4(%arg0: i32) -> (i32, i32, i32) {
    %c0_i32 = arith.constant 0 : i32
    %c0_i32_0 = arith.constant 0 : i32
    %c0_i32_1 = arith.constant 0 : i32
    %c0_i32_2 = arith.constant 0 : i32
    return %c0_i32, %c0_i32_0, %c0_i32_1 : i32, i32, i32
  }
  func.func @transform_5(%arg0: i32) -> (i32, i32, i32) {
    %c0_i32 = arith.constant 0 : i32
    %c0_i32_0 = arith.constant 0 : i32
    %c0_i32_1 = arith.constant 0 : i32
    %c0_i32_2 = arith.constant 0 : i32
    return %c0_i32, %c0_i32_0, %c0_i32_1 : i32, i32, i32
  }
  func.func @transform_6(%arg0: i32) -> (i32, i32, i32) {
    %c0_i32 = arith.constant 0 : i32
    %c0_i32_0 = arith.constant 0 : i32
    %c0_i32_1 = arith.constant 0 : i32
    %c0_i32_2 = arith.constant 0 : i32
    return %c0_i32, %c0_i32_0, %c0_i32_1 : i32, i32, i32
  }
  func.func @transform_7(%arg0: i32) -> (i32, i32) {
    %c0_i32 = arith.constant 0 : i32
    %c0_i32_0 = arith.constant 0 : i32
    %c0_i32_1 = arith.constant 0 : i32
    return %c0_i32, %c0_i32_0 : i32, i32
  }
  func.func @transform_8(%arg0: i32) -> (i32, i32) {
    %c0_i32 = arith.constant 0 : i32
    %c0_i32_0 = arith.constant 0 : i32
    %c0_i32_1 = arith.constant 0 : i32
    return %c0_i32, %c0_i32_0 : i32, i32
  }
  func.func @transform_9(%arg0: i32) -> (i32, i32) {
    %c0_i32 = arith.constant 0 : i32
    %c0_i32_0 = arith.constant 0 : i32
    %c0_i32_1 = arith.constant 0 : i32
    return %c0_i32, %c0_i32_0 : i32, i32
  }
  func.func @transform_10(%arg0: i32) -> (i32, i32) {
    %c0_i32 = arith.constant 0 : i32
    %c0_i32_0 = arith.constant 0 : i32
    %c0_i32_1 = arith.constant 0 : i32
    return %c0_i32, %c0_i32_0 : i32, i32
  }
  func.func @transform_11(%arg0: i32) -> (i32, i32) {
    %c0_i32 = arith.constant 0 : i32
    %c0_i32_0 = arith.constant 0 : i32
    %c0_i32_1 = arith.constant 0 : i32
    return %c0_i32, %c0_i32_0 : i32, i32
  }
}

</mosaic_0001>

<bundles_post_ra>
// kernel: bert_forward.1
= control target key start
LH: loop header
LB: loop body
LE: loop exit
PB: predicated region body
PF: predicated region fallthrough
CT: control target
= control target key end

     0   :  { %17 = vsyncpa [#allocation5], 0  ;;  %vm44_vm0 = vcmask 261120   ;;  %s4393_s0 = inlined_call_operand.vmem [shape: f32[16,32], index: 0, kind: input, shape index: {}]   ;;  %s4394_s1 = inlined_call_operand.vmem [shape: f32[2,8], index: 1, kind: input, shape index: {}]   ;;  %s4395_s2 = inlined_call_operand.vmem [shape: s32[2,1], index: 2, kind: input, shape index: {}]   ;;  %s4396_s3 = inlined_call_operand.vmem [shape: bf16[2,32,96], index: 3, kind: input, shape index: {}]   ;;  %s4397_s4 = inlined_call_operand.vmem [shape: bf16[2,32,32], index: 4, kind: input, shape index: {}]   ;;  %s4398_s5 = inlined_call_operand.vmem [shape: bf16[2,32,64], index: 5, kind: input, shape index: {}]   ;;  %s4399_s6 = inlined_call_operand.vmem [shape: bf16[2,64,32], index: 6, kind: input, shape index: {}]   ;;  %s4400_s7 = inlined_call_operand.vmem [shape: f32[32,32], index: 7, kind: input, shape index: {}]   ;;  %s4401_s8 = inlined_call_operand.vmem [shape: f32[32,2], index: 8, kind: input, shape index: {}]   ;;  %s4402_s9 = inlined_call_operand.vmem [shape: f32[20,128], index: 9, kind: input, shape index: {}]   ;;  %s4403_s10 = inlined_call_operand.hbm [shape: f32[2,2], index: 10, kind: output, shape index: {0}]   ;;  %s4404_s11 = inlined_call_operand.hbm [shape: f32[1,1], index: 11, kind: output, shape index: {1}]  }
   0x1   :  { %v40_v0 = vld [vmem:[%s4393_s0] sm:$0xff]  ;;  %v41_v1 = vld [vmem:[%s4393_s0 + $0x8] sm:$0xff] }
   0x2   :  { %v45_v2 = vsel %vm44_vm0, %v40_v0, 0.0  ;;  %v48_v3 = vsel %vm44_vm0, %v41_v1, 0.0 }
   0x3   :  { %46 = vadd.xlane.f32.xlu0 %v45_v2 }
   0x7   :  { %49 = vadd.xlane.f32.xlu0 %v48_v3 }
   0x8   :  { %18 = vsyncpa [#allocation7], 0  ;;  %v3472_v14 = vld [vmem:[%s4396_s3 + $0x8] sm:$0xff]   ;;  %v3634_v15 = vmov 0.0   ;;  %vm3635_vm1 = vmmov 0   ;;  %v3473_v16 = vld [vmem:[%s4396_s3] sm:$0xff]  }
   0x9   :  { %3166 = vmatprep.subr.bf16.mxu0 %v3634_v15  ;;  %3170 = vmatprep.mubr.msk.bf16.mxu0 %vm3635_vm1, %v3634_v15  ;;  %v2962_v25 = vld [vmem:[%s4402_s9] ss:$0 sm:$0xff]  ;;  %v2963_v29 = vld [vmem:[%s4402_s9 + $0x1] ss:$0 sm:$0xff]  ;;  %v2964_v35 = vld [vmem:[%s4402_s9 + $0x2] ss:$0 sm:$0xff] }
   0xa   :  { %3167 = vmatpush3.bf16.msra.mxu0 %v3472_v14  ;;  %3174 = vmatprep.subr.bf16.mxu1 %v3634_v15  ;;  %s3636_s30 = smov 88   ;;  %s3637_s12 = smov 96   ;;  %vm173_vm2 = vcmask 64512   ;;  %v84_v2 = vld [vmem:[%s4394_s1] sm:$0x3]  ;;  %vm243_vm3 = vcmask 1043456  }
   0xb   :  { %3168 = vmatprep.subr.bf16.mxu0 %v3634_v15  ;;  %3176 = vmatprep.mubr.msk.bf16.mxu1 %vm3635_vm1, %v3634_v15  ;;  %s3638_s13 = smov 120   ;;  %s3639_s14 = smov 112   ;;  %v85_v3 = vsub.f32 1.0, %v84_v2  ;;  %vm404_vm4 = vcmask 130112   ;;  %vm522_vm5 = vcmask 195712   ;;  %vm640_vm6 = vcmask 261312  }
   0xc   :  { %s3640_s15 = smov 80   ;;  %s3641_s16 = smov 104   ;;  %vm1325_vm7 = vcmask 523264   ;;  %vm2727_vm8 = vcmask 253952   ;;  %vm2896_vm9 = vcmask 9216  }
   0xd   :  { %s3642_s17 = smov 72   ;;  %s3643_s1 = smov 64  }
   0xe   :  { %3169 = vmatpush3.bf16.msra.mxu0 %v3473_v16  ;;  %s3644_s20 = smov 56   ;;  %s3645_s0 = smov 48  }
   0xf   :  { %3180 = vmatprep.subr.bf16.mxu0 %v3634_v15  ;;  %s3646_s21 = smov 40   ;;  %s3647_s22 = smov 8  }
  0x10   :  { %s3648_s23 = smov 16   ;;  %s4405_s24 = smov 24  }
  0x8c   :  { %v47_v4 = vpop.xlane.xlu0 %46 }
  0x8d   :  { %v52_v5 = vmul.f32 0.03125, %v47_v4 }
  0x8f   :  { %v54_v6 = vsub.f32 %v40_v0, %v52_v5  ;;  %v86_v5 = vmul.f32 -10000.0, %v85_v3 }
  0x90   :  { %v50_v7 = vpop.xlane.xlu0 %49 }
  0x91   :  { %v53_v8 = vmul.f32 0.03125, %v50_v7  ;;  %v56_v9 = vmul.f32 %v54_v6, %v54_v6 }
  0x93   :  { %v55_v10 = vsub.f32 %v41_v1, %v53_v8  ;;  %v58_v11 = vsel %vm44_vm0, %v56_v9, 0.0  ;;  %v221_v1 = vlaneseq }
  0x94   :  { %59 = vadd.xlane.f32.xlu1 %v58_v11 }
  0x95   :  { %v57_v12 = vmul.f32 %v55_v10, %v55_v10  ;;  %v222_v4 = vshrl.u32 %v221_v1, 7 }
  0x97   :  { %v61_v13 = vsel %vm44_vm0, %v57_v12, 0.0 }
  0x98   :  { %62 = vadd.xlane.f32.xlu1 %v61_v13 }
 0x11d   :  { %v60_v17 = vpop.xlane.xlu1 %59 }
 0x11e   :  { %v64_v18 = vmul.f32 0.03125, %v60_v17 }
 0x120   :  { %v66_v19 = vadd.f32 1e-12, %v64_v18 }
 0x121   :  { %v63_v20 = vpop.xlane.xlu1 %62 }
 0x122   :  { %3492 = vrsqrt.f32 %v66_v19  ;;  %v65_v21 = vmul.f32 0.03125, %v63_v20 }
 0x124   :  { %v67_v22 = vadd.f32 1e-12, %v65_v21 }
 0x126   :  { %3494 = vrsqrt.f32 %v67_v22 }
 0x12f   :  { %v3493_v23 = vpop.eup %3492 }
 0x130   :  { %v70_v24 = vmul.f32 %v3493_v23, %v54_v6  ;;  %v223_v6 = vsub.s32 0, %v222_v4 }
 0x132   :  { %v76_v28 = vmul.f32 %v2962_v25, %v70_v24  ;;  %v3834_v7 = vrot.slane %v86_v5, %v223_v6 }
 0x133   :  { %v3495_v26 = vpop.eup %3494 }
 0x134   :  { %v71_v27 = vmul.f32 %v3495_v26, %v55_v10  ;;  %v3743_v31 = vadd.f32 %v2963_v29, %v76_v28 }
 0x136   :  { %v77_v30 = vmul.f32 %v2962_v25, %v71_v27 }
 0x138   :  { %v3745_v32 = vadd.f32 %v2963_v29, %v77_v30 }
 0x13a   :  { %v107_v33 = vpack.c.bf16 %v3745_v32, %v3743_v31 }
 0x13c   :  { %3171 = vmatmul.mubr.msk.bf16.vlgmr.msra.gmra.mxu0 %vm44_vm0, %v107_v33 }
 0x13d   :  { %3182 = vmatprep.mubr.msk.bf16.mxu0 %vm3635_vm1, %v3634_v15 }
 0x1fc   :  { %v162_v34 = vpop.f32.mrf.mxu0 }
 0x1fd   :  { %v163_v38 = vadd.f32 %v2964_v35, %v162_v34 }
 0x1fe   :  { %v3172_v36 = vpop.f32.mrf.mxu0 }
 0x200   :  { %v165_v37 = vpop.f32.mrf.mxu0 }
 0x201   :  { %v166_v39 = vadd.f32 %v2964_v35, %v165_v37 }
 0x202   :  { %v3173_v40 = vpop.f32.mrf.mxu0 }
 0x203   :  { %v3755_v41 = vpack.c.bf16 %v166_v39, %v163_v38 }
 0x205   :  { %290 = vrot.lane.b32.xlu1 %v3755_v41, %s3636_s30  ;;  %171 = vrot.lane.b32.xlu0 %v3755_v41, %s3637_s12  ;;  %v3770_v42 = vrot.slane %v3755_v41, 4 }
 0x209   :  { %288 = vrot.lane.b32.xlu1 %v3755_v41, %s3638_s13  ;;  %406 = vrot.lane.b32.xlu0 %v3755_v41, %s3639_s14 }
 0x20d   :  { %408 = vrot.lane.b32.xlu1 %v3755_v41, %s3640_s15  ;;  %524 = vrot.lane.b32.xlu0 %v3755_v41, %s3641_s16 }
 0x211   :  { %526 = vrot.lane.b32.xlu1 %v3755_v41, %s3642_s17  ;;  %760 = vrot.lane.b32.xlu0 %v3770_v42, %s3636_s30 }
 0x215   :  { %877 = vrot.lane.b32.xlu0 %v3770_v42, %s3640_s15  ;;  %643 = vrot.lane.b32.xlu1 %v3770_v42, %s3637_s12 }
 0x219   :  { %994 = vrot.lane.b32.xlu0 %v3770_v42, %s3642_s17  ;;  %758 = vrot.lane.b32.xlu1 %v3770_v42, %s3638_s13 }
 0x21d   :  { %875 = vrot.lane.b32.xlu1 %v3770_v42, %s3639_s14 }
 0x221   :  { %992 = vrot.lane.b32.xlu1 %v3770_v42, %s3641_s16 }
 0x277   :  { %v172_v43 = vpop.permute.xlu0 %171  ;;  %v291_v45 = vpop.permute.xlu1 %290 }
 0x278   :  { %v178_v44 = vsel %vm173_vm2, %v172_v43, 0  ;;  %v296_v47 = vsel %vm173_vm2, %v291_v45, 0 }
 0x279   :  { %3175 = vmatpush3.bf16.xpose.msra.mxu1 %v178_v44 }
 0x27a   :  { %3186 = vmatprep.subr.bf16.mxu1 %v3634_v15 }
 0x27b   :  { %v289_v46 = vpop.permute.xlu1 %288  ;;  %v407_v51 = vpop.permute.xlu0 %406 }
 0x27f   :  { %v409_v48 = vpop.permute.xlu1 %408  ;;  %v525_v54 = vpop.permute.xlu0 %524 }
 0x280   :  { %3177 = vmatmul.mubr.msk.bf16.vlgmr.msra.gmra.mxu1 %vm173_vm2, %v3755_v41  ;;  %v414_v49 = vsel %vm173_vm2, %v409_v48, 0 }
 0x281   :  { %3187 = vmatpush3.bf16.xpose.msra.mxu1 %v296_v47  ;;  %3188 = vmatprep.mubr.msk.bf16.mxu1 %vm3635_vm1, %v3634_v15 }
 0x282   :  { %3198 = vmatprep.subr.bf16.mxu1 %v3634_v15 }
 0x283   :  { %v527_v50 = vpop.permute.xlu1 %526  ;;  %v761_v56 = vpop.permute.xlu0 %760 }
 0x284   :  { %v532_v52 = vsel %vm173_vm2, %v527_v50, 0  ;;  %v766_v57 = vsel %vm173_vm2, %v761_v56, 0  ;;  %v694_v50 = vsub.s32 1, %v222_v4 }
 0x287   :  { %v644_v53 = vpop.permute.xlu1 %643  ;;  %v878_v58 = vpop.permute.xlu0 %877 }
 0x288   :  { %3189 = vmatmul.mubr.msk.bf16.vlgmr.msra.gmra.mxu1 %vm173_vm2, %v289_v46  ;;  %v649_v55 = vsel %vm173_vm2, %v644_v53, 0  ;;  %v883_v60 = vsel %vm173_vm2, %v878_v58, 0 }
 0x289   :  { %3199 = vmatpush3.bf16.xpose.msra.mxu1 %v414_v49  ;;  %3200 = vmatprep.mubr.msk.bf16.mxu1 %vm3635_vm1, %v3634_v15 }
 0x28a   :  { %3210 = vmatprep.subr.bf16.mxu1 %v3634_v15 }
 0x28b   :  { %v759_v59 = vpop.permute.xlu1 %758  ;;  %v995_v61 = vpop.permute.xlu0 %994 }
 0x28c   :  { %v1000_v63 = vsel %vm173_vm2, %v995_v61, 0 }
 0x28f   :  { %v876_v62 = vpop.permute.xlu1 %875 }
 0x290   :  { %3201 = vmatmul.mubr.msk.bf16.vlgmr.msra.gmra.mxu1 %vm173_vm2, %v407_v51 }
 0x291   :  { %3211 = vmatpush3.bf16.xpose.msra.mxu1 %v532_v52  ;;  %3212 = vmatprep.mubr.msk.bf16.mxu1 %vm3635_vm1, %v3634_v15 }
 0x292   :  { %3222 = vmatprep.subr.bf16.mxu1 %v3634_v15 }
 0x293   :  { %v993_v0 = vpop.permute.xlu1 %992 }
 0x298   :  { %3213 = vmatmul.mubr.msk.bf16.vlgmr.msra.gmra.mxu1 %vm173_vm2, %v525_v54 }
 0x299   :  { %3223 = vmatpush3.bf16.xpose.msra.mxu1 %v649_v55  ;;  %3224 = vmatprep.mubr.msk.bf16.mxu1 %vm3635_vm1, %v3634_v15 }
 0x29a   :  { %3234 = vmatprep.subr.bf16.mxu1 %v3634_v15 }
 0x2a0   :  { %3225 = vmatmul.mubr.msk.bf16.vlgmr.msra.gmra.mxu1 %vm173_vm2, %v3770_v42 }
 0x2a1   :  { %3235 = vmatpush3.bf16.xpose.msra.mxu1 %v766_v57  ;;  %3236 = vmatprep.mubr.msk.bf16.mxu1 %vm3635_vm1, %v3634_v15  ;;  %v3853_v57 = vrot.slane %v86_v5, %v694_v50 }
 0x2a2   :  { %3246 = vmatprep.subr.bf16.mxu1 %v3634_v15 }
 0x2a8   :  { %3237 = vmatmul.mubr.msk.bf16.vlgmr.msra.gmra.mxu1 %vm173_vm2, %v759_v59 }
 0x2a9   :  { %3247 = vmatpush3.bf16.xpose.msra.mxu1 %v883_v60  ;;  %3248 = vmatprep.mubr.msk.bf16.mxu1 %vm3635_vm1, %v3634_v15 }
 0x2aa   :  { %3258 = vmatprep.subr.bf16.mxu1 %v3634_v15 }
 0x2b0   :  { %3249 = vmatmul.mubr.msk.bf16.vlgmr.msra.gmra.mxu1 %vm173_vm2, %v876_v62 }
 0x2b1   :  { %3259 = vmatpush3.bf16.xpose.msra.mxu1 %v1000_v63  ;;  %3260 = vmatprep.mubr.msk.bf16.mxu1 %vm3635_vm1, %v3634_v15 }
 0x2b2   :  { %3270 = vmatprep.subr.bf16.mxu1 %v3634_v15 }
 0x2b8   :  { %3261 = vmatmul.mubr.msk.bf16.vlgmr.msra.gmra.mxu1 %vm173_vm2, %v993_v0 }
 0x2b9   :  { %3274 = vmatprep.mubr.msk.bf16.mxu1 %vm3635_vm1, %v3634_v15 }
 0x340   :  { %v214_v8 = vpop.f32.mrf.mxu1 }
 0x341   :  { %v220_v9 = vmul.f32 0.35355338, %v214_v8 }
 0x342   :  { %v3178_v10 = vpop.f32.mrf.mxu1 }
 0x343   :  { %v3837_v11 = vadd.f32 %v3834_v7, %v220_v9 }
 0x344   :  { %v217_v12 = vpop.f32.mrf.mxu1 }
 0x345   :  { %v226_v13 = vsel %vm173_vm2, %v3837_v11, -inf }
 0x346   :  { %v3179_v14 = vpop.f32.mrf.mxu1  ;;  %227 = vmax.xlane.f32.xlu0 %v226_v13 }
 0x348   :  { %v332_v16 = vpop.f32.mrf.mxu1 }
 0x349   :  { %v338_v17 = vmul.f32 0.35355338, %v332_v16 }
 0x34a   :  { %v3190_v18 = vpop.f32.mrf.mxu1 }
 0x34b   :  { %v3842_v19 = vadd.f32 %v338_v17, %v3834_v7 }
 0x34c   :  { %v335_v20 = vpop.f32.mrf.mxu1 }
 0x34d   :  { %v340_v21 = vsel %vm173_vm2, %v3842_v19, -inf }
 0x34e   :  { %v3191_v22 = vpop.f32.mrf.mxu1  ;;  %341 = vmax.xlane.f32.xlu1 %v340_v21 }
 0x350   :  { %v450_v23 = vpop.f32.mrf.mxu1 }
 0x351   :  { %v456_v44 = vmul.f32 0.35355338, %v450_v23 }
 0x352   :  { %v3202_v24 = vpop.f32.mrf.mxu1 }
 0x353   :  { %v457_v49 = vadd.f32 %v456_v44, %v3834_v7 }
 0x354   :  { %v453_v25 = vpop.f32.mrf.mxu1 }
 0x355   :  { %v458_v56 = vsel %vm173_vm2, %v457_v49, -inf }
 0x356   :  { %v3203_v26 = vpop.f32.mrf.mxu1 }
 0x358   :  { %v568_v27 = vpop.f32.mrf.mxu1 }
 0x359   :  { %v574_v47 = vmul.f32 0.35355338, %v568_v27 }
 0x35a   :  { %v3214_v28 = vpop.f32.mrf.mxu1 }
 0x35b   :  { %v575_v52 = vadd.f32 %v574_v47, %v3834_v7 }
 0x35c   :  { %v571_v29 = vpop.f32.mrf.mxu1  ;;  %238 = vrot.lane.b32.xlu0 %v3755_v41, %s3643_s1 }
 0x35d   :  { %v576_v59 = vsel %vm173_vm2, %v575_v52, -inf }
 0x35e   :  { %v3215_v30 = vpop.f32.mrf.mxu1 }
 0x35f   :  { %352 = vrot.lane.b32.xlu1 %v3755_v41, %s3644_s20 }
 0x360   :  { %v685_v33 = vpop.f32.mrf.mxu1 }
 0x361   :  { %v691_v53 = vmul.f32 0.35355338, %v685_v33 }
 0x362   :  { %v3226_v34 = vpop.f32.mrf.mxu1 }
 0x363   :  { %v696_v63 = vadd.f32 %v3853_v57, %v691_v53 }
 0x364   :  { %v688_v35 = vpop.f32.mrf.mxu1 }
 0x365   :  { %v697_v2 = vsel %vm173_vm2, %v696_v63, -inf }
 0x366   :  { %v3227_v36 = vpop.f32.mrf.mxu1 }
 0x368   :  { %v802_v37 = vpop.f32.mrf.mxu1 }
 0x369   :  { %v808_v54 = vmul.f32 0.35355338, %v802_v37 }
 0x36a   :  { %v3238_v38 = vpop.f32.mrf.mxu1 }
 0x36b   :  { %v809_v0 = vadd.f32 %v808_v54, %v3853_v57 }
 0x36c   :  { %v805_v39 = vpop.f32.mrf.mxu1 }
 0x36d   :  { %v810_v3 = vsel %vm173_vm2, %v809_v0, -inf }
 0x36e   :  { %v3239_v40 = vpop.f32.mrf.mxu1 }
 0x370   :  { %v919_v43 = vpop.f32.mrf.mxu1 }
 0x371   :  { %v925_v60 = vmul.f32 0.35355338, %v919_v43 }
 0x372   :  { %v3250_v45 = vpop.f32.mrf.mxu1 }
 0x373   :  { %v3861_v4 = vadd.f32 %v925_v60, %v3853_v57 }
 0x374   :  { %v922_v46 = vpop.f32.mrf.mxu1 }
 0x375   :  { %v927_v6 = vsel %vm173_vm2, %v3861_v4, -inf }
 0x376   :  { %v3251_v48 = vpop.f32.mrf.mxu1 }
 0x378   :  { %v1036_v51 = vpop.f32.mrf.mxu1 }
 0x379   :  { %v1042_v61 = vmul.f32 0.35355338, %v1036_v51 }
 0x37a   :  { %v3262_v55 = vpop.f32.mrf.mxu1 }
 0x37b   :  { %459 = vmax.xlane.f32.xlu0 %v458_v56  ;;  %v3864_v5 = vadd.f32 %v1042_v61, %v3853_v57 }
 0x37c   :  { %v1039_v58 = vpop.f32.mrf.mxu1 }
 0x37d   :  { %v1044_v8 = vsel %vm173_vm2, %v3864_v5, -inf }
 0x37e   :  { %v3263_v62 = vpop.f32.mrf.mxu1 }
 0x37f   :  { %577 = vmax.xlane.f32.xlu0 %v576_v59 }
 0x383   :  { %698 = vmax.xlane.f32.xlu0 %v697_v2  ;;  %811 = vmax.xlane.f32.xlu1 %v810_v3 }
 0x387   :  { %928 = vmax.xlane.f32.xlu0 %v927_v6  ;;  %1045 = vmax.xlane.f32.xlu1 %v1044_v8 }
 0x39d   :  { %470 = vrot.lane.b32.xlu0 %v3755_v41, %s3645_s0 }
 0x3cf   :  { %v228_v9 = vpop.xlane.xlu0 %227 }
 0x3d0   :  { %v229_v10 = vsub.f32 %v3837_v11, %v228_v9 }
 0x3d2   :  { %v230_v12 = vmul.f32 1.442695, %v229_v10 }
 0x3d3   :  { %v239_v13 = vpop.permute.xlu0 %238 }
 0x3d4   :  { %3496 = vpow2.f32 %v230_v12  ;;  %v245_v14 = vsel %vm243_vm3, %v239_v13, 0 }
 0x3d5   :  { %3181 = vmatpush3.bf16.msra.mxu0 %v245_v14 }
 0x3d6   :  { %3192 = vmatprep.subr.bf16.mxu0 %v3634_v15 }
 0x3d7   :  { %v342_v16 = vpop.xlane.xlu1 %341 }
 0x3d8   :  { %v343_v17 = vsub.f32 %v3842_v19, %v342_v16 }
 0x3da   :  { %v344_v18 = vmul.f32 1.442695, %v343_v17 }
 0x3db   :  { %v353_v26 = vpop.permute.xlu1 %352 }
 0x3dc   :  { %3498 = vpow2.f32 %v344_v18 }
 0x3e1   :  { %v3497_v20 = vpop.eup %3496 }
 0x3e2   :  { %v232_v21 = vsel %vm173_vm2, %v3497_v20, 0.0 }
 0x3e3   :  { %233 = vadd.xlane.f32.xlu0 %v232_v21 }
 0x3e9   :  { %v3877_v22 = vpop.eup %3498 }
 0x3ea   :  { %v346_v11 = vsel %vm173_vm2, %v3877_v22, 0.0 }
 0x3eb   :  { %347 = vadd.xlane.f32.xlu1 %v346_v11 }
 0x3fc   :  { %709 = vrot.lane.b32.xlu1 %v3770_v42, %s3643_s1 }
 0x404   :  { %v460_v23 = vpop.xlane.xlu0 %459 }
 0x405   :  { %v461_v24 = vsub.f32 %v457_v49, %v460_v23 }
 0x407   :  { %v462_v25 = vmul.f32 1.442695, %v461_v24 }
 0x408   :  { %v578_v19 = vpop.xlane.xlu0 %577 }
 0x409   :  { %3500 = vpow2.f32 %v462_v25  ;;  %v579_v27 = vsub.f32 %v575_v52, %v578_v19 }
 0x40b   :  { %v580_v28 = vmul.f32 1.442695, %v579_v27 }
 0x40c   :  { %v699_v29 = vpop.xlane.xlu0 %698  ;;  %v812_v30 = vpop.xlane.xlu1 %811 }
 0x40d   :  { %v700_v33 = vsub.f32 %v696_v63, %v699_v29  ;;  %3502 = vpow2.f32 %v580_v28  ;;  %v813_v35 = vsub.f32 %v809_v0, %v812_v30  ;;  %v358_v63 = vsel %vm243_vm3, %v353_v26, 0 }
 0x40f   :  { %v701_v34 = vmul.f32 1.442695, %v700_v33  ;;  %v814_v36 = vmul.f32 1.442695, %v813_v35 }
 0x410   :  { %v929_v47 = vpop.xlane.xlu0 %928  ;;  %v1046_v50 = vpop.xlane.xlu1 %1045 }
 0x411   :  { %3504 = vpow2.f32 %v701_v34  ;;  %v930_v48 = vsub.f32 %v3861_v4, %v929_v47  ;;  %v1047_v51 = vsub.f32 %v3864_v5, %v1046_v50 }
 0x412   :  { %3506 = vpow2.f32 %v814_v36 }
 0x413   :  { %v931_v49 = vmul.f32 1.442695, %v930_v48  ;;  %v1048_v52 = vmul.f32 1.442695, %v1047_v51 }
 0x414   :  { %v471_v56 = vpop.permute.xlu0 %470 }
 0x415   :  { %3508 = vpow2.f32 %v931_v49 }
 0x416   :  { %v3501_v37 = vpop.eup %3500  ;;  %3510 = vpow2.f32 %v1048_v52 }
 0x417   :  { %v464_v38 = vsel %vm173_vm2, %v3501_v37, 0.0 }
 0x418   :  { %465 = vadd.xlane.f32.xlu0 %v464_v38 }
 0x41a   :  { %v3884_v39 = vpop.eup %3502 }
 0x41b   :  { %v582_v40 = vsel %vm173_vm2, %v3884_v39, 0.0 }
 0x41e   :  { %v3888_v43 = vpop.eup %3504 }
 0x41f   :  { %v703_v44 = vsel %vm173_vm2, %v3888_v43, 0.0  ;;  %v3892_v45 = vpop.eup %3506 }
 0x420   :  { %583 = vadd.xlane.f32.xlu1 %v582_v40  ;;  %v816_v46 = vsel %vm173_vm2, %v3892_v45, 0.0 }
 0x422   :  { %v3902_v53 = vpop.eup %3508 }
 0x423   :  { %v933_v54 = vsel %vm173_vm2, %v3902_v53, 0.0 }
 0x424   :  { %704 = vadd.xlane.f32.xlu1 %v703_v44 }
 0x428   :  { %817 = vadd.xlane.f32.xlu1 %v816_v46 }
 0x42e   :  { %588 = vrot.lane.b32.xlu0 %v3755_v41, %s3646_s21  ;;  %v3906_v41 = vpop.eup %3510 }
 0x42f   :  { %v1050_v55 = vsel %vm173_vm2, %v3906_v41, 0.0 }
 0x439   :  { %822 = vrot.lane.b32.xlu1 %v3770_v42, %s3644_s20 }
 0x44d   :  { %934 = vadd.xlane.f32.xlu0 %v933_v54 }
 0x45d   :  { %1051 = vadd.xlane.f32.xlu1 %v1050_v55 }
 0x463   :  { %939 = vrot.lane.b32.xlu0 %v3770_v42, %s3645_s0 }
 0x46c   :  { %v234_v58 = vpop.xlane.xlu0 %233 }
 0x46d   :  { %3512 = vrcp.f32 %v234_v58 }
 0x46e   :  { %1056 = vrot.lane.b32.xlu1 %v3770_v42, %s3646_s21  ;;  %v476_v42 = vsel %vm243_vm3, %v471_v56, 0 }
 0x474   :  { %v348_v59 = vpop.xlane.xlu1 %347 }
 0x475   :  { %3514 = vrcp.f32 %v348_v59 }
 0x478   :  { %v710_v5 = vpop.permute.xlu1 %709 }
 0x47a   :  { %v3513_v60 = vpop.eup %3512 }
 0x47b   :  { %v236_v61 = vmul.f32 %v3513_v60, %v3497_v20 }
 0x47d   :  { %v237_v62 = vpack.c.bf16 %v236_v61, %v236_v61 }
 0x47f   :  { %3183 = vmatmul.mubr.msk.bf16.vlgmr.msra.gmra.mxu0 %vm173_vm2, %v237_v62 }
 0x480   :  { %3193 = vmatpush3.bf16.msra.mxu0 %v358_v63  ;;  %3194 = vmatprep.mubr.msk.bf16.mxu0 %vm3635_vm1, %v3634_v15 }
 0x481   :  { %3204 = vmatprep.subr.bf16.mxu0 %v3634_v15 }
 0x482   :  { %v3515_v0 = vpop.eup %3514 }
 0x483   :  { %v350_v2 = vmul.f32 %v3515_v0, %v3877_v22  ;;  %v715_v22 = vsel %vm243_vm3, %v710_v5, 0 }
 0x485   :  { %v351_v3 = vpack.c.bf16 %v350_v2, %v350_v2 }
 0x487   :  { %3195 = vmatmul.mubr.msk.bf16.vlgmr.msra.gmra.mxu0 %vm173_vm2, %v351_v3 }
 0x488   :  { %3205 = vmatpush3.bf16.msra.mxu0 %v476_v42  ;;  %3206 = vmatprep.mubr.msk.bf16.mxu0 %vm3635_vm1, %v3634_v15 }
 0x489   :  { %3216 = vmatprep.subr.bf16.mxu0 %v3634_v15 }
 0x4a1   :  { %v466_v4 = vpop.xlane.xlu0 %465 }
 0x4a2   :  { %3516 = vrcp.f32 %v466_v4 }
 0x4a5   :  { %v589_v12 = vpop.permute.xlu0 %588 }
 0x4a6   :  { %v594_v16 = vsel %vm243_vm3, %v589_v12, 0 }
 0x4a9   :  { %v584_v6 = vpop.xlane.xlu1 %583 }
 0x4aa   :  { %3518 = vrcp.f32 %v584_v6 }
 0x4ad   :  { %v705_v8 = vpop.xlane.xlu1 %704 }
 0x4ae   :  { %3520 = vrcp.f32 %v705_v8  ;;  %v3474_v8 = vld [vmem:[%s4397_s4 + $0x8] sm:$0xff]  }
 0x4af   :  { %v3517_v9 = vpop.eup %3516  ;;  %3271 = vmatpush3.bf16.msra.mxu1 %v3474_v8  ;;  %v2990_v8 = vld [vmem:[%s4402_s9 + $0x6] ss:$0 sm:$0xff] }
 0x4b0   :  { %v468_v10 = vmul.f32 %v3517_v9, %v3501_v37  ;;  %3272 = vmatprep.subr.bf16.mxu1 %v3634_v15 }
 0x4b1   :  { %v818_v14 = vpop.xlane.xlu1 %817 }
 0x4b2   :  { %v469_v13 = vpack.c.bf16 %v468_v10, %v468_v10  ;;  %3522 = vrcp.f32 %v818_v14  ;;  %v3475_v10 = vld [vmem:[%s4397_s4] sm:$0xff]  }
 0x4b3   :  { %3273 = vmatpush3.bf16.msra.mxu1 %v3475_v10 }
 0x4b4   :  { %3207 = vmatmul.mubr.msk.bf16.vlgmr.msra.gmra.mxu0 %vm173_vm2, %v469_v13  ;;  %3286 = vmatprep.subr.bf16.mxu1 %v3634_v15 }
 0x4b5   :  { %3217 = vmatpush3.bf16.msra.mxu0 %v594_v16  ;;  %3218 = vmatprep.mubr.msk.bf16.mxu0 %vm3635_vm1, %v3634_v15  ;;  %v823_v23 = vpop.permute.xlu1 %822 }
 0x4b6   :  { %3228 = vmatprep.subr.bf16.mxu0 %v3634_v15  ;;  %v828_v26 = vsel %vm243_vm3, %v823_v23, 0 }
 0x4b7   :  { %v3519_v17 = vpop.eup %3518 }
 0x4b8   :  { %v586_v18 = vmul.f32 %v3519_v17, %v3884_v39 }
 0x4ba   :  { %v587_v20 = vpack.c.bf16 %v586_v18, %v586_v18 }
 0x4bb   :  { %v3521_v21 = vpop.eup %3520 }
 0x4bc   :  { %3219 = vmatmul.mubr.msk.bf16.vlgmr.msra.gmra.mxu0 %vm173_vm2, %v587_v20  ;;  %v707_v11 = vmul.f32 %v3521_v21, %v3888_v43 }
 0x4bd   :  { %3229 = vmatpush3.bf16.msra.mxu0 %v715_v22  ;;  %3230 = vmatprep.mubr.msk.bf16.mxu0 %vm3635_vm1, %v3634_v15 }
 0x4be   :  { %3240 = vmatprep.subr.bf16.mxu0 %v3634_v15  ;;  %v708_v24 = vpack.c.bf16 %v707_v11, %v707_v11 }
 0x4bf   :  { %v3523_v25 = vpop.eup %3522 }
 0x4c0   :  { %v820_v19 = vmul.f32 %v3523_v25, %v3892_v45 }
 0x4c2   :  { %v821_v27 = vpack.c.bf16 %v820_v19, %v820_v19 }
 0x4c4   :  { %3231 = vmatmul.mubr.msk.bf16.vlgmr.msra.gmra.mxu0 %vm173_vm2, %v708_v24 }
 0x4c5   :  { %3241 = vmatpush3.bf16.msra.mxu0 %v828_v26  ;;  %3242 = vmatprep.mubr.msk.bf16.mxu0 %vm3635_vm1, %v3634_v15  ;;  %v2984_v26 = vld [vmem:[%s4402_s9 + $0x3] ss:$0 sm:$0xff] }
 0x4c6   :  { %3252 = vmatprep.subr.bf16.mxu0 %v3634_v15 }
 0x4cc   :  { %3243 = vmatmul.mubr.msk.bf16.vlgmr.msra.gmra.mxu0 %vm173_vm2, %v821_v27 }
 0x4cd   :  { %3254 = vmatprep.mubr.msk.bf16.mxu0 %vm3635_vm1, %v3634_v15 }
 0x4d6   :  { %v935_v28 = vpop.xlane.xlu0 %934 }
 0x4d7   :  { %3524 = vrcp.f32 %v935_v28 }
 0x4da   :  { %v940_v29 = vpop.permute.xlu0 %939 }
 0x4db   :  { %v945_v30 = vsel %vm243_vm3, %v940_v29, 0 }
 0x4dc   :  { %3253 = vmatpush3.bf16.msra.mxu0 %v945_v30 }
 0x4dd   :  { %3264 = vmatprep.subr.bf16.mxu0 %v3634_v15 }
 0x4e4   :  { %v3525_v33 = vpop.eup %3524 }
 0x4e5   :  { %v937_v34 = vmul.f32 %v3525_v33, %v3902_v53 }
 0x4e6   :  { %v1052_v35 = vpop.xlane.xlu1 %1051 }
 0x4e7   :  { %3526 = vrcp.f32 %v1052_v35  ;;  %v938_v36 = vpack.c.bf16 %v937_v34, %v937_v34 }
 0x4e9   :  { %3255 = vmatmul.mubr.msk.bf16.vlgmr.msra.gmra.mxu0 %vm173_vm2, %v938_v36 }
 0x4ea   :  { %v1057_v37 = vpop.permute.xlu1 %1056  ;;  %3266 = vmatprep.mubr.msk.bf16.mxu0 %vm3635_vm1, %v3634_v15 }
 0x4eb   :  { %v1062_v38 = vsel %vm243_vm3, %v1057_v37, 0 }
 0x4ec   :  { %3265 = vmatpush3.bf16.msra.mxu0 %v1062_v38 }
 0x4ed   :  { %3278 = vmatprep.subr.bf16.mxu0 %v3634_v15 }
 0x4f4   :  { %v3527_v39 = vpop.eup %3526 }
 0x4f5   :  { %v1054_v40 = vmul.f32 %v3527_v39, %v3906_v41 }
 0x4f7   :  { %v1055_v43 = vpack.c.bf16 %v1054_v40, %v1054_v40 }
 0x4f9   :  { %3267 = vmatmul.mubr.msk.bf16.vlgmr.msra.gmra.mxu0 %vm173_vm2, %v1055_v43 }
 0x4fa   :  { %3282 = vmatprep.mubr.msk.bf16.mxu0 %vm3635_vm1, %v3634_v15 }
 0x53f   :  { %v281_v44 = vpop.f32.mrf.mxu0 }
 0x540   :  { %287 = vst.msk [vmem:[#allocation2] sm:$0xff] %vm173_vm2, %v281_v44 }
 0x541   :  { %v3184_v45 = vpop.f32.mrf.mxu0 }
 0x543   :  { %v284_v46 = vpop.f32.mrf.mxu0 }
 0x545   :  { %v3185_v47 = vpop.f32.mrf.mxu0 }
 0x547   :  { %v394_v48 = vpop.f32.mrf.mxu0 }
 0x548   :  { %401 = vrot.lane.b32.xlu0 %v394_v48, %s3647_s22 }
 0x549   :  { %v3196_v49 = vpop.f32.mrf.mxu0 }
 0x54a   :  { %v3477_v49 = vld [vmem:[%s4398_s5] sm:$0xff]  }
 0x54b   :  { %v397_v50 = vpop.f32.mrf.mxu0 }
 0x54d   :  { %v3197_v51 = vpop.f32.mrf.mxu0 }
 0x574   :  { %v512_v52 = vpop.f32.mrf.mxu0 }
 0x575   :  { %519 = vrot.lane.b32.xlu0 %v512_v52, %s3648_s23 }
 0x576   :  { %v3208_v53 = vpop.f32.mrf.mxu0 }
 0x578   :  { %v515_v54 = vpop.f32.mrf.mxu0 }
 0x57a   :  { %v3209_v41 = vpop.f32.mrf.mxu0 }
 0x57c   :  { %v630_v55 = vpop.f32.mrf.mxu0 }
 0x57d   :  { %637 = vrot.lane.b32.xlu0 %v630_v55, %s4405_s24 }
 0x57e   :  { %v3220_v56 = vpop.f32.mrf.mxu0 }
 0x580   :  { %v633_v58 = vpop.f32.mrf.mxu0 }
 0x581   :  { %v2988_v58 = vld [vmem:[%s4402_s9 + $0x4] ss:$0 sm:$0xff] }
 0x582   :  { %v3221_v59 = vpop.f32.mrf.mxu0 }
 0x584   :  { %v751_v60 = vpop.f32.mrf.mxu0 }
 0x585   :  { %757 = vst.msk [vmem:[#allocation2 + $0x8] sm:$0xff] %vm173_vm2, %v751_v60 }
 0x586   :  { %v3232_v61 = vpop.f32.mrf.mxu0 }
 0x588   :  { %v754_v62 = vpop.f32.mrf.mxu0 }
 0x589   :  { %v2989_v62 = vld [vmem:[%s4402_s9 + $0x5] ss:$0 sm:$0xff] }
 0x58a   :  { %v3233_v63 = vpop.f32.mrf.mxu0 }
 0x58c   :  { %v864_v0 = vpop.f32.mrf.mxu0 }
 0x58d   :  { %871 = vrot.lane.b32.xlu1 %v864_v0, %s3647_s22 }
 0x58e   :  { %v3244_v2 = vpop.f32.mrf.mxu0 }
 0x590   :  { %v867_v3 = vpop.f32.mrf.mxu0 }
 0x592   :  { %v3245_v42 = vpop.f32.mrf.mxu0 }
 0x593   :  { %v3478_v42 = vld [vmem:[%s4399_s6 + $0x18] sm:$0xff]  }
 0x5a9   :  { %v981_v4 = vpop.f32.mrf.mxu0 }
 0x5aa   :  { %988 = vrot.lane.b32.xlu1 %v981_v4, %s3648_s23  ;;  %v3479_v4 = vld [vmem:[%s4399_s6 + $0x10] sm:$0xff]  }
 0x5ab   :  { %v3256_v5 = vpop.f32.mrf.mxu0 }
 0x5ac   :  { %v3480_v5 = vld [vmem:[%s4399_s6 + $0x8] sm:$0xff]  }
 0x5ad   :  { %v984_v6 = vpop.f32.mrf.mxu0 }
 0x5ae   :  { %v3481_v6 = vld [vmem:[%s4399_s6] sm:$0xff]  }
 0x5af   :  { %v3257_v9 = vpop.f32.mrf.mxu0 }
 0x5b9   :  { %v1098_v12 = vpop.f32.mrf.mxu0 }
 0x5ba   :  { %v402_v13 = vpop.permute.xlu0 %401  ;;  %1105 = vrot.lane.b32.xlu1 %v1098_v12, %s4405_s24 }
 0x5bb   :  { %405 = vst.msk [vmem:[#allocation2] sm:$0xff] %vm404_vm4, %v402_v13  ;;  %v3268_v14 = vpop.f32.mrf.mxu0 }
 0x5bd   :  { %v1101_v16 = vpop.f32.mrf.mxu0 }
 0x5bf   :  { %v3269_v17 = vpop.f32.mrf.mxu0 }
 0x5e7   :  { %v520_v18 = vpop.permute.xlu0 %519 }
 0x5e8   :  { %523 = vst.msk [vmem:[#allocation2] sm:$0xff] %vm522_vm5, %v520_v18 }
 0x5ef   :  { %v638_v20 = vpop.permute.xlu0 %637 }
 0x5f0   :  { %641 = vst.msk [vmem:[#allocation2] sm:$0xff] %vm640_vm6, %v638_v20 }
 0x5f7   :  { %v1109_v23 = vld [vmem:[#allocation2] sm:$0xff] }
 0x5ff   :  { %v872_v21 = vpop.permute.xlu1 %871 }
 0x600   :  { %874 = vst.msk [vmem:[#allocation2 + $0x8] sm:$0xff] %vm404_vm4, %v872_v21 }
 0x61c   :  { %v989_v22 = vpop.permute.xlu1 %988 }
 0x61d   :  { %991 = vst.msk [vmem:[#allocation2 + $0x8] sm:$0xff] %vm522_vm5, %v989_v22 }
 0x62c   :  { %v1106_v11 = vpop.permute.xlu1 %1105 }
 0x62d   :  { %1108 = vst.msk [vmem:[#allocation2 + $0x8] sm:$0xff] %vm640_vm6, %v1106_v11 }
 0x634   :  { %v1110_v24 = vld [vmem:[#allocation2 + $0x8] sm:$0xff] }
 0x635   :  { %v1111_v25 = vpack.c.bf16 %v1110_v24, %v1109_v23 }
 0x637   :  { %3275 = vmatmul.mubr.msk.bf16.vlgmr.msra.gmra.mxu1 %vm44_vm0, %v1111_v25 }
 0x638   :  { %3294 = vmatprep.mubr.msk.bf16.mxu1 %vm3635_vm1, %v3634_v15  ;;  %3287 = vmatpush3.bf16.msra.mxu1 %v3478_v42 }
 0x639   :  { %3288 = vmatprep.subr.bf16.mxu1 %v3634_v15 }
 0x63c   :  { %3289 = vmatpush3.bf16.msra.mxu1 %v3479_v4  ;;  %v3000_v4 = vld [vmem:[%s4402_s9 + $0x8] ss:$0 sm:$0xff] }
 0x63d   :  { %3290 = vmatprep.subr.bf16.mxu1 %v3634_v15 }
 0x640   :  { %3291 = vmatpush3.bf16.msra.mxu1 %v3480_v5 }
 0x641   :  { %3292 = vmatprep.subr.bf16.mxu1 %v3634_v15 }
 0x644   :  { %3293 = vmatpush3.bf16.msra.mxu1 %v3481_v6 }
 0x645   :  { %3312 = vmatprep.subr.bf16.mxu1 %v3634_v15 }
 0x6f7   :  { %v1166_v19 = vpop.f32.mrf.mxu1 }
 0x6f8   :  { %v1167_v27 = vadd.f32 %v2984_v26, %v1166_v19 }
 0x6f9   :  { %v3276_v28 = vpop.f32.mrf.mxu1 }
 0x6fa   :  { %v1173_v29 = vadd.f32 %v1167_v27, %v3743_v31 }
 0x6fb   :  { %v1169_v30 = vpop.f32.mrf.mxu1 }
 0x6fc   :  { %v1170_v33 = vadd.f32 %v2984_v26, %v1169_v30  ;;  %v1177_v34 = vsel %vm44_vm0, %v1173_v29, 0.0 }
 0x6fd   :  { %1178 = vadd.xlane.f32.xlu0 %v1177_v34  ;;  %v3277_v35 = vpop.f32.mrf.mxu1 }
 0x6fe   :  { %v1174_v36 = vadd.f32 %v1170_v33, %v3745_v32  ;;  %v3476_v32 = vld [vmem:[%s4398_s5 + $0x8] sm:$0xff]  }
 0x6ff   :  { %3279 = vmatpush3.bf16.msra.mxu0 %v3476_v32 }
 0x700   :  { %v1180_v37 = vsel %vm44_vm0, %v1174_v36, 0.0  ;;  %3280 = vmatprep.subr.bf16.mxu0 %v3634_v15 }
 0x701   :  { %1181 = vadd.xlane.f32.xlu1 %v1180_v37  ;;  %v2994_v37 = vld [vmem:[%s4402_s9 + $0x7] ss:$0 sm:$0xff] }
 0x703   :  { %3281 = vmatpush3.bf16.msra.mxu0 %v3477_v49 }
 0x704   :  { %3298 = vmatprep.subr.bf16.mxu0 %v3634_v15 }
 0x786   :  { %v1179_v38 = vpop.xlane.xlu0 %1178 }
 0x787   :  { %v1183_v39 = vmul.f32 0.03125, %v1179_v38 }
 0x789   :  { %v1185_v40 = vsub.f32 %v1173_v29, %v1183_v39 }
 0x78a   :  { %v1182_v43 = vpop.xlane.xlu1 %1181 }
 0x78b   :  { %v1184_v44 = vmul.f32 0.03125, %v1182_v43  ;;  %v1187_v45 = vmul.f32 %v1185_v40, %v1185_v40 }
 0x78d   :  { %v1186_v46 = vsub.f32 %v1174_v36, %v1184_v44  ;;  %v1189_v31 = vsel %vm44_vm0, %v1187_v45, 0.0 }
 0x78e   :  { %1190 = vadd.xlane.f32.xlu0 %v1189_v31 }
 0x78f   :  { %v1188_v47 = vmul.f32 %v1186_v46, %v1186_v46 }
 0x791   :  { %v1192_v48 = vsel %vm44_vm0, %v1188_v47, 0.0 }
 0x792   :  { %1193 = vadd.xlane.f32.xlu0 %v1192_v48 }
 0x817   :  { %v1191_v50 = vpop.xlane.xlu0 %1190 }
 0x818   :  { %v1195_v51 = vmul.f32 0.03125, %v1191_v50 }
 0x81a   :  { %v1197_v52 = vadd.f32 1e-12, %v1195_v51 }
 0x81b   :  { %v1194_v53 = vpop.xlane.xlu0 %1193 }
 0x81c   :  { %3528 = vrsqrt.f32 %v1197_v52  ;;  %v1196_v54 = vmul.f32 0.03125, %v1194_v53 }
 0x81e   :  { %v1198_v41 = vadd.f32 1e-12, %v1196_v54 }
 0x820   :  { %3530 = vrsqrt.f32 %v1198_v41 }
 0x829   :  { %v3529_v55 = vpop.eup %3528 }
 0x82a   :  { %v1201_v56 = vmul.f32 %v3529_v55, %v1185_v40 }
 0x82c   :  { %v1207_v61 = vmul.f32 %v2988_v58, %v1201_v56 }
 0x82d   :  { %v3531_v59 = vpop.eup %3530 }
 0x82e   :  { %v1202_v60 = vmul.f32 %v3531_v59, %v1186_v46  ;;  %v1213_v0 = vadd.f32 %v2989_v62, %v1207_v61  ;;  %v3483_v59 = vld [vmem:[%s4396_s3 + $0x10] sm:$0xff]  }
 0x830   :  { %v1208_v63 = vmul.f32 %v2988_v58, %v1202_v60  ;;  %v3482_v58 = vld [vmem:[%s4396_s3 + $0x18] sm:$0xff]  }
 0x832   :  { %v1214_v2 = vadd.f32 %v2989_v62, %v1208_v63 }
 0x834   :  { %v1215_v3 = vpack.c.bf16 %v1214_v2, %v1213_v0 }
 0x836   :  { %3283 = vmatmul.mubr.msk.bf16.vlgmr.msra.gmra.mxu0 %vm44_vm0, %v1215_v3 }
 0x837   :  { %3302 = vmatprep.mubr.msk.bf16.mxu0 %vm3635_vm1, %v3634_v15  ;;  %3299 = vmatpush3.bf16.msra.mxu0 %v3482_v58 }
 0x838   :  { %3300 = vmatprep.subr.bf16.mxu0 %v3634_v15 }
 0x83b   :  { %3301 = vmatpush3.bf16.msra.mxu0 %v3483_v59 }
 0x83c   :  { %3306 = vmatprep.subr.bf16.mxu0 %v3634_v15 }
 0x8f6   :  { %v1270_v9 = vpop.f32.mrf.mxu0 }
 0x8f7   :  { %v1271_v10 = vadd.f32 %v2990_v8, %v1270_v9  ;;  %v3001_v9 = vld [vmem:[%s4402_s9 + $0x9] ss:$0 sm:$0xff] }
 0x8f8   :  { %v3284_v12 = vpop.f32.mrf.mxu0 }
 0x8f9   :  { %v1279_v13 = vmul.f32 0.044715, %v1271_v10  ;;  %v1277_v29 = vmul.f32 0.5, %v1271_v10 }
 0x8fa   :  { %v1273_v14 = vpop.f32.mrf.mxu0 }
 0x8fb   :  { %v1281_v16 = vmul.f32 %v1279_v13, %v1271_v10  ;;  %v1274_v17 = vadd.f32 %v2990_v8, %v1273_v14 }
 0x8fc   :  { %v3285_v18 = vpop.f32.mrf.mxu0 }
 0x8fd   :  { %v1283_v20 = vmul.f32 %v1281_v16, %v1271_v10  ;;  %v1280_v21 = vmul.f32 0.044715, %v1274_v17  ;;  %v1278_v30 = vmul.f32 0.5, %v1274_v17 }
 0x8ff   :  { %v1285_v22 = vadd.f32 %v1283_v20, %v1271_v10  ;;  %v1282_v11 = vmul.f32 %v1280_v21, %v1274_v17 }
 0x901   :  { %v1287_v23 = vmul.f32 0.7978846, %v1285_v22  ;;  %v1284_v24 = vmul.f32 %v1282_v11, %v1274_v17 }
 0x903   :  { %3532 = vtanh.f32 %v1287_v23  ;;  %v1286_v25 = vadd.f32 %v1284_v24, %v1274_v17  ;;  %v3022_v17 = vld [vmem:[%s4402_s9 + $0xa] ss:$0 sm:$0xff] }
 0x905   :  { %v1288_v26 = vmul.f32 0.7978846, %v1286_v25 }
 0x907   :  { %3534 = vtanh.f32 %v1288_v26 }
 0x910   :  { %v3533_v19 = vpop.eup %3532 }
 0x911   :  { %v1291_v27 = vadd.f32 1.0, %v3533_v19 }
 0x913   :  { %v1293_v34 = vmul.f32 %v1291_v27, %v1277_v29 }
 0x914   :  { %v3535_v28 = vpop.eup %3534 }
 0x915   :  { %v1292_v33 = vadd.f32 1.0, %v3535_v28 }
 0x917   :  { %v1294_v35 = vmul.f32 %v1292_v33, %v1278_v30 }
 0x919   :  { %v1295_v36 = vpack.c.bf16 %v1294_v35, %v1293_v34 }
 0x91b   :  { %3295 = vmatmul.mubr.msk.bf16.vlgmr.msra.gmra.mxu1 %vm1325_vm7, %v1295_v36 }
 0x91c   :  { %3314 = vmatprep.mubr.msk.bf16.mxu1 %vm3635_vm1, %v3634_v15 }
 0x9db   :  { %v1363_v38 = vpop.f32.mrf.mxu1 }
 0x9dc   :  { %v1364_v39 = vadd.f32 %v2994_v37, %v1363_v38 }
 0x9dd   :  { %v3296_v40 = vpop.f32.mrf.mxu1 }
 0x9de   :  { %v1370_v43 = vadd.f32 %v1364_v39, %v1213_v0 }
 0x9df   :  { %v1366_v44 = vpop.f32.mrf.mxu1 }
 0x9e0   :  { %v1367_v45 = vadd.f32 %v2994_v37, %v1366_v44  ;;  %v1374_v46 = vsel %vm44_vm0, %v1370_v43, 0.0 }
 0x9e1   :  { %1375 = vadd.xlane.f32.xlu0 %v1374_v46  ;;  %v3297_v31 = vpop.f32.mrf.mxu1 }
 0x9e2   :  { %v1371_v47 = vadd.f32 %v1367_v45, %v1214_v2 }
 0x9e4   :  { %v1377_v48 = vsel %vm44_vm0, %v1371_v47, 0.0 }
 0x9e5   :  { %1378 = vadd.xlane.f32.xlu1 %v1377_v48 }
 0xa6a   :  { %v1376_v32 = vpop.xlane.xlu0 %1375 }
 0xa6b   :  { %v1380_v49 = vmul.f32 0.03125, %v1376_v32 }
 0xa6d   :  { %v1382_v50 = vsub.f32 %v1370_v43, %v1380_v49 }
 0xa6e   :  { %v1379_v51 = vpop.xlane.xlu1 %1378 }
 0xa6f   :  { %v1381_v52 = vmul.f32 0.03125, %v1379_v51  ;;  %v1384_v53 = vmul.f32 %v1382_v50, %v1382_v50 }
 0xa71   :  { %v1383_v54 = vsub.f32 %v1371_v47, %v1381_v52  ;;  %v1386_v41 = vsel %vm44_vm0, %v1384_v53, 0.0 }
 0xa72   :  { %1387 = vadd.xlane.f32.xlu0 %v1386_v41 }
 0xa73   :  { %v1385_v55 = vmul.f32 %v1383_v54, %v1383_v54 }
 0xa75   :  { %v1389_v56 = vsel %vm44_vm0, %v1385_v55, 0.0 }
 0xa76   :  { %1390 = vadd.xlane.f32.xlu1 %v1389_v56 }
 0xafb   :  { %v1388_v60 = vpop.xlane.xlu0 %1387 }
 0xafc   :  { %v1392_v61 = vmul.f32 0.03125, %v1388_v60 }
 0xafe   :  { %v1394_v62 = vadd.f32 1e-12, %v1392_v61 }
 0xaff   :  { %v1391_v63 = vpop.xlane.xlu1 %1390 }
 0xb00   :  { %3536 = vrsqrt.f32 %v1394_v62  ;;  %v1393_v0 = vmul.f32 0.03125, %v1391_v63 }
 0xb02   :  { %v1395_v2 = vadd.f32 1e-12, %v1393_v0 }
 0xb04   :  { %3538 = vrsqrt.f32 %v1395_v2 }
 0xb0d   :  { %v3537_v3 = vpop.eup %3536 }
 0xb0e   :  { %v1398_v42 = vmul.f32 %v3537_v3, %v1382_v50 }
 0xb10   :  { %v1404_v8 = vmul.f32 %v3000_v4, %v1398_v42 }
 0xb11   :  { %v3539_v5 = vpop.eup %3538 }
 0xb12   :  { %v1399_v6 = vmul.f32 %v3539_v5, %v1383_v54  ;;  %v4052_v12 = vadd.f32 %v3001_v9, %v1404_v8 }
 0xb14   :  { %v1405_v10 = vmul.f32 %v3000_v4, %v1399_v6 }
 0xb16   :  { %v4054_v13 = vadd.f32 %v3001_v9, %v1405_v10 }
 0xb18   :  { %v1436_v14 = vpack.c.bf16 %v4054_v13, %v4052_v12 }
 0xb1a   :  { %3303 = vmatmul.mubr.msk.bf16.vlgmr.msra.gmra.mxu0 %vm44_vm0, %v1436_v14 }
 0xb1b   :  { %3308 = vmatprep.mubr.msk.bf16.mxu0 %vm3635_vm1, %v3634_v15 }
 0xbda   :  { %v1491_v16 = vpop.f32.mrf.mxu0 }
 0xbdb   :  { %v1492_v21 = vadd.f32 %v3022_v17, %v1491_v16 }
 0xbdc   :  { %v3304_v18 = vpop.f32.mrf.mxu0 }
 0xbde   :  { %v1494_v20 = vpop.f32.mrf.mxu0 }
 0xbdf   :  { %v1495_v22 = vadd.f32 %v3022_v17, %v1494_v20 }
 0xbe0   :  { %v3305_v11 = vpop.f32.mrf.mxu0 }
 0xbe1   :  { %v4064_v23 = vpack.c.bf16 %v1495_v22, %v1492_v21 }
 0xbe3   :  { %1613 = vrot.lane.b32.xlu1 %v4064_v23, %s3636_s30  ;;  %1500 = vrot.lane.b32.xlu0 %v4064_v23, %s3637_s12  ;;  %v4079_v24 = vrot.slane %v4064_v23, 4 }
 0xbe7   :  { %1611 = vrot.lane.b32.xlu1 %v4064_v23, %s3638_s13  ;;  %1728 = vrot.lane.b32.xlu0 %v4064_v23, %s3639_s14 }
 0xbeb   :  { %1730 = vrot.lane.b32.xlu1 %v4064_v23, %s3640_s15  ;;  %1845 = vrot.lane.b32.xlu0 %v4064_v23, %s3641_s16 }
 0xbef   :  { %1847 = vrot.lane.b32.xlu1 %v4064_v23, %s3642_s17  ;;  %2076 = vrot.lane.b32.xlu0 %v4079_v24, %s3636_s30  ;;  %s4407_s30 = smov 24  }
 0xbf3   :  { %2193 = vrot.lane.b32.xlu0 %v4079_v24, %s3640_s15  ;;  %1963 = vrot.lane.b32.xlu1 %v4079_v24, %s3637_s12 }
 0xbf7   :  { %2310 = vrot.lane.b32.xlu0 %v4079_v24, %s3642_s17  ;;  %2074 = vrot.lane.b32.xlu1 %v4079_v24, %s3638_s13 }
 0xbfb   :  { %2191 = vrot.lane.b32.xlu1 %v4079_v24, %s3639_s14 }
 0xbff   :  { %2308 = vrot.lane.b32.xlu1 %v4079_v24, %s3641_s16 }
 0xc55   :  { %v1501_v25 = vpop.permute.xlu0 %1500  ;;  %v1614_v19 = vpop.permute.xlu1 %1613 }
 0xc56   :  { %v1506_v26 = vsel %vm173_vm2, %v1501_v25, 0  ;;  %v1619_v28 = vsel %vm173_vm2, %v1614_v19, 0 }
 0xc57   :  { %3307 = vmatpush3.bf16.xpose.msra.mxu0 %v1506_v26 }
 0xc58   :  { %3318 = vmatprep.subr.bf16.mxu0 %v3634_v15 }
 0xc59   :  { %v1612_v27 = vpop.permute.xlu1 %1611  ;;  %v1729_v34 = vpop.permute.xlu0 %1728 }
 0xc5d   :  { %v1731_v29 = vpop.permute.xlu1 %1730  ;;  %v1846_v37 = vpop.permute.xlu0 %1845 }
 0xc5e   :  { %3309 = vmatmul.mubr.msk.bf16.vlgmr.msra.gmra.mxu0 %vm173_vm2, %v4064_v23  ;;  %v1736_v30 = vsel %vm173_vm2, %v1731_v29, 0 }
 0xc5f   :  { %3319 = vmatpush3.bf16.xpose.msra.mxu0 %v1619_v28  ;;  %3320 = vmatprep.mubr.msk.bf16.mxu0 %vm3635_vm1, %v3634_v15 }
 0xc60   :  { %3330 = vmatprep.subr.bf16.mxu0 %v3634_v15 }
 0xc61   :  { %v1848_v33 = vpop.permute.xlu1 %1847  ;;  %v2077_v39 = vpop.permute.xlu0 %2076 }
 0xc62   :  { %v1853_v35 = vsel %vm173_vm2, %v1848_v33, 0  ;;  %v2082_v40 = vsel %vm173_vm2, %v2077_v39, 0 }
 0xc65   :  { %v1964_v36 = vpop.permute.xlu1 %1963  ;;  %v2194_v43 = vpop.permute.xlu0 %2193 }
 0xc66   :  { %3321 = vmatmul.mubr.msk.bf16.vlgmr.msra.gmra.mxu0 %vm173_vm2, %v1612_v27  ;;  %v1969_v38 = vsel %vm173_vm2, %v1964_v36, 0  ;;  %v2199_v45 = vsel %vm173_vm2, %v2194_v43, 0 }
 0xc67   :  { %3331 = vmatpush3.bf16.xpose.msra.mxu0 %v1736_v30  ;;  %3332 = vmatprep.mubr.msk.bf16.mxu0 %vm3635_vm1, %v3634_v15 }
 0xc68   :  { %3342 = vmatprep.subr.bf16.mxu0 %v3634_v15 }
 0xc69   :  { %v2075_v44 = vpop.permute.xlu1 %2074  ;;  %v2311_v46 = vpop.permute.xlu0 %2310 }
 0xc6a   :  { %v2316_v47 = vsel %vm173_vm2, %v2311_v46, 0 }
 0xc6d   :  { %v2192_v31 = vpop.permute.xlu1 %2191 }
 0xc6e   :  { %3333 = vmatmul.mubr.msk.bf16.vlgmr.msra.gmra.mxu0 %vm173_vm2, %v1729_v34 }
 0xc6f   :  { %3343 = vmatpush3.bf16.xpose.msra.mxu0 %v1853_v35  ;;  %3344 = vmatprep.mubr.msk.bf16.mxu0 %vm3635_vm1, %v3634_v15 }
 0xc70   :  { %3354 = vmatprep.subr.bf16.mxu0 %v3634_v15 }
 0xc71   :  { %v2309_v48 = vpop.permute.xlu1 %2308 }
 0xc76   :  { %3345 = vmatmul.mubr.msk.bf16.vlgmr.msra.gmra.mxu0 %vm173_vm2, %v1846_v37 }
 0xc77   :  { %3355 = vmatpush3.bf16.xpose.msra.mxu0 %v1969_v38  ;;  %3356 = vmatprep.mubr.msk.bf16.mxu0 %vm3635_vm1, %v3634_v15 }
 0xc78   :  { %3366 = vmatprep.subr.bf16.mxu0 %v3634_v15 }
 0xc7e   :  { %3357 = vmatmul.mubr.msk.bf16.vlgmr.msra.gmra.mxu0 %vm173_vm2, %v4079_v24 }
 0xc7f   :  { %3367 = vmatpush3.bf16.xpose.msra.mxu0 %v2082_v40  ;;  %3368 = vmatprep.mubr.msk.bf16.mxu0 %vm3635_vm1, %v3634_v15 }
 0xc80   :  { %3378 = vmatprep.subr.bf16.mxu0 %v3634_v15 }
 0xc86   :  { %3369 = vmatmul.mubr.msk.bf16.vlgmr.msra.gmra.mxu0 %vm173_vm2, %v2075_v44 }
 0xc87   :  { %3379 = vmatpush3.bf16.xpose.msra.mxu0 %v2199_v45  ;;  %3380 = vmatprep.mubr.msk.bf16.mxu0 %vm3635_vm1, %v3634_v15 }
 0xc88   :  { %3390 = vmatprep.subr.bf16.mxu0 %v3634_v15 }
 0xc8e   :  { %3381 = vmatmul.mubr.msk.bf16.vlgmr.msra.gmra.mxu0 %vm173_vm2, %v2192_v31 }
 0xc8f   :  { %3391 = vmatpush3.bf16.xpose.msra.mxu0 %v2316_v47  ;;  %3392 = vmatprep.mubr.msk.bf16.mxu0 %vm3635_vm1, %v3634_v15 }
 0xc90   :  { %3402 = vmatprep.subr.bf16.mxu0 %v3634_v15 }
 0xc96   :  { %3393 = vmatmul.mubr.msk.bf16.vlgmr.msra.gmra.mxu0 %vm173_vm2, %v2309_v48 }
 0xc97   :  { %3406 = vmatprep.mubr.msk.bf16.mxu0 %vm3635_vm1, %v3634_v15 }
 0xd1e   :  { %v1542_v32 = vpop.f32.mrf.mxu0 }
 0xd1f   :  { %v1548_v49 = vmul.f32 0.35355338, %v1542_v32 }
 0xd20   :  { %v3310_v50 = vpop.f32.mrf.mxu0 }
 0xd21   :  { %v4140_v51 = vadd.f32 %v1548_v49, %v3834_v7 }
 0xd22   :  { %v1545_v52 = vpop.f32.mrf.mxu0 }
 0xd23   :  { %v1550_v53 = vsel %vm173_vm2, %v4140_v51, -inf }
 0xd24   :  { %1551 = vmax.xlane.f32.xlu0 %v1550_v53  ;;  %v3311_v54 = vpop.f32.mrf.mxu0 }
 0xd26   :  { %v1655_v41 = vpop.f32.mrf.mxu0 }
 0xd27   :  { %v1661_v55 = vmul.f32 0.35355338, %v1655_v41 }
 0xd28   :  { %v3322_v56 = vpop.f32.mrf.mxu0 }
 0xd29   :  { %v4145_v58 = vadd.f32 %v1661_v55, %v3834_v7 }
 0xd2a   :  { %v1658_v59 = vpop.f32.mrf.mxu0 }
 0xd2b   :  { %v1663_v60 = vsel %vm173_vm2, %v4145_v58, -inf }
 0xd2c   :  { %1664 = vmax.xlane.f32.xlu1 %v1663_v60  ;;  %v3323_v61 = vpop.f32.mrf.mxu0 }
 0xd2e   :  { %v1772_v62 = vpop.f32.mrf.mxu0 }
 0xd2f   :  { %v1778_v21 = vmul.f32 0.35355338, %v1772_v62 }
 0xd30   :  { %v3334_v63 = vpop.f32.mrf.mxu0 }
 0xd31   :  { %v1779_v19 = vadd.f32 %v1778_v21, %v3834_v7 }
 0xd32   :  { %v1775_v0 = vpop.f32.mrf.mxu0 }
 0xd33   :  { %v1780_v34 = vsel %vm173_vm2, %v1779_v19, -inf }
 0xd34   :  { %v3335_v2 = vpop.f32.mrf.mxu0 }
 0xd36   :  { %v1889_v3 = vpop.f32.mrf.mxu0 }
 0xd37   :  { %v1895_v25 = vmul.f32 0.35355338, %v1889_v3 }
 0xd38   :  { %v3346_v42 = vpop.f32.mrf.mxu0 }
 0xd39   :  { %v1896_v28 = vadd.f32 %v1895_v25, %v3834_v7 }
 0xd3a   :  { %1562 = vrot.lane.b32.xlu0 %v4064_v23, %s3643_s1  ;;  %v1892_v4 = vpop.f32.mrf.mxu0 }
 0xd3b   :  { %v1897_v36 = vsel %vm173_vm2, %v1896_v28, -inf }
 0xd3c   :  { %v3347_v5 = vpop.f32.mrf.mxu0 }
 0xd3d   :  { %1675 = vrot.lane.b32.xlu1 %v4064_v23, %s3644_s20 }
 0xd3e   :  { %v2005_v6 = vpop.f32.mrf.mxu0 }
 0xd3f   :  { %v2011_v29 = vmul.f32 0.35355338, %v2005_v6 }
 0xd40   :  { %v3358_v8 = vpop.f32.mrf.mxu0 }
 0xd41   :  { %v2012_v40 = vadd.f32 %v2011_v29, %v3853_v57 }
 0xd42   :  { %v2008_v9 = vpop.f32.mrf.mxu0 }
 0xd43   :  { %v2013_v44 = vsel %vm173_vm2, %v2012_v40, -inf }
 0xd44   :  { %v3359_v10 = vpop.f32.mrf.mxu0 }
 0xd46   :  { %v2118_v14 = vpop.f32.mrf.mxu0 }
 0xd47   :  { %v2124_v30 = vmul.f32 0.35355338, %v2118_v14 }
 0xd48   :  { %v3370_v16 = vpop.f32.mrf.mxu0 }
 0xd49   :  { %v2125_v43 = vadd.f32 %v2124_v30, %v3853_v57 }
 0xd4a   :  { %v2121_v17 = vpop.f32.mrf.mxu0 }
 0xd4b   :  { %v2126_v7 = vsel %vm173_vm2, %v2125_v43, -inf }
 0xd4c   :  { %v3371_v18 = vpop.f32.mrf.mxu0 }
 0xd4e   :  { %v2235_v20 = vpop.f32.mrf.mxu0 }
 0xd4f   :  { %v2241_v37 = vmul.f32 0.35355338, %v2235_v20 }
 0xd50   :  { %v3382_v22 = vpop.f32.mrf.mxu0 }
 0xd51   :  { %v2242_v45 = vadd.f32 %v2241_v37, %v3853_v57 }
 0xd52   :  { %v2238_v11 = vpop.f32.mrf.mxu0 }
 0xd53   :  { %v2243_v31 = vsel %vm173_vm2, %v2242_v45, -inf }
 0xd54   :  { %v3383_v26 = vpop.f32.mrf.mxu0 }
 0xd56   :  { %v2352_v27 = vpop.f32.mrf.mxu0 }
 0xd57   :  { %v2358_v38 = vmul.f32 0.35355338, %v2352_v27 }
 0xd58   :  { %v3394_v33 = vpop.f32.mrf.mxu0 }
 0xd59   :  { %1781 = vmax.xlane.f32.xlu0 %v1780_v34  ;;  %v4163_v46 = vadd.f32 %v2358_v38, %v3853_v57 }
 0xd5a   :  { %v2355_v35 = vpop.f32.mrf.mxu0 }
 0xd5b   :  { %v2360_v47 = vsel %vm173_vm2, %v4163_v46, -inf }
 0xd5c   :  { %v3395_v39 = vpop.f32.mrf.mxu0 }
 0xd5d   :  { %1898 = vmax.xlane.f32.xlu0 %v1897_v36 }
 0xd61   :  { %2014 = vmax.xlane.f32.xlu0 %v2013_v44  ;;  %2127 = vmax.xlane.f32.xlu1 %v2126_v7 }
 0xd65   :  { %2244 = vmax.xlane.f32.xlu0 %v2243_v31  ;;  %2361 = vmax.xlane.f32.xlu1 %v2360_v47 }
 0xd7b   :  { %1792 = vrot.lane.b32.xlu0 %v4064_v23, %s3645_s0 }
 0xdad   :  { %v1552_v48 = vpop.xlane.xlu0 %1551 }
 0xdae   :  { %v1553_v32 = vsub.f32 %v4140_v51, %v1552_v48 }
 0xdb0   :  { %v1554_v49 = vmul.f32 1.442695, %v1553_v32 }
 0xdb1   :  { %v1563_v50 = vpop.permute.xlu0 %1562 }
 0xdb2   :  { %3540 = vpow2.f32 %v1554_v49  ;;  %v1568_v57 = vsel %vm243_vm3, %v1563_v50, 0 }
 0xdb3   :  { %3313 = vmatpush3.bf16.msra.mxu1 %v1568_v57 }
 0xdb4   :  { %3324 = vmatprep.subr.bf16.mxu1 %v3634_v15 }
 0xdb5   :  { %v1665_v52 = vpop.xlane.xlu1 %1664 }
 0xdb6   :  { %v1666_v53 = vsub.f32 %v4145_v58, %v1665_v52 }
 0xdb8   :  { %v1667_v54 = vmul.f32 1.442695, %v1666_v53 }
 0xdb9   :  { %v1676_v62 = vpop.permute.xlu1 %1675 }
 0xdba   :  { %3542 = vpow2.f32 %v1667_v54  ;;  %v1681_v38 = vsel %vm243_vm3, %v1676_v62, 0 }
 0xdbf   :  { %v3541_v41 = vpop.eup %3540 }
 0xdc0   :  { %v1556_v55 = vsel %vm173_vm2, %v3541_v41, 0.0 }
 0xdc1   :  { %1557 = vadd.xlane.f32.xlu0 %v1556_v55 }
 0xdc7   :  { %v4175_v56 = vpop.eup %3542 }
 0xdc8   :  { %v1669_v51 = vsel %vm173_vm2, %v4175_v56, 0.0 }
 0xdc9   :  { %1670 = vadd.xlane.f32.xlu1 %v1669_v51 }
 0xdda   :  { %2025 = vrot.lane.b32.xlu1 %v4079_v24, %s3643_s1 }
 0xde2   :  { %v1782_v59 = vpop.xlane.xlu0 %1781 }
 0xde3   :  { %v1783_v60 = vsub.f32 %v1779_v19, %v1782_v59 }
 0xde5   :  { %v1784_v61 = vmul.f32 1.442695, %v1783_v60 }
 0xde6   :  { %v1899_v58 = vpop.xlane.xlu0 %1898 }
 0xde7   :  { %3544 = vpow2.f32 %v1784_v61  ;;  %v1900_v63 = vsub.f32 %v1896_v28, %v1899_v58 }
 0xde9   :  { %v1901_v0 = vmul.f32 1.442695, %v1900_v63 }
 0xdea   :  { %v2015_v2 = vpop.xlane.xlu0 %2014  ;;  %v2128_v3 = vpop.xlane.xlu1 %2127 }
 0xdeb   :  { %v2016_v42 = vsub.f32 %v2012_v40, %v2015_v2  ;;  %3546 = vpow2.f32 %v1901_v0  ;;  %v2129_v5 = vsub.f32 %v2125_v43, %v2128_v3 }
 0xded   :  { %v2017_v4 = vmul.f32 1.442695, %v2016_v42  ;;  %v2130_v6 = vmul.f32 1.442695, %v2129_v5 }
 0xdee   :  { %v2245_v21 = vpop.xlane.xlu0 %2244  ;;  %v2362_v25 = vpop.xlane.xlu1 %2361 }
 0xdef   :  { %3548 = vpow2.f32 %v2017_v4  ;;  %v2246_v22 = vsub.f32 %v2242_v45, %v2245_v21  ;;  %v2363_v26 = vsub.f32 %v4163_v46, %v2362_v25 }
 0xdf0   :  { %3550 = vpow2.f32 %v2130_v6 }
 0xdf1   :  { %v2247_v11 = vmul.f32 1.442695, %v2246_v22  ;;  %v2364_v19 = vmul.f32 1.442695, %v2363_v26 }
 0xdf2   :  { %v1793_v30 = vpop.permute.xlu0 %1792 }
 0xdf3   :  { %3552 = vpow2.f32 %v2247_v11 }
 0xdf4   :  { %v3545_v8 = vpop.eup %3544  ;;  %3554 = vpow2.f32 %v2364_v19 }
 0xdf5   :  { %v1786_v9 = vsel %vm173_vm2, %v3545_v8, 0.0 }
 0xdf6   :  { %1787 = vadd.xlane.f32.xlu0 %v1786_v9 }
 0xdf8   :  { %v4182_v10 = vpop.eup %3546 }
 0xdf9   :  { %v1903_v14 = vsel %vm173_vm2, %v4182_v10, 0.0 }
 0xdfc   :  { %v4186_v16 = vpop.eup %3548 }
 0xdfd   :  { %v2019_v17 = vsel %vm173_vm2, %v4186_v16, 0.0  ;;  %v4190_v18 = vpop.eup %3550 }
 0xdfe   :  { %1904 = vadd.xlane.f32.xlu1 %v1903_v14  ;;  %v2132_v20 = vsel %vm173_vm2, %v4190_v18, 0.0 }
 0xe00   :  { %v4199_v27 = vpop.eup %3552 }
 0xe01   :  { %v2249_v28 = vsel %vm173_vm2, %v4199_v27, 0.0  ;;  %v4203_v29 = vpop.eup %3554 }
 0xe02   :  { %2020 = vadd.xlane.f32.xlu1 %v2019_v17 }
 0xe06   :  { %2133 = vadd.xlane.f32.xlu1 %v2132_v20 }
 0xe0c   :  { %1909 = vrot.lane.b32.xlu0 %v4064_v23, %s3646_s21  ;;  %v2366_v23 = vsel %vm173_vm2, %v4203_v29, 0.0 }
 0xe17   :  { %2138 = vrot.lane.b32.xlu1 %v4079_v24, %s3644_s20 }
 0xe2b   :  { %2250 = vadd.xlane.f32.xlu0 %v2249_v28 }
 0xe3b   :  { %2367 = vadd.xlane.f32.xlu1 %v2366_v23 }
 0xe41   :  { %2255 = vrot.lane.b32.xlu0 %v4079_v24, %s3645_s0 }
 0xe4a   :  { %v1558_v33 = vpop.xlane.xlu0 %1557 }
 0xe4b   :  { %3556 = vrcp.f32 %v1558_v33 }
 0xe4c   :  { %2372 = vrot.lane.b32.xlu1 %v4079_v24, %s3646_s21  ;;  %v1798_v24 = vsel %vm243_vm3, %v1793_v30, 0 }
 0xe52   :  { %v1671_v34 = vpop.xlane.xlu1 %1670 }
 0xe53   :  { %3558 = vrcp.f32 %v1671_v34 }
 0xe56   :  { %v2026_v7 = vpop.permute.xlu1 %2025 }
 0xe58   :  { %v3557_v35 = vpop.eup %3556 }
 0xe59   :  { %v1560_v36 = vmul.f32 %v3557_v35, %v3541_v41  ;;  %v2031_v41 = vsel %vm243_vm3, %v2026_v7, 0  ;;  %v3484_v7 = vld [vmem:[%s4397_s4 + $0x18] sm:$0xff]  }
 0xe5a   :  { %3403 = vmatpush3.bf16.msra.mxu0 %v3484_v7 }
 0xe5b   :  { %v1561_v37 = vpack.c.bf16 %v1560_v36, %v1560_v36  ;;  %3404 = vmatprep.subr.bf16.mxu0 %v3634_v15 }
 0xe5d   :  { %3315 = vmatmul.mubr.msk.bf16.vlgmr.msra.gmra.mxu1 %vm173_vm2, %v1561_v37 }
 0xe5e   :  { %3325 = vmatpush3.bf16.msra.mxu1 %v1681_v38  ;;  %3326 = vmatprep.mubr.msk.bf16.mxu1 %vm3635_vm1, %v3634_v15 }
 0xe5f   :  { %3336 = vmatprep.subr.bf16.mxu1 %v3634_v15 }
 0xe60   :  { %v3559_v39 = vpop.eup %3558 }
 0xe61   :  { %v1673_v40 = vmul.f32 %v3559_v39, %v4175_v56 }
 0xe63   :  { %v1674_v43 = vpack.c.bf16 %v1673_v40, %v1673_v40 }
 0xe65   :  { %3327 = vmatmul.mubr.msk.bf16.vlgmr.msra.gmra.mxu1 %vm173_vm2, %v1674_v43 }
 0xe66   :  { %3337 = vmatpush3.bf16.msra.mxu1 %v1798_v24  ;;  %3338 = vmatprep.mubr.msk.bf16.mxu1 %vm3635_vm1, %v3634_v15 }
 0xe67   :  { %3348 = vmatprep.subr.bf16.mxu1 %v3634_v15 }
 0xe7f   :  { %v1788_v44 = vpop.xlane.xlu0 %1787 }
 0xe80   :  { %3560 = vrcp.f32 %v1788_v44 }
 0xe83   :  { %v1910_v48 = vpop.permute.xlu0 %1909 }
 0xe84   :  { %v1915_v50 = vsel %vm243_vm3, %v1910_v48, 0 }
 0xe87   :  { %v1905_v45 = vpop.xlane.xlu1 %1904 }
 0xe88   :  { %3562 = vrcp.f32 %v1905_v45 }
 0xe8b   :  { %v2021_v46 = vpop.xlane.xlu1 %2020 }
 0xe8c   :  { %3564 = vrcp.f32 %v2021_v46  ;;  %v3485_v46 = vld [vmem:[%s4397_s4 + $0x10] sm:$0xff]  }
 0xe8d   :  { %v3561_v31 = vpop.eup %3560  ;;  %3405 = vmatpush3.bf16.msra.mxu0 %v3485_v46 }
 0xe8e   :  { %v1790_v47 = vmul.f32 %v3561_v31, %v3545_v8  ;;  %3418 = vmatprep.subr.bf16.mxu0 %v3634_v15 }
 0xe8f   :  { %v2134_v49 = vpop.xlane.xlu1 %2133 }
 0xe90   :  { %v1791_v32 = vpack.c.bf16 %v1790_v47, %v1790_v47  ;;  %3566 = vrcp.f32 %v2134_v49 }
 0xe92   :  { %3339 = vmatmul.mubr.msk.bf16.vlgmr.msra.gmra.mxu1 %vm173_vm2, %v1791_v32 }
 0xe93   :  { %3349 = vmatpush3.bf16.msra.mxu1 %v1915_v50  ;;  %3350 = vmatprep.mubr.msk.bf16.mxu1 %vm3635_vm1, %v3634_v15  ;;  %v2139_v56 = vpop.permute.xlu1 %2138 }
 0xe94   :  { %3360 = vmatprep.subr.bf16.mxu1 %v3634_v15  ;;  %v2144_v60 = vsel %vm243_vm3, %v2139_v56, 0 }
 0xe95   :  { %v3563_v57 = vpop.eup %3562 }
 0xe96   :  { %v1907_v52 = vmul.f32 %v3563_v57, %v4182_v10 }
 0xe98   :  { %v1908_v53 = vpack.c.bf16 %v1907_v52, %v1907_v52 }
 0xe99   :  { %v3565_v54 = vpop.eup %3564 }
 0xe9a   :  { %3351 = vmatmul.mubr.msk.bf16.vlgmr.msra.gmra.mxu1 %vm173_vm2, %v1908_v53  ;;  %v2023_v55 = vmul.f32 %v3565_v54, %v4186_v16 }
 0xe9b   :  { %3361 = vmatpush3.bf16.msra.mxu1 %v2031_v41  ;;  %3362 = vmatprep.mubr.msk.bf16.mxu1 %vm3635_vm1, %v3634_v15 }
 0xe9c   :  { %3372 = vmatprep.subr.bf16.mxu1 %v3634_v15  ;;  %v2024_v51 = vpack.c.bf16 %v2023_v55, %v2023_v55 }
 0xe9d   :  { %v3567_v59 = vpop.eup %3566 }
 0xe9e   :  { %v2136_v61 = vmul.f32 %v3567_v59, %v4190_v18 }
 0xea0   :  { %v2137_v62 = vpack.c.bf16 %v2136_v61, %v2136_v61 }
 0xea2   :  { %3363 = vmatmul.mubr.msk.bf16.vlgmr.msra.gmra.mxu1 %vm173_vm2, %v2024_v51  ;;  %v3042_v51 = vld [vmem:[%s4402_s9 + $0xb] ss:$0 sm:$0xff] }
 0xea3   :  { %3373 = vmatpush3.bf16.msra.mxu1 %v2144_v60  ;;  %3374 = vmatprep.mubr.msk.bf16.mxu1 %vm3635_vm1, %v3634_v15 }
 0xea4   :  { %3384 = vmatprep.subr.bf16.mxu1 %v3634_v15 }
 0xeaa   :  { %3375 = vmatmul.mubr.msk.bf16.vlgmr.msra.gmra.mxu1 %vm173_vm2, %v2137_v62 }
 0xeab   :  { %3386 = vmatprep.mubr.msk.bf16.mxu1 %vm3635_vm1, %v3634_v15 }
 0xeb4   :  { %v2251_v58 = vpop.xlane.xlu0 %2250 }
 0xeb5   :  { %3568 = vrcp.f32 %v2251_v58 }
 0xeb8   :  { %v2256_v63 = vpop.permute.xlu0 %2255 }
 0xeb9   :  { %v2261_v0 = vsel %vm243_vm3, %v2256_v63, 0 }
 0xeba   :  { %3385 = vmatpush3.bf16.msra.mxu1 %v2261_v0 }
 0xebb   :  { %3396 = vmatprep.subr.bf16.mxu1 %v3634_v15 }
 0xec2   :  { %v3569_v2 = vpop.eup %3568 }
 0xec3   :  { %v2253_v3 = vmul.f32 %v3569_v2, %v4199_v27 }
 0xec4   :  { %v2368_v42 = vpop.xlane.xlu1 %2367 }
 0xec5   :  { %3570 = vrcp.f32 %v2368_v42  ;;  %v2254_v4 = vpack.c.bf16 %v2253_v3, %v2253_v3 }
 0xec7   :  { %3387 = vmatmul.mubr.msk.bf16.vlgmr.msra.gmra.mxu1 %vm173_vm2, %v2254_v4 }
 0xec8   :  { %v2373_v5 = vpop.permute.xlu1 %2372  ;;  %3398 = vmatprep.mubr.msk.bf16.mxu1 %vm3635_vm1, %v3634_v15 }
 0xec9   :  { %v2378_v6 = vsel %vm243_vm3, %v2373_v5, 0 }
 0xeca   :  { %3397 = vmatpush3.bf16.msra.mxu1 %v2378_v6 }
 0xecb   :  { %3410 = vmatprep.subr.bf16.mxu1 %v3634_v15 }
 0xed2   :  { %v3571_v8 = vpop.eup %3570 }
 0xed3   :  { %v2370_v9 = vmul.f32 %v3571_v8, %v4203_v29 }
 0xed5   :  { %v2371_v10 = vpack.c.bf16 %v2370_v9, %v2370_v9 }
 0xed7   :  { %3399 = vmatmul.mubr.msk.bf16.vlgmr.msra.gmra.mxu1 %vm173_vm2, %v2371_v10 }
 0xed8   :  { %3414 = vmatprep.mubr.msk.bf16.mxu1 %vm3635_vm1, %v3634_v15 }
 0xf1d   :  { %v1604_v14 = vpop.f32.mrf.mxu1 }
 0xf1e   :  { %1610 = vst.msk [vmem:[#allocation2] sm:$0xff] %vm173_vm2, %v1604_v14 }
 0xf1f   :  { %v3316_v16 = vpop.f32.mrf.mxu1 }
 0xf21   :  { %v1607_v17 = vpop.f32.mrf.mxu1 }
 0xf23   :  { %v3317_v18 = vpop.f32.mrf.mxu1 }
 0xf24   :  { %v3487_v18 = vld [vmem:[%s4398_s5 + $0x10] sm:$0xff]  }
 0xf25   :  { %v1717_v20 = vpop.f32.mrf.mxu1 }
 0xf26   :  { %1724 = vrot.lane.b32.xlu0 %v1717_v20, %s3647_s22 }
 0xf27   :  { %v3328_v21 = vpop.f32.mrf.mxu1 }
 0xf29   :  { %v1720_v22 = vpop.f32.mrf.mxu1 }
 0xf2b   :  { %v3329_v11 = vpop.f32.mrf.mxu1 }
 0xf52   :  { %v1834_v25 = vpop.f32.mrf.mxu1 }
 0xf53   :  { %1841 = vrot.lane.b32.xlu0 %v1834_v25, %s3648_s23 }
 0xf54   :  { %v3340_v26 = vpop.f32.mrf.mxu1 }
 0xf56   :  { %v1837_v19 = vpop.f32.mrf.mxu1 }
 0xf58   :  { %v3341_v27 = vpop.f32.mrf.mxu1 }
 0xf5a   :  { %v1951_v28 = vpop.f32.mrf.mxu1 }
 0xf5b   :  { %1958 = vrot.lane.b32.xlu0 %v1951_v28, %s4407_s30  ;;  %v3046_v28 = vld [vmem:[%s4402_s9 + $0xc] ss:$0 sm:$0xff] }
 0xf5c   :  { %v3352_v29 = vpop.f32.mrf.mxu1 }
 0xf5e   :  { %v1954_v23 = vpop.f32.mrf.mxu1 }
 0xf60   :  { %v3353_v30 = vpop.f32.mrf.mxu1 }
 0xf62   :  { %v2067_v33 = vpop.f32.mrf.mxu1 }
 0xf63   :  { %2073 = vst.msk [vmem:[#allocation2 + $0x8] sm:$0xff] %vm173_vm2, %v2067_v33  ;;  %v3047_v33 = vld [vmem:[%s4402_s9 + $0xd] ss:$0 sm:$0xff] }
 0xf64   :  { %v3364_v34 = vpop.f32.mrf.mxu1 }
 0xf66   :  { %v2070_v35 = vpop.f32.mrf.mxu1 }
 0xf68   :  { %v3365_v36 = vpop.f32.mrf.mxu1 }
 0xf6a   :  { %v2180_v37 = vpop.f32.mrf.mxu1 }
 0xf6b   :  { %2187 = vrot.lane.b32.xlu1 %v2180_v37, %s3647_s22 }
 0xf6c   :  { %v3376_v38 = vpop.f32.mrf.mxu1 }
 0xf6d   :  { %v3488_v38 = vld [vmem:[%s4399_s6 + $0x38] sm:$0xff]  }
 0xf6e   :  { %v2183_v39 = vpop.f32.mrf.mxu1 }
 0xf6f   :  { %v3489_v39 = vld [vmem:[%s4399_s6 + $0x30] sm:$0xff]  }
 0xf70   :  { %v3377_v40 = vpop.f32.mrf.mxu1 }
 0xf71   :  { %v3490_v40 = vld [vmem:[%s4399_s6 + $0x28] sm:$0xff]  }
 0xf87   :  { %v2297_v43 = vpop.f32.mrf.mxu1 }
 0xf88   :  { %2304 = vrot.lane.b32.xlu1 %v2297_v43, %s3648_s23  ;;  %v3491_v43 = vld [vmem:[%s4399_s6 + $0x20] sm:$0xff]  }
 0xf89   :  { %v3388_v24 = vpop.f32.mrf.mxu1 }
 0xf8a   :  { %v3048_v24 = vld [vmem:[%s4402_s9 + $0xe] ss:$0 sm:$0xff] }
 0xf8b   :  { %v2300_v44 = vpop.f32.mrf.mxu1 }
 0xf8d   :  { %v3389_v45 = vpop.f32.mrf.mxu1 }
 0xf97   :  { %v2414_v31 = vpop.f32.mrf.mxu1 }
 0xf98   :  { %v1725_v47 = vpop.permute.xlu0 %1724  ;;  %2421 = vrot.lane.b32.xlu1 %v2414_v31, %s4407_s30 }
 0xf99   :  { %1727 = vst.msk [vmem:[#allocation2] sm:$0xff] %vm404_vm4, %v1725_v47  ;;  %v3400_v48 = vpop.f32.mrf.mxu1 }
 0xf9b   :  { %v2417_v32 = vpop.f32.mrf.mxu1 }
 0xf9d   :  { %v3401_v49 = vpop.f32.mrf.mxu1 }
 0xfc5   :  { %v1842_v50 = vpop.permute.xlu0 %1841 }
 0xfc6   :  { %1844 = vst.msk [vmem:[#allocation2] sm:$0xff] %vm522_vm5, %v1842_v50 }
 0xfcd   :  { %v1959_v57 = vpop.permute.xlu0 %1958 }
 0xfce   :  { %1961 = vst.msk [vmem:[#allocation2] sm:$0xff] %vm640_vm6, %v1959_v57 }
 0xfd5   :  { %v2425_v41 = vld [vmem:[#allocation2] sm:$0xff] }
 0xfdd   :  { %v2188_v52 = vpop.permute.xlu1 %2187 }
 0xfde   :  { %2190 = vst.msk [vmem:[#allocation2 + $0x8] sm:$0xff] %vm404_vm4, %v2188_v52 }
 0xffa   :  { %v2305_v53 = vpop.permute.xlu1 %2304 }
 0xffb   :  { %2307 = vst.msk [vmem:[#allocation2 + $0x8] sm:$0xff] %vm522_vm5, %v2305_v53 }
0x100a   :  { %v2422_v54 = vpop.permute.xlu1 %2421 }
0x100b   :  { %2424 = vst.msk [vmem:[#allocation2 + $0x8] sm:$0xff] %vm640_vm6, %v2422_v54 }
0x1012   :  { %v2426_v55 = vld [vmem:[#allocation2 + $0x8] sm:$0xff] }
0x1013   :  { %v2427_v56 = vpack.c.bf16 %v2426_v55, %v2425_v41 }
0x1015   :  { %3407 = vmatmul.mubr.msk.bf16.vlgmr.msra.gmra.mxu0 %vm44_vm0, %v2427_v56 }
0x1016   :  { %3426 = vmatprep.mubr.msk.bf16.mxu0 %vm3635_vm1, %v3634_v15  ;;  %3419 = vmatpush3.bf16.msra.mxu0 %v3488_v38  ;;  %v3058_v38 = vld [vmem:[%s4402_s9 + $0x10] ss:$0 sm:$0xff] }
0x1017   :  { %3420 = vmatprep.subr.bf16.mxu0 %v3634_v15 }
0x101a   :  { %3421 = vmatpush3.bf16.msra.mxu0 %v3489_v39 }
0x101b   :  { %3422 = vmatprep.subr.bf16.mxu0 %v3634_v15 }
0x101e   :  { %3423 = vmatpush3.bf16.msra.mxu0 %v3490_v40  ;;  %v3059_v40 = vld [vmem:[%s4402_s9 + $0x11] ss:$0 sm:$0xff] }
0x101f   :  { %3424 = vmatprep.subr.bf16.mxu0 %v3634_v15 }
0x1022   :  { %3425 = vmatpush3.bf16.msra.mxu0 %v3491_v43 }
0x10d5   :  { %v2482_v59 = vpop.f32.mrf.mxu0 }
0x10d6   :  { %v2483_v60 = vadd.f32 %v3042_v51, %v2482_v59 }
0x10d7   :  { %v3408_v61 = vpop.f32.mrf.mxu0 }
0x10d8   :  { %v2489_v62 = vadd.f32 %v2483_v60, %v4052_v12 }
0x10d9   :  { %v2485_v58 = vpop.f32.mrf.mxu0 }
0x10da   :  { %v2486_v63 = vadd.f32 %v3042_v51, %v2485_v58  ;;  %v2493_v0 = vsel %vm44_vm0, %v2489_v62, 0.0 }
0x10db   :  { %2494 = vadd.xlane.f32.xlu0 %v2493_v0  ;;  %v3409_v2 = vpop.f32.mrf.mxu0 }
0x10dc   :  { %v2490_v3 = vadd.f32 %v2486_v63, %v4054_v13  ;;  %v3486_v13 = vld [vmem:[%s4398_s5 + $0x18] sm:$0xff]   ;;  %v3052_v2 = vld [vmem:[%s4402_s9 + $0xf] ss:$0 sm:$0xff] }
0x10dd   :  { %3411 = vmatpush3.bf16.msra.mxu1 %v3486_v13 }
0x10de   :  { %v2496_v42 = vsel %vm44_vm0, %v2490_v3, 0.0  ;;  %3412 = vmatprep.subr.bf16.mxu1 %v3634_v15 }
0x10df   :  { %2497 = vadd.xlane.f32.xlu1 %v2496_v42 }
0x10e1   :  { %3413 = vmatpush3.bf16.msra.mxu1 %v3487_v18 }
0x10e2   :  { %3430 = vmatprep.subr.mxu1 %v3634_v15 }
0x1164   :  { %v2495_v4 = vpop.xlane.xlu0 %2494 }
0x1165   :  { %v2499_v5 = vmul.f32 0.03125, %v2495_v4 }
0x1167   :  { %v2501_v6 = vsub.f32 %v2489_v62, %v2499_v5 }
0x1168   :  { %v2498_v8 = vpop.xlane.xlu1 %2497 }
0x1169   :  { %v2500_v9 = vmul.f32 0.03125, %v2498_v8  ;;  %v2503_v10 = vmul.f32 %v2501_v6, %v2501_v6 }
0x116b   :  { %v2502_v14 = vsub.f32 %v2490_v3, %v2500_v9  ;;  %v2505_v12 = vsel %vm44_vm0, %v2503_v10, 0.0 }
0x116c   :  { %2506 = vadd.xlane.f32.xlu0 %v2505_v12 }
0x116d   :  { %v2504_v16 = vmul.f32 %v2502_v14, %v2502_v14 }
0x116f   :  { %v2508_v17 = vsel %vm44_vm0, %v2504_v16, 0.0 }
0x1170   :  { %2509 = vadd.xlane.f32.xlu0 %v2508_v17 }
0x11f5   :  { %v2507_v20 = vpop.xlane.xlu0 %2506 }
0x11f6   :  { %v2511_v21 = vmul.f32 0.03125, %v2507_v20 }
0x11f8   :  { %v2513_v22 = vadd.f32 1e-12, %v2511_v21 }
0x11f9   :  { %v2510_v11 = vpop.xlane.xlu0 %2509 }
0x11fa   :  { %3572 = vrsqrt.f32 %v2513_v22  ;;  %v2512_v25 = vmul.f32 0.03125, %v2510_v11 }
0x11fc   :  { %v2514_v26 = vadd.f32 1e-12, %v2512_v25 }
0x11fe   :  { %3574 = vrsqrt.f32 %v2514_v26 }
0x1207   :  { %v3573_v19 = vpop.eup %3572 }
0x1208   :  { %v2517_v27 = vmul.f32 %v3573_v19, %v2501_v6  ;;  %v2734_v19 = vld [vmem:[%s4400_s7 + $0x18] sm:$0xff] }
0x120a   :  { %v2523_v30 = vmul.f32 %v3046_v28, %v2517_v27  ;;  %v2733_v27 = vld [vmem:[%s4400_s7 + $0x10] sm:$0xff] }
0x120b   :  { %v3575_v29 = vpop.eup %3574 }
0x120c   :  { %v2518_v23 = vmul.f32 %v3575_v29, %v2502_v14  ;;  %v2529_v35 = vadd.f32 %v3047_v33, %v2523_v30  ;;  %v2731_v29 = vld [vmem:[%s4400_s7] sm:$0xff] }
0x120e   :  { %v2524_v34 = vmul.f32 %v3046_v28, %v2518_v23  ;;  %v2732_v28 = vld [vmem:[%s4400_s7 + $0x8] sm:$0xff] }
0x1210   :  { %v2530_v36 = vadd.f32 %v3047_v33, %v2524_v34 }
0x1212   :  { %v2531_v37 = vpack.c.bf16 %v2530_v36, %v2529_v35 }
0x1214   :  { %3415 = vmatmul.mubr.msk.bf16.vlgmr.msra.gmra.mxu1 %vm44_vm0, %v2531_v37 }
0x1215   :  { %3438 = vmatprep.mubr.msk.f32.mxu1 %vm3635_vm1, %v3634_v15  ;;  %3431 = vmatpush3.msra.mxu1 %v2734_v19 }
0x1216   :  { %3432 = vmatprep.subr.mxu1 %v3634_v15 }
0x1217   :  { %3433 = vmatpush3.msra.mxu1 %v2733_v27 }
0x1218   :  { %3434 = vmatprep.subr.mxu1 %v3634_v15 }
0x1219   :  { %3435 = vmatpush3.msra.mxu1 %v2732_v28 }
0x121a   :  { %3436 = vmatprep.subr.mxu1 %v3634_v15 }
0x121b   :  { %3437 = vmatpush3.msra.mxu1 %v2731_v29 }
0x121c   :  { %3441 = vmatprep.subr.mxu1 %v3634_v15 }
0x12d4   :  { %v2586_v44 = vpop.f32.mrf.mxu1 }
0x12d5   :  { %v2587_v7 = vadd.f32 %v3048_v24, %v2586_v44 }
0x12d6   :  { %v3416_v45 = vpop.f32.mrf.mxu1 }
0x12d7   :  { %v2595_v46 = vmul.f32 0.044715, %v2587_v7  ;;  %v2593_v60 = vmul.f32 0.5, %v2587_v7 }
0x12d8   :  { %v2589_v31 = vpop.f32.mrf.mxu1 }
0x12d9   :  { %v2597_v47 = vmul.f32 %v2595_v46, %v2587_v7  ;;  %v2590_v48 = vadd.f32 %v3048_v24, %v2589_v31 }
0x12da   :  { %v3417_v32 = vpop.f32.mrf.mxu1 }
0x12db   :  { %v2599_v49 = vmul.f32 %v2597_v47, %v2587_v7  ;;  %v2596_v50 = vmul.f32 0.044715, %v2590_v48  ;;  %v2594_v61 = vmul.f32 0.5, %v2590_v48  ;;  %v2817_v47 = vld [vmem:[%s4401_s8 + $0x18] sm:$0xff]  ;;  %v2815_v32 = vld [vmem:[%s4401_s8 + $0x8] sm:$0xff] }
0x12dd   :  { %v2601_v57 = vadd.f32 %v2599_v49, %v2587_v7  ;;  %v2598_v52 = vmul.f32 %v2596_v50, %v2590_v48  ;;  %v2814_v49 = vld [vmem:[%s4401_s8] sm:$0xff]  ;;  %v3060_v50 = vld [vmem:[%s4402_s9 + $0x12] ss:$0 sm:$0xff] }
0x12df   :  { %v2603_v53 = vmul.f32 0.7978846, %v2601_v57  ;;  %v2600_v54 = vmul.f32 %v2598_v52, %v2590_v48 }
0x12e1   :  { %3576 = vtanh.f32 %v2603_v53  ;;  %v2602_v41 = vadd.f32 %v2600_v54, %v2590_v48  ;;  %v2816_v48 = vld [vmem:[%s4401_s8 + $0x10] sm:$0xff] }
0x12e3   :  { %v2604_v55 = vmul.f32 0.7978846, %v2602_v41  ;;  %v3650_v41 = vmov 0  }
0x12e4   :  { %3471 = vset.pattern.permute.xlu0 %v3650_v41 }
0x12e5   :  { %3578 = vtanh.f32 %v2604_v55  ;;  %v3062_v55 = vld [vmem:[%s4402_s9 + $0x13] ss:$0 sm:$0xff]  ;;  %s3651_s9 = smov [#allocation4]  }
0x12e6   :  { %s2940_s12 = sshll.u32 %s3651_s9, 4  ;;  %s2941_s12 = int_to_ptr.vmem [resolvable:$true] %s2940_s12 }
0x12e7   :  { %p3595_p1 = scmp.lt.s32.totalorder %s2941_s12, %s2941_s12 }
0x12ee   :  { %v3577_v56 = vpop.eup %3576 }
0x12ef   :  { %v2607_v51 = vadd.f32 1.0, %v3577_v56 }
0x12f1   :  { %v2609_v58 = vmul.f32 %v2607_v51, %v2593_v60  ;;  %v2912_v60 = vld [vmem:[%s4395_s2] sm:$0x3]  ;;  %s3590_s2 = scalar_lea.vmem %s2941_s12, 32 }
0x12f2   :  { %v3579_v59 = vpop.eup %3578  ;;  %p3591_p0 = scmp.ne.s32.totalorder %s2941_s12, %s3590_s2  ;;  %p3596_p2 = scmp.lt.s32.totalorder %s3590_s2, %s3590_s2 }
0x12f3   :  { %v2608_v62 = vadd.f32 1.0, %v3579_v59 }
0x12f4   :  { %p3597_p3 = por %p3596_p2, %p3595_p1 }
0x12f5   :  { %v2610_v63 = vmul.f32 %v2608_v62, %v2594_v61 }
0x12f6   :  { %p3598_p4 = pnand %p3597_p3, %p3591_p0 }
0x12f7   :  { %v2611_v0 = vpack.c.bf16 %v2610_v63, %v2609_v58  ;;  %v2911_v63 = vand.u32 127, %v221_v1 }
0x12f9   :  { %3427 = vmatmul.mubr.msk.bf16.vlgmr.msra.gmra.mxu0 %vm1325_vm7, %v2611_v0 }
0x13b9   :  { %v2678_v3 = vpop.f32.mrf.mxu0 }
0x13ba   :  { %v2679_v42 = vadd.f32 %v3052_v2, %v2678_v3 }
0x13bb   :  { %v3428_v4 = vpop.f32.mrf.mxu0 }
0x13bc   :  { %v2685_v5 = vadd.f32 %v2679_v42, %v2529_v35 }
0x13bd   :  { %v2681_v6 = vpop.f32.mrf.mxu0 }
0x13be   :  { %v2682_v8 = vadd.f32 %v3052_v2, %v2681_v6  ;;  %v2689_v9 = vsel %vm44_vm0, %v2685_v5, 0.0 }
0x13bf   :  { %2690 = vadd.xlane.f32.xlu0 %v2689_v9  ;;  %v3429_v10 = vpop.f32.mrf.mxu0 }
0x13c0   :  { %v2686_v14 = vadd.f32 %v2682_v8, %v2530_v36 }
0x13c2   :  { %v2692_v12 = vsel %vm44_vm0, %v2686_v14, 0.0 }
0x13c3   :  { %2693 = vadd.xlane.f32.xlu1 %v2692_v12 }
0x1448   :  { %v2691_v16 = vpop.xlane.xlu0 %2690 }
0x1449   :  { %v2695_v17 = vmul.f32 0.03125, %v2691_v16 }
0x144b   :  { %v2697_v13 = vsub.f32 %v2685_v5, %v2695_v17 }
0x144c   :  { %v2694_v18 = vpop.xlane.xlu1 %2693 }
0x144d   :  { %v2696_v20 = vmul.f32 0.03125, %v2694_v18  ;;  %v2699_v21 = vmul.f32 %v2697_v13, %v2697_v13 }
0x144f   :  { %v2698_v22 = vsub.f32 %v2686_v14, %v2696_v20  ;;  %v2701_v11 = vsel %vm44_vm0, %v2699_v21, 0.0 }
0x1450   :  { %2702 = vadd.xlane.f32.xlu0 %v2701_v11 }
0x1451   :  { %v2700_v25 = vmul.f32 %v2698_v22, %v2698_v22 }
0x1453   :  { %v2704_v26 = vsel %vm44_vm0, %v2700_v25, 0.0 }
0x1454   :  { %2705 = vadd.xlane.f32.xlu1 %v2704_v26 }
0x14d9   :  { %v2703_v23 = vpop.xlane.xlu0 %2702 }
0x14da   :  { %v2707_v30 = vmul.f32 0.03125, %v2703_v23 }
0x14dc   :  { %v2709_v33 = vadd.f32 1e-12, %v2707_v30 }
0x14dd   :  { %v2706_v34 = vpop.xlane.xlu1 %2705 }
0x14de   :  { %3580 = vrsqrt.f32 %v2709_v33  ;;  %v2708_v35 = vmul.f32 0.03125, %v2706_v34 }
0x14e0   :  { %v2710_v36 = vadd.f32 1e-12, %v2708_v35 }
0x14e2   :  { %3582 = vrsqrt.f32 %v2710_v36 }
0x14eb   :  { %v3581_v37 = vpop.eup %3580 }
0x14ec   :  { %v2713_v39 = vmul.f32 %v3581_v37, %v2697_v13 }
0x14ee   :  { %v2719_v43 = vmul.f32 %v3058_v38, %v2713_v39 }
0x14ef   :  { %v3583_v24 = vpop.eup %3582 }
0x14f0   :  { %v2725_v44 = vadd.f32 %v3059_v40, %v2719_v43  ;;  %v2714_v7 = vmul.f32 %v3583_v24, %v2698_v22 }
0x14f2   :  { %2728 = vst.msk [vmem:[#allocation3] sm:$0x1] %vm2727_vm8, %v2725_v44  ;;  %v2720_v45 = vmul.f32 %v3058_v38, %v2714_v7 }
0x14f4   :  { %v2726_v46 = vadd.f32 %v3059_v40, %v2720_v45 }
0x14f6   :  { %2729 = vst.msk [vmem:[#allocation3 + $0x1] sm:$0x1] %vm2727_vm8, %v2726_v46 }
0x14fd   :  { %v2730_v31 = vld [vmem:[#allocation3] sm:$0x3] }
0x14fe   :  { %3439 = vmatmul.mubr.msk.f32.vlgmr.msra.gmra.mxu1 %vm44_vm0, %v2730_v31 }
0x14ff   :  { %3449 = vmatprep.mubr.msk.f32.mxu1 %vm3635_vm1, %v3634_v15  ;;  %3442 = vmatpush3.msra.mxu1 %v2817_v47 }
0x1500   :  { %3443 = vmatprep.subr.mxu1 %v3634_v15 }
0x1501   :  { %3444 = vmatpush3.msra.mxu1 %v2816_v48 }
0x1502   :  { %3445 = vmatprep.subr.mxu1 %v3634_v15 }
0x1503   :  { %3446 = vmatpush3.msra.mxu1 %v2815_v32 }
0x1504   :  { %3447 = vmatprep.subr.mxu1 %v3634_v15 }
0x1505   :  { %3448 = vmatpush3.msra.mxu1 %v2814_v49 }
0x15be   :  { %v2809_v57 = vpop.f32.mrf.mxu1 }
0x15bf   :  { %v2810_v52 = vadd.f32 %v3060_v50, %v2809_v57 }
0x15c0   :  { %v3440_v53 = vpop.f32.mrf.mxu1 }
0x15c1   :  { %3584 = vtanh.f32 %v2810_v52 }
0x15ce   :  { %v3585_v54 = vpop.eup %3584 }
0x15cf   :  { %3450 = vmatmul.mubr.msk.f32.vlgmr.msra.gmra.mxu1 %vm44_vm0, %v3585_v54 }
0x168f   :  { %v2892_v56 = vpop.f32.mrf.mxu1 }
0x1690   :  { %v2893_v15 = vadd.f32 %v3062_v55, %v2892_v56 }
0x1691   :  { %v3451_v51 = vpop.f32.mrf.mxu1 }
0x1692   :  { %v2898_v59 = vsel %vm2896_vm9, %v2893_v15, -inf  ;;  %2897 = vst.msk [vmem:[#allocation4] sm:$0x3] %vm2896_vm9, %v2893_v15 }
0x1693   :  { %2899 = vmax.xlane.f32.xlu0 %v2898_v59 }
0x16a9   :  { %2914 = vperm.xlu0 %3471, %v2912_v60  }
0x171c   :  { %v2900_v61 = vpop.xlane.xlu0 %2899 }
0x171d   :  { %v2901_v62 = vsub.f32 %v2893_v15, %v2900_v61 }
0x171f   :  { %v2902_v58 = vmul.f32 1.442695, %v2901_v62 }
0x1721   :  { %3586 = vpow2.f32 %v2902_v58 }
0x1724   :  { %v2915_v0 = vpop.permute.xlu0 %2914 }
0x1725   :  { %vm2916_vm10 = vcmp.eq.s32.totalorder %v2911_v63, %v2915_v0 }
0x1726   :  { %v2917_v42 = vsel %vm2916_vm10, %v2893_v15, 0.0 }
0x1727   :  { %v2918_v4 = vsel %vm2896_vm9, %v2917_v42, 0.0 }
0x172e   :  { %v3587_v2 = vpop.eup %3586 }
0x172f   :  { %v2904_v3 = vsel %vm2896_vm9, %v3587_v2, 0.0 }
0x1730   :  { %2905 = vadd.xlane.f32.xlu1 %v2904_v3 }
0x1734   :  { %2919 = vadd.xlane.f32.xlu1 %v2918_v4 }
0x1735   :  { %3601 = shalt.err (!%p3598_p4)
}
0x1736   :  { %2943 = dma.vmem_to_hbm [thread:$0]  %s2941_s12, 32, %s4403_s10, [#allocation5]   ;;  %vm2922_vm11 = vcmask 1041408   ;;  %vm2932_vm12 = vcmask 0  }
0x1737   :  { %s3652_s15 = smov [#allocation6]  }
0x1738   :  { %s2950_s4 = sshll.u32 %s3652_s15, 4  ;;  %s2951_s4 = int_to_ptr.vmem [resolvable:$true] %s2950_s4 }
0x1739   :  { %s3610_s10 = scalar_lea.vmem %s2951_s4, 16  ;;  %s3614_s16 = scalar_lea.vmem %s2951_s4, 32 }
0x173a   :  { %p3611_p5 = scmp.ne.s32.totalorder %s2951_s4, %s3610_s10  ;;  %p3615_p6 = scmp.lt.s32.totalorder %s2951_s4, %s2951_s4 }
0x173b   :  { %p3616_p7 = scmp.lt.s32.totalorder %s3614_s16, %s3610_s10 }
0x173d   :  { %p3617_p8 = por %p3616_p7, %p3615_p6 }
0x173f   :  { %p3618_p9 = pnand %p3617_p8, %p3611_p5 }
0x17b9   :  { %v2906_v1 = vpop.xlane.xlu1 %2905 }
0x17ba   :  { %3588 = vlog2.f32 %v2906_v1 }
0x17bd   :  { %v2920_v9 = vpop.xlane.xlu1 %2919 }
0x17c7   :  { %v3589_v5 = vpop.eup %3588 }
0x17c8   :  { %v2908_v6 = vmul.f32 0.6931472, %v3589_v5 }
0x17ca   :  { %v2909_v8 = vadd.f32 %v2908_v6, %v2900_v61 }
0x17cc   :  { %v2921_v10 = vsub.f32 %v2909_v8, %v2920_v9 }
0x17ce   :  { %v2923_v14 = vsel %vm2922_vm11, %v2921_v10, 0.0 }
0x17cf   :  { %v2924_v12 = vrot.slane %v2923_v14, 4 }
0x17d1   :  { %v2925_v16 = vadd.f32 %v2924_v12, %v2923_v14 }
0x17d3   :  { %v2926_v17 = vrot.slane %v2925_v16, 2 }
0x17d5   :  { %v2927_v13 = vadd.f32 %v2926_v17, %v2925_v16 }
0x17d7   :  { %v2928_v18 = vrot.slane %v2927_v13, 1 }
0x17d9   :  { %v2929_v20 = vadd.f32 %v2928_v18, %v2927_v13 }
0x17db   :  { %v2931_v21 = vmul.f32 0.5, %v2929_v20 }
0x17dd   :  { %2933 = vst.msk [vmem:[#allocation6] sm:$0x1] %vm2932_vm12, %v2931_v21 }
0x17de   :  { %3621 = shalt.err (!%p3618_p9)
}
0x17df   :  { %2953 = dma.vmem_to_hbm [thread:$0]  %s2951_s4, 16, %s4404_s11, [#allocation7]  }
0x17e0   :  { %3630 = dma.done.wait [#allocation5], 32  }
0x17e1   :  { %3631 = vsyncadd [#allocation5], 4294967264 }
0x17e2   :  { %3632 = dma.done.wait [#allocation7], 16  }
0x17e3   :  { %3633 = vsyncadd [#allocation7], 4294967280 }
0x17e4   :  { %2960 = vsyncpa [#allocation5], 1 }
0x17e5   :  { %2961 = vsyncpa [#allocation7], 1 }

</bundles_post_ra>
